<compile_context>
chip_gen: v6e
topology: v6e:2x2x1
jax: 0.10.0
libtpu: 0.0.40
codegen_flags: <defaults>
</compile_context>

<pallas_src>
import functools
import math

import jax
import jax.numpy as jnp
from jax.experimental import pallas as pl
from jax.experimental.pallas import tpu as pltpu


# ----------------------------- in-kernel helpers -----------------------------

def _ln(x, g, b, eps=1e-5):
    """LayerNorm over last dim (f32 statistics). x: (M, D), g/b: (1, D)."""
    mu = jnp.mean(x, axis=-1, keepdims=True)
    xc = x - mu
    var = jnp.mean(xc * xc, axis=-1, keepdims=True)
    return xc * jax.lax.rsqrt(var + eps) * g + b


def _silu(x):
    # x * sigmoid(x); divide goes to the EUP via approx reciprocal.
    return x * pl.reciprocal(1.0 + jnp.exp(-x), approx=True)


# ----------------------------- Pallas kernels -----------------------------

def _p_embed_kernel(sincos_ref, x0_ref, noise_ref, ca_ref, cb_ref,
                    tw1, tb1, tg, tb, tw2, tb2,
                    pw1, pb1, pg, pb, pw2, pb2, o_ref):
    """Fused: time_embed MLP + DDPM add_noise + p_embed MLP + broadcast add of time embedding."""
    B, N, din = x0_ref.shape
    D = tw2.shape[1]

    # ---- time_embed: Linear -> LN -> SiLU -> Linear on the (B, D) sincos embedding ----
    t = sincos_ref[...].astype(jnp.bfloat16)
    th = jnp.dot(t, tw1[...], preferred_element_type=jnp.float32) + tb1[...]
    th = _silu(_ln(th, tg[...], tb[...])).astype(jnp.bfloat16)
    te = jnp.dot(th, tw2[...], preferred_element_type=jnp.float32) + tb2[...]      # (B, D) f32

    # ---- DDPM add_noise + p_embed MLP (all B*N rows in one lane-dense matmul) ----
    xin = ca_ref[...] * x0_ref[...] + cb_ref[...] * noise_ref[...]                  # (B, N, din)
    xf = xin.reshape(B * N, din).astype(jnp.bfloat16)
    h = jnp.dot(xf, pw1[...], preferred_element_type=jnp.float32) + pb1[...]
    h = _silu(_ln(h, pg[...], pb[...])).astype(jnp.bfloat16)
    y = jnp.dot(h, pw2[...], preferred_element_type=jnp.float32) + pb2[...]         # (B*N, D)
    y = y.reshape(B, N, D) + te[:, None, :]
    o_ref[...] = y.astype(o_ref.dtype)


def _encoder_kernel(x_ref, ln1_g, ln1_b, wq, wk, wv, bq, bk, bv, wo, bo,
                    ln2_g, ln2_b, wf1, bf1, wf2, bf2, o_ref, x_vmem, *, heads):
    """One grid step = (batch item b, layer l) of nn.TransformerEncoder (norm_first, relu).

    The residual stream x lives in a f32 VMEM scratch across the layer axis; weights for layer l
    are streamed in via the layer-indexed BlockSpecs.  Q/K/V/O are full-width (D-wide) matmuls."""
    l = pl.program_id(1)
    n_layers = pl.num_programs(1)

    @pl.when(l == 0)
    def _():
        x_vmem[...] = x_ref[0].astype(jnp.float32)

    N, D = x_vmem.shape
    dh = D // heads
    scale = 1.0 / math.sqrt(dh)

    x = x_vmem[...]

    # ---- self-attention block: x = x + MHA(LN1(x)) ----
    h1 = _ln(x, ln1_g[0], ln1_b[0]).astype(jnp.bfloat16)
    q = jnp.dot(h1, wq[0], preferred_element_type=jnp.float32) + bq[0]              # (N, D)
    k = jnp.dot(h1, wk[0], preferred_element_type=jnp.float32) + bk[0]
    v = jnp.dot(h1, wv[0], preferred_element_type=jnp.float32) + bv[0]

    ctx = []
    for hh in range(heads):                      # short, unrolled; slices are 128-lane aligned
        sl = slice(hh * dh, (hh + 1) * dh)
        qh = q[:, sl].astype(jnp.bfloat16)
        kh = k[:, sl].astype(jnp.bfloat16)
        vh = v[:, sl].astype(jnp.bfloat16)
        s = jax.lax.dot_general(qh, kh, (((1,), (1,)), ((), ())),
                                preferred_element_type=jnp.float32) * scale         # (N, N)
        s = s - jnp.max(s, axis=-1, keepdims=True)
        e = jnp.exp(s)
        p = e * pl.reciprocal(jnp.sum(e, axis=-1, keepdims=True), approx=True)
        ctx.append(jnp.dot(p.astype(jnp.bfloat16), vh,
                           preferred_element_type=jnp.float32))                     # (N, dh)
    c = jnp.concatenate(ctx, axis=-1).astype(jnp.bfloat16)                          # (N, D)
    attn = jnp.dot(c, wo[0], preferred_element_type=jnp.float32) + bo[0]
    x = x + attn

    # ---- feed-forward block: x = x + FFN(LN2(x)) ----
    h2 = _ln(x, ln2_g[0], ln2_b[0]).astype(jnp.bfloat16)
    ff = jnp.dot(h2, wf1[0], preferred_element_type=jnp.float32) + bf1[0]
    ff = jnp.maximum(ff, 0.0).astype(jnp.bfloat16)                                  # relu
    ff = jnp.dot(ff, wf2[0], preferred_element_type=jnp.float32) + bf2[0]
    x = x + ff

    x_vmem[...] = x

    @pl.when(l == n_layers - 1)
    def _():
        o_ref[0] = x.astype(o_ref.dtype)


def _fc_out_kernel(x_ref, fg, fb, w1, b1, g, b, w2, b2, o_ref):
    """Final encoder LayerNorm (as pre-LN) + fc_out MLP; output padded to 128 lanes."""
    x = x_ref[0].astype(jnp.float32)                                                # (N, D)
    h = _ln(x, fg[...], fb[...]).astype(jnp.bfloat16)
    h = jnp.dot(h, w1[...], preferred_element_type=jnp.float32) + b1[...]
    h = _silu(_ln(h, g[...], b[...])).astype(jnp.bfloat16)
    y = jnp.dot(h, w2[...], preferred_element_type=jnp.float32) + b2[...]           # (N, 128)
    o_ref[0] = y.astype(o_ref.dtype)


# ----------------------------- wrappers -----------------------------

def p_embed_block(sincos, x0, noise, ca, cb, tp, pp):
    B, N, _ = x0.shape
    D = tp['w2'].shape[1]
    return pl.pallas_call(
        _p_embed_kernel,
        out_shape=jax.ShapeDtypeStruct((B, N, D), jnp.float32),
    )(sincos, x0, noise, ca, cb,
      tp['w1'], tp['b1'], tp['g'], tp['b'], tp['w2'], tp['b2'],
      pp['w1'], pp['b1'], pp['g'], pp['b'], pp['w2'], pp['b2'])


def encoder_block(x, ep, *, heads):
    B, N, D = x.shape
    L = ep['wq'].shape[0]
    dff = ep['wf1'].shape[2]

    xmap = lambda b, l: (b, 0, 0)      # activation: indexed by batch, constant over layers
    wmap = lambda b, l: (l, 0, 0)      # weights: indexed by layer, constant over batch

    in_specs = [
        pl.BlockSpec((1, N, D), xmap),        # x
        pl.BlockSpec((1, 1, D), wmap),        # ln1_g
        pl.BlockSpec((1, 1, D), wmap),        # ln1_b
        pl.BlockSpec((1, D, D), wmap),        # wq
        pl.BlockSpec((1, D, D), wmap),        # wk
        pl.BlockSpec((1, D, D), wmap),        # wv
        pl.BlockSpec((1, 1, D), wmap),        # bq
        pl.BlockSpec((1, 1, D), wmap),        # bk
        pl.BlockSpec((1, 1, D), wmap),        # bv
        pl.BlockSpec((1, D, D), wmap),        # wo
        pl.BlockSpec((1, 1, D), wmap),        # bo
        pl.BlockSpec((1, 1, D), wmap),        # ln2_g
        pl.BlockSpec((1, 1, D), wmap),        # ln2_b
        pl.BlockSpec((1, D, dff), wmap),      # wf1
        pl.BlockSpec((1, 1, dff), wmap),      # bf1
        pl.BlockSpec((1, dff, D), wmap),      # wf2
        pl.BlockSpec((1, 1, D), wmap),        # bf2
    ]

    return pl.pallas_call(
        functools.partial(_encoder_kernel, heads=heads),
        grid=(B, L),
        in_specs=in_specs,
        out_specs=pl.BlockSpec((1, N, D), xmap),
        out_shape=jax.ShapeDtypeStruct((B, N, D), jnp.float32),
        scratch_shapes=[pltpu.VMEM((N, D), jnp.float32)],
        compiler_params=pltpu.CompilerParams(
            dimension_semantics=("parallel", "arbitrary"),   # batch across cores (v7x), layers sequential
            vmem_limit_bytes=64 * 1024 * 1024),
    )(x, ep['ln1_g'], ep['ln1_b'], ep['wq'], ep['wk'], ep['wv'],
      ep['bq'], ep['bk'], ep['bv'], ep['wo'], ep['bo'],
      ep['ln2_g'], ep['ln2_b'], ep['wf1'], ep['bf1'], ep['wf2'], ep['bf2'])


def fc_out_block(x, fln, fp):
    B, N, D = x.shape
    dpad = fp['w2'].shape[1]
    cmap = lambda b: (0, 0)
    return pl.pallas_call(
        _fc_out_kernel,
        grid=(B,),
        in_specs=[
            pl.BlockSpec((1, N, D), lambda b: (b, 0, 0)),
            pl.BlockSpec((1, D), cmap), pl.BlockSpec((1, D), cmap),          # final LN
            pl.BlockSpec((D, D), cmap), pl.BlockSpec((1, D), cmap),          # w1, b1
            pl.BlockSpec((1, D), cmap), pl.BlockSpec((1, D), cmap),          # g, b
            pl.BlockSpec((D, dpad), cmap), pl.BlockSpec((1, dpad), cmap),    # w2 (padded), b2
        ],
        out_specs=pl.BlockSpec((1, N, dpad), lambda b: (b, 0, 0)),
        out_shape=jax.ShapeDtypeStruct((B, N, dpad), jnp.float32),
        compiler_params=pltpu.CompilerParams(dimension_semantics=("parallel",)),
    )(x, fln['g'], fln['b'], fp['w1'], fp['b1'], fp['g'], fp['b'], fp['w2'], fp['b2'])


# ----------------------------- parameters -----------------------------

def init_params(key, *, din, D, dff, heads, layers, dpad=128):
    keys = iter(jax.random.split(key, 32))

    def nrm(shape, scale):
        return (jax.random.normal(next(keys), shape, jnp.float32) * scale).astype(jnp.bfloat16)

    def mlp(i, m, o):
        return dict(w1=nrm((i, m), 1.0 / math.sqrt(i)), b1=jnp.zeros((1, m), jnp.float32),
                    g=jnp.ones((1, m), jnp.float32), b=jnp.zeros((1, m), jnp.float32),
                    w2=nrm((m, o), 1.0 / math.sqrt(m)), b2=jnp.zeros((1, o), jnp.float32))

    s = 1.0 / math.sqrt(D)
    enc = dict(
        ln1_g=jnp.ones((layers, 1, D), jnp.float32), ln1_b=jnp.zeros((layers, 1, D), jnp.float32),
        wq=nrm((layers, D, D), s), wk=nrm((layers, D, D), s), wv=nrm((layers, D, D), s),
        bq=jnp.zeros((layers, 1, D), jnp.float32),
        bk=jnp.zeros((layers, 1, D), jnp.float32),
        bv=jnp.zeros((layers, 1, D), jnp.float32),
        wo=nrm((layers, D, D), s), bo=jnp.zeros((layers, 1, D), jnp.float32),
        ln2_g=jnp.ones((layers, 1, D), jnp.float32), ln2_b=jnp.zeros((layers, 1, D), jnp.float32),
        wf1=nrm((layers, D, dff), s), bf1=jnp.zeros((layers, 1, dff), jnp.float32),
        wf2=nrm((layers, dff, D), 1.0 / math.sqrt(dff)), bf2=jnp.zeros((layers, 1, D), jnp.float32),
    )

    time_embed = mlp(D, D, D)
    p_embed = mlp(din, D, D)

    # fc_out with the last projection padded to dpad output lanes (zero columns beyond din)
    fc_out = mlp(D, D, din)
    w2p = jnp.zeros((D, dpad), jnp.bfloat16).at[:, :din].set(fc_out['w2'])
    fc_out['w2'] = w2p
    fc_out['b2'] = jnp.zeros((1, dpad), jnp.float32)

    return dict(time_embed=time_embed, p_embed=p_embed, enc=enc,
                final_ln=dict(g=jnp.ones((1, D), jnp.float32), b=jnp.zeros((1, D), jnp.float32)),
                fc_out=fc_out)


# ----------------------------- forward -----------------------------

def diffusion_forward(params, face_features, timesteps, noise, *, heads):
    """Diffusion_base_bak.forward: rearrange -> add_noise -> p_embed + time_embed ->
    TransformerEncoder -> fc_out -> MSE loss against the clean features."""
    B, N = face_features.shape[:2]
    x0 = face_features.reshape(B, N, -1)                          # (B, N, dim_input)
    din = x0.shape[-1]
    D = params['time_embed']['w1'].shape[0]

    # --- DDPM add_noise coefficients (linear betas, 1000 steps): tiny scalar-gather glue ---
    T = 1000
    betas = jnp.linspace(1e-4, 0.02, T, dtype=jnp.float32)
    alphas_cumprod = jnp.cumprod(1.0 - betas)
    ca = jnp.broadcast_to(jnp.sqrt(alphas_cumprod)[timesteps][:, None, None], (B, N, 1))
    cb = jnp.broadcast_to(jnp.sqrt(1.0 - alphas_cumprod)[timesteps][:, None, None], (B, N, 1))
    ca = ca.astype(jnp.float32)
    cb = cb.astype(jnp.float32)

    # --- sincos timestep embedding ([cos, sin] as in the reference): tiny trig glue ---
    half = D // 2
    freqs = jnp.exp(-math.log(10000.0) * jnp.arange(half, dtype=jnp.float32) / half)
    args = timesteps.astype(jnp.float32)[:, None] * freqs[None, :]
    sincos = jnp.concatenate([jnp.cos(args), jnp.sin(args)], axis=-1)  # (B, D)

    # --- kernel 1: time_embed + add_noise + p_embed + time-emb add (fused) ---
    x = p_embed_block(sincos, x0, noise, ca, cb,
                      params['time_embed'], params['p_embed'])        # (B, N, D) f32

    # --- kernel 2: whole transformer encoder in one pallas_call ---
    x = encoder_block(x, params['enc'], heads=heads)                  # (B, N, D) f32

    # --- kernel 3: final LN (pre-LN) + fc_out, lane-padded output ---
    pred_pad = fc_out_block(x, params['final_ln'], params['fc_out'])  # (B, N, 128)
    pred = pred_pad[..., :din]                                        # (B, N, din)

    loss = jnp.mean((pred - x0) ** 2)                                 # F.mse_loss (tiny reduce)
    return {'total_loss': loss, 'pred_x0': pred}


# ----------------------------- main -----------------------------

if __name__ == "__main__":
    key = jax.random.PRNGKey(0)

    # small but structurally faithful config
    B, N = 2, 16                 # batch, num faces (module: 64)
    C, Hf, Wf = 8, 2, 2          # dim_input = 8*2*2 = 32 (as in the module)
    D, DFF = 256, 256            # dim_latent (module: 768), dim_feedforward (module: 1024)
    HEADS, LAYERS = 2, 2         # nhead (module: 12), num layers (module: 12); dh = 128 lane-aligned

    k1, k2, k3, k4 = jax.random.split(key, 4)
    face_features = jax.random.normal(k1, (B, N, C, Hf, Wf), jnp.float32)
    timesteps = jax.random.randint(k2, (B,), 0, 1000)
    noise = jax.random.normal(k3, (B, N, C * Hf * Wf), jnp.float32)

    params = init_params(k4, din=C * Hf * Wf, D=D, dff=DFF, heads=HEADS, layers=LAYERS)

    fwd = jax.jit(functools.partial(diffusion_forward, heads=HEADS))
    out = fwd(params, face_features, timesteps, noise)
    jax.tree_util.tree_map(jax.block_until_ready, out)

    assert out['pred_x0'].shape == (B, N, C * Hf * Wf)
    assert out['total_loss'].shape == ()
    assert bool(jnp.isfinite(out['total_loss']))
    assert bool(jnp.all(jnp.isfinite(out['pred_x0'])))
    print("KERNEL_OK")
</pallas_src>

<mosaic_0001>
module attributes {stable_mosaic.version = 11 : i64} {
  func.func @_p_embed_kernel(%arg0: memref<2x256xf32, #tpu.memory_space<vmem>>, %arg1: memref<2x16x32xf32, #tpu.memory_space<vmem>>, %arg2: memref<2x16x32xf32, #tpu.memory_space<vmem>>, %arg3: memref<2x16x1xf32, #tpu.memory_space<vmem>>, %arg4: memref<2x16x1xf32, #tpu.memory_space<vmem>>, %arg5: memref<256x256xbf16, #tpu.memory_space<vmem>>, %arg6: memref<1x256xf32, #tpu.memory_space<vmem>>, %arg7: memref<1x256xf32, #tpu.memory_space<vmem>>, %arg8: memref<1x256xf32, #tpu.memory_space<vmem>>, %arg9: memref<256x256xbf16, #tpu.memory_space<vmem>>, %arg10: memref<1x256xf32, #tpu.memory_space<vmem>>, %arg11: memref<32x256xbf16, #tpu.memory_space<vmem>>, %arg12: memref<1x256xf32, #tpu.memory_space<vmem>>, %arg13: memref<1x256xf32, #tpu.memory_space<vmem>>, %arg14: memref<1x256xf32, #tpu.memory_space<vmem>>, %arg15: memref<256x256xbf16, #tpu.memory_space<vmem>>, %arg16: memref<1x256xf32, #tpu.memory_space<vmem>>, %arg17: memref<2x16x256xf32, #tpu.memory_space<vmem>>) attributes {dimension_semantics = [], scalar_prefetch = 0 : i64, scratch_operands = 0 : i64, tpu.core_type = #tpu.core_type<tc>} {
    %c0 = arith.constant 0 : index
    %c0_0 = arith.constant 0 : index
    %0 = vector.load %arg0[%c0, %c0_0] : memref<2x256xf32, #tpu.memory_space<vmem>>, vector<2x256xf32>
    %1 = arith.truncf %0 : vector<2x256xf32> to vector<2x256xbf16>
    %c0_1 = arith.constant 0 : index
    %c0_2 = arith.constant 0 : index
    %2 = vector.load %arg5[%c0_1, %c0_2] : memref<256x256xbf16, #tpu.memory_space<vmem>>, vector<256x256xbf16>
    %cst = arith.constant dense<0.000000e+00> : vector<2x256xf32>
    %3 = tpu.matmul %1, %2, %cst {dimension_numbers = #tpu.dot_dimension_numbers<[1], [0], [0], [1], [0, 0, 1, 1], [], []>} : vector<2x256xbf16>, vector<256x256xbf16>, vector<2x256xf32> -> vector<2x256xf32>
    %c0_3 = arith.constant 0 : index
    %c0_4 = arith.constant 0 : index
    %4 = vector.load %arg6[%c0_3, %c0_4] : memref<1x256xf32, #tpu.memory_space<vmem>>, vector<1x256xf32>
    %5 = vector.broadcast %4 : vector<1x256xf32> to vector<2x256xf32>
    %6 = arith.addf %3, %5 : vector<2x256xf32>
    %c0_5 = arith.constant 0 : index
    %c0_6 = arith.constant 0 : index
    %7 = vector.load %arg7[%c0_5, %c0_6] : memref<1x256xf32, #tpu.memory_space<vmem>>, vector<1x256xf32>
    %c0_7 = arith.constant 0 : index
    %c0_8 = arith.constant 0 : index
    %8 = vector.load %arg8[%c0_7, %c0_8] : memref<1x256xf32, #tpu.memory_space<vmem>>, vector<1x256xf32>
    %cst_9 = arith.constant dense<0.000000e+00> : vector<2xf32>
    %9 = vector.multi_reduction <add>, %6, %cst_9 [1] : vector<2x256xf32> to vector<2xf32>
    %10 = vector.shape_cast %9 : vector<2xf32> to vector<2x1xf32>
    %cst_10 = arith.constant 2.560000e+02 : f32
    %11 = vector.broadcast %cst_10 : f32 to vector<2x1xf32>
    %12 = arith.divf %10, %11 : vector<2x1xf32>
    %13 = vector.broadcast %12 : vector<2x1xf32> to vector<2x256xf32>
    %14 = arith.subf %6, %13 : vector<2x256xf32>
    %15 = arith.mulf %14, %14 : vector<2x256xf32>
    %cst_11 = arith.constant dense<0.000000e+00> : vector<2xf32>
    %16 = vector.multi_reduction <add>, %15, %cst_11 [1] : vector<2x256xf32> to vector<2xf32>
    %17 = vector.shape_cast %16 : vector<2xf32> to vector<2x1xf32>
    %cst_12 = arith.constant 2.560000e+02 : f32
    %18 = vector.broadcast %cst_12 : f32 to vector<2x1xf32>
    %19 = arith.divf %17, %18 : vector<2x1xf32>
    %cst_13 = arith.constant 9.99999974E-6 : f32
    %20 = vector.broadcast %cst_13 : f32 to vector<2x1xf32>
    %21 = arith.addf %19, %20 : vector<2x1xf32>
    %22 = math.rsqrt %21 : vector<2x1xf32>
    %23 = vector.broadcast %22 : vector<2x1xf32> to vector<2x256xf32>
    %24 = arith.mulf %14, %23 : vector<2x256xf32>
    %25 = vector.broadcast %7 : vector<1x256xf32> to vector<2x256xf32>
    %26 = arith.mulf %24, %25 : vector<2x256xf32>
    %27 = vector.broadcast %8 : vector<1x256xf32> to vector<2x256xf32>
    %28 = arith.addf %26, %27 : vector<2x256xf32>
    %cst_14 = arith.constant 0.000000e+00 : f32
    %29 = vector.broadcast %cst_14 : f32 to vector<2x256xf32>
    %30 = arith.subf %29, %28 : vector<2x256xf32>
    %31 = math.exp %30 : vector<2x256xf32>
    %cst_15 = arith.constant 1.000000e+00 : f32
    %32 = vector.broadcast %cst_15 : f32 to vector<2x256xf32>
    %33 = arith.addf %32, %31 : vector<2x256xf32>
    %34 = tpu.reciprocal %33 {approx = true} : vector<2x256xf32> -> vector<2x256xf32>
    %35 = arith.mulf %28, %34 : vector<2x256xf32>
    %36 = arith.truncf %35 : vector<2x256xf32> to vector<2x256xbf16>
    %c0_16 = arith.constant 0 : index
    %c0_17 = arith.constant 0 : index
    %37 = vector.load %arg9[%c0_16, %c0_17] : memref<256x256xbf16, #tpu.memory_space<vmem>>, vector<256x256xbf16>
    %cst_18 = arith.constant dense<0.000000e+00> : vector<2x256xf32>
    %38 = tpu.matmul %36, %37, %cst_18 {dimension_numbers = #tpu.dot_dimension_numbers<[1], [0], [0], [1], [0, 0, 1, 1], [], []>} : vector<2x256xbf16>, vector<256x256xbf16>, vector<2x256xf32> -> vector<2x256xf32>
    %c0_19 = arith.constant 0 : index
    %c0_20 = arith.constant 0 : index
    %39 = vector.load %arg10[%c0_19, %c0_20] : memref<1x256xf32, #tpu.memory_space<vmem>>, vector<1x256xf32>
    %40 = vector.broadcast %39 : vector<1x256xf32> to vector<2x256xf32>
    %41 = arith.addf %38, %40 : vector<2x256xf32>
    %c0_21 = arith.constant 0 : index
    %c0_22 = arith.constant 0 : index
    %c0_23 = arith.constant 0 : index
    %42 = vector.load %arg3[%c0_21, %c0_22, %c0_23] : memref<2x16x1xf32, #tpu.memory_space<vmem>>, vector<2x16x1xf32>
    %c0_24 = arith.constant 0 : index
    %c0_25 = arith.constant 0 : index
    %c0_26 = arith.constant 0 : index
    %43 = vector.load %arg1[%c0_24, %c0_25, %c0_26] : memref<2x16x32xf32, #tpu.memory_space<vmem>>, vector<2x16x32xf32>
    %44 = vector.broadcast %42 : vector<2x16x1xf32> to vector<2x16x32xf32>
    %45 = arith.mulf %44, %43 : vector<2x16x32xf32>
    %c0_27 = arith.constant 0 : index
    %c0_28 = arith.constant 0 : index
    %c0_29 = arith.constant 0 : index
    %46 = vector.load %arg4[%c0_27, %c0_28, %c0_29] : memref<2x16x1xf32, #tpu.memory_space<vmem>>, vector<2x16x1xf32>
    %c0_30 = arith.constant 0 : index
    %c0_31 = arith.constant 0 : index
    %c0_32 = arith.constant 0 : index
    %47 = vector.load %arg2[%c0_30, %c0_31, %c0_32] : memref<2x16x32xf32, #tpu.memory_space<vmem>>, vector<2x16x32xf32>
    %48 = vector.broadcast %46 : vector<2x16x1xf32> to vector<2x16x32xf32>
    %49 = arith.mulf %48, %47 : vector<2x16x32xf32>
    %50 = arith.addf %45, %49 : vector<2x16x32xf32>
    %51 = vector.shape_cast %50 : vector<2x16x32xf32> to vector<32x32xf32>
    %52 = arith.truncf %51 : vector<32x32xf32> to vector<32x32xbf16>
    %c0_33 = arith.constant 0 : index
    %c0_34 = arith.constant 0 : index
    %53 = vector.load %arg11[%c0_33, %c0_34] : memref<32x256xbf16, #tpu.memory_space<vmem>>, vector<32x256xbf16>
    %cst_35 = arith.constant dense<0.000000e+00> : vector<32x256xf32>
    %54 = tpu.matmul %52, %53, %cst_35 {dimension_numbers = #tpu.dot_dimension_numbers<[1], [0], [0], [1], [0, 0, 1, 1], [], []>} : vector<32x32xbf16>, vector<32x256xbf16>, vector<32x256xf32> -> vector<32x256xf32>
    %c0_36 = arith.constant 0 : index
    %c0_37 = arith.constant 0 : index
    %55 = vector.load %arg12[%c0_36, %c0_37] : memref<1x256xf32, #tpu.memory_space<vmem>>, vector<1x256xf32>
    %56 = vector.broadcast %55 : vector<1x256xf32> to vector<32x256xf32>
    %57 = arith.addf %54, %56 : vector<32x256xf32>
    %c0_38 = arith.constant 0 : index
    %c0_39 = arith.constant 0 : index
    %58 = vector.load %arg13[%c0_38, %c0_39] : memref<1x256xf32, #tpu.memory_space<vmem>>, vector<1x256xf32>
    %c0_40 = arith.constant 0 : index
    %c0_41 = arith.constant 0 : index
    %59 = vector.load %arg14[%c0_40, %c0_41] : memref<1x256xf32, #tpu.memory_space<vmem>>, vector<1x256xf32>
    %cst_42 = arith.constant dense<0.000000e+00> : vector<32xf32>
    %60 = vector.multi_reduction <add>, %57, %cst_42 [1] : vector<32x256xf32> to vector<32xf32>
    %61 = vector.shape_cast %60 : vector<32xf32> to vector<32x1xf32>
    %cst_43 = arith.constant 2.560000e+02 : f32
    %62 = vector.broadcast %cst_43 : f32 to vector<32x1xf32>
    %63 = arith.divf %61, %62 : vector<32x1xf32>
    %64 = vector.broadcast %63 : vector<32x1xf32> to vector<32x256xf32>
    %65 = arith.subf %57, %64 : vector<32x256xf32>
    %66 = arith.mulf %65, %65 : vector<32x256xf32>
    %cst_44 = arith.constant dense<0.000000e+00> : vector<32xf32>
    %67 = vector.multi_reduction <add>, %66, %cst_44 [1] : vector<32x256xf32> to vector<32xf32>
    %68 = vector.shape_cast %67 : vector<32xf32> to vector<32x1xf32>
    %cst_45 = arith.constant 2.560000e+02 : f32
    %69 = vector.broadcast %cst_45 : f32 to vector<32x1xf32>
    %70 = arith.divf %68, %69 : vector<32x1xf32>
    %cst_46 = arith.constant 9.99999974E-6 : f32
    %71 = vector.broadcast %cst_46 : f32 to vector<32x1xf32>
    %72 = arith.addf %70, %71 : vector<32x1xf32>
    %73 = math.rsqrt %72 : vector<32x1xf32>
    %74 = vector.broadcast %73 : vector<32x1xf32> to vector<32x256xf32>
    %75 = arith.mulf %65, %74 : vector<32x256xf32>
    %76 = vector.broadcast %58 : vector<1x256xf32> to vector<32x256xf32>
    %77 = arith.mulf %75, %76 : vector<32x256xf32>
    %78 = vector.broadcast %59 : vector<1x256xf32> to vector<32x256xf32>
    %79 = arith.addf %77, %78 : vector<32x256xf32>
    %cst_47 = arith.constant 0.000000e+00 : f32
    %80 = vector.broadcast %cst_47 : f32 to vector<32x256xf32>
    %81 = arith.subf %80, %79 : vector<32x256xf32>
    %82 = math.exp %81 : vector<32x256xf32>
    %cst_48 = arith.constant 1.000000e+00 : f32
    %83 = vector.broadcast %cst_48 : f32 to vector<32x256xf32>
    %84 = arith.addf %83, %82 : vector<32x256xf32>
    %85 = tpu.reciprocal %84 {approx = true} : vector<32x256xf32> -> vector<32x256xf32>
    %86 = arith.mulf %79, %85 : vector<32x256xf32>
    %87 = arith.truncf %86 : vector<32x256xf32> to vector<32x256xbf16>
    %c0_49 = arith.constant 0 : index
    %c0_50 = arith.constant 0 : index
    %88 = vector.load %arg15[%c0_49, %c0_50] : memref<256x256xbf16, #tpu.memory_space<vmem>>, vector<256x256xbf16>
    %cst_51 = arith.constant dense<0.000000e+00> : vector<32x256xf32>
    %89 = tpu.matmul %87, %88, %cst_51 {dimension_numbers = #tpu.dot_dimension_numbers<[1], [0], [0], [1], [0, 0, 1, 1], [], []>} : vector<32x256xbf16>, vector<256x256xbf16>, vector<32x256xf32> -> vector<32x256xf32>
    %c0_52 = arith.constant 0 : index
    %c0_53 = arith.constant 0 : index
    %90 = vector.load %arg16[%c0_52, %c0_53] : memref<1x256xf32, #tpu.memory_space<vmem>>, vector<1x256xf32>
    %91 = vector.broadcast %90 : vector<1x256xf32> to vector<32x256xf32>
    %92 = arith.addf %89, %91 : vector<32x256xf32>
    %93 = vector.shape_cast %92 : vector<32x256xf32> to vector<2x16x256xf32>
    %94 = vector.shape_cast %41 : vector<2x256xf32> to vector<2x1x256xf32>
    %95 = vector.broadcast %94 : vector<2x1x256xf32> to vector<2x16x256xf32>
    %96 = arith.addf %93, %95 : vector<2x16x256xf32>
    %c0_54 = arith.constant 0 : index
    %c0_55 = arith.constant 0 : index
    %c0_56 = arith.constant 0 : index
    %97 = vector.load %arg17[%c0_54, %c0_55, %c0_56] : memref<2x16x256xf32, #tpu.memory_space<vmem>>, vector<2x16x256xf32>
    tpu.vector_store %arg17[%c0_54, %c0_55, %c0_56], %96 {strides = array<i32>} : memref<2x16x256xf32, #tpu.memory_space<vmem>>, vector<2x16x256xf32>,
    return
  }
}

module attributes {stable_mosaic.version = 11 : i64} {
  func.func @_fc_out_kernel(%arg0: i32, %arg1: memref<1x16x256xf32, #tpu.memory_space<vmem>>, %arg2: memref<1x256xf32, #tpu.memory_space<vmem>>, %arg3: memref<1x256xf32, #tpu.memory_space<vmem>>, %arg4: memref<256x256xbf16, #tpu.memory_space<vmem>>, %arg5: memref<1x256xf32, #tpu.memory_space<vmem>>, %arg6: memref<1x256xf32, #tpu.memory_space<vmem>>, %arg7: memref<1x256xf32, #tpu.memory_space<vmem>>, %arg8: memref<256x128xbf16, #tpu.memory_space<vmem>>, %arg9: memref<1x128xf32, #tpu.memory_space<vmem>>, %arg10: memref<1x16x128xf32, #tpu.memory_space<vmem>>) attributes {dimension_semantics = [#tpu.dimension_semantics<parallel>], iteration_bounds = array<i64: 2>, scalar_prefetch = 0 : i64, scratch_operands = 0 : i64, tpu.core_type = #tpu.core_type<tc>, window_params = [{transform_indices = @transform_0, window_bounds = array<i64: 1, 16, 256>}, {pipeline_mode = #tpu.pipeline_mode<synchronous>, transform_indices = @transform_1, window_bounds = array<i64: 1, 256>}, {pipeline_mode = #tpu.pipeline_mode<synchronous>, transform_indices = @transform_2, window_bounds = array<i64: 1, 256>}, {pipeline_mode = #tpu.pipeline_mode<synchronous>, transform_indices = @transform_3, window_bounds = array<i64: 256, 256>}, {pipeline_mode = #tpu.pipeline_mode<synchronous>, transform_indices = @transform_4, window_bounds = array<i64: 1, 256>}, {pipeline_mode = #tpu.pipeline_mode<synchronous>, transform_indices = @transform_5, window_bounds = array<i64: 1, 256>}, {pipeline_mode = #tpu.pipeline_mode<synchronous>, transform_indices = @transform_6, window_bounds = array<i64: 1, 256>}, {pipeline_mode = #tpu.pipeline_mode<synchronous>, transform_indices = @transform_7, window_bounds = array<i64: 256, 128>}, {pipeline_mode = #tpu.pipeline_mode<synchronous>, transform_indices = @transform_8, window_bounds = array<i64: 1, 128>}, {transform_indices = @transform_9, window_bounds = array<i64: 1, 16, 128>}]} {
    %c0 = arith.constant 0 : index
    %c0_0 = arith.constant 0 : index
    %c0_1 = arith.constant 0 : index
    %0 = vector.load %arg1[%c0, %c0_0, %c0_1] : memref<1x16x256xf32, #tpu.memory_space<vmem>>, vector<1x16x256xf32>
    %1 = vector.shape_cast %0 : vector<1x16x256xf32> to vector<16x256xf32>
    %c0_2 = arith.constant 0 : index
    %c0_3 = arith.constant 0 : index
    %2 = vector.load %arg2[%c0_2, %c0_3] : memref<1x256xf32, #tpu.memory_space<vmem>>, vector<1x256xf32>
    %c0_4 = arith.constant 0 : index
    %c0_5 = arith.constant 0 : index
    %3 = vector.load %arg3[%c0_4, %c0_5] : memref<1x256xf32, #tpu.memory_space<vmem>>, vector<1x256xf32>
    %cst = arith.constant dense<0.000000e+00> : vector<16xf32>
    %4 = vector.multi_reduction <add>, %1, %cst [1] : vector<16x256xf32> to vector<16xf32>
    %5 = vector.shape_cast %4 : vector<16xf32> to vector<16x1xf32>
    %cst_6 = arith.constant 2.560000e+02 : f32
    %6 = vector.broadcast %cst_6 : f32 to vector<16x1xf32>
    %7 = arith.divf %5, %6 : vector<16x1xf32>
    %8 = vector.broadcast %7 : vector<16x1xf32> to vector<16x256xf32>
    %9 = arith.subf %1, %8 : vector<16x256xf32>
    %10 = arith.mulf %9, %9 : vector<16x256xf32>
    %cst_7 = arith.constant dense<0.000000e+00> : vector<16xf32>
    %11 = vector.multi_reduction <add>, %10, %cst_7 [1] : vector<16x256xf32> to vector<16xf32>
    %12 = vector.shape_cast %11 : vector<16xf32> to vector<16x1xf32>
    %cst_8 = arith.constant 2.560000e+02 : f32
    %13 = vector.broadcast %cst_8 : f32 to vector<16x1xf32>
    %14 = arith.divf %12, %13 : vector<16x1xf32>
    %cst_9 = arith.constant 9.99999974E-6 : f32
    %15 = vector.broadcast %cst_9 : f32 to vector<16x1xf32>
    %16 = arith.addf %14, %15 : vector<16x1xf32>
    %17 = math.rsqrt %16 : vector<16x1xf32>
    %18 = vector.broadcast %17 : vector<16x1xf32> to vector<16x256xf32>
    %19 = arith.mulf %9, %18 : vector<16x256xf32>
    %20 = vector.broadcast %2 : vector<1x256xf32> to vector<16x256xf32>
    %21 = arith.mulf %19, %20 : vector<16x256xf32>
    %22 = vector.broadcast %3 : vector<1x256xf32> to vector<16x256xf32>
    %23 = arith.addf %21, %22 : vector<16x256xf32>
    %24 = arith.truncf %23 : vector<16x256xf32> to vector<16x256xbf16>
    %c0_10 = arith.constant 0 : index
    %c0_11 = arith.constant 0 : index
    %25 = vector.load %arg4[%c0_10, %c0_11] : memref<256x256xbf16, #tpu.memory_space<vmem>>, vector<256x256xbf16>
    %cst_12 = arith.constant dense<0.000000e+00> : vector<16x256xf32>
    %26 = tpu.matmul %24, %25, %cst_12 {dimension_numbers = #tpu.dot_dimension_numbers<[1], [0], [0], [1], [0, 0, 1, 1], [], []>} : vector<16x256xbf16>, vector<256x256xbf16>, vector<16x256xf32> -> vector<16x256xf32>
    %c0_13 = arith.constant 0 : index
    %c0_14 = arith.constant 0 : index
    %27 = vector.load %arg5[%c0_13, %c0_14] : memref<1x256xf32, #tpu.memory_space<vmem>>, vector<1x256xf32>
    %28 = vector.broadcast %27 : vector<1x256xf32> to vector<16x256xf32>
    %29 = arith.addf %26, %28 : vector<16x256xf32>
    %c0_15 = arith.constant 0 : index
    %c0_16 = arith.constant 0 : index
    %30 = vector.load %arg6[%c0_15, %c0_16] : memref<1x256xf32, #tpu.memory_space<vmem>>, vector<1x256xf32>
    %c0_17 = arith.constant 0 : index
    %c0_18 = arith.constant 0 : index
    %31 = vector.load %arg7[%c0_17, %c0_18] : memref<1x256xf32, #tpu.memory_space<vmem>>, vector<1x256xf32>
    %cst_19 = arith.constant dense<0.000000e+00> : vector<16xf32>
    %32 = vector.multi_reduction <add>, %29, %cst_19 [1] : vector<16x256xf32> to vector<16xf32>
    %33 = vector.shape_cast %32 : vector<16xf32> to vector<16x1xf32>
    %cst_20 = arith.constant 2.560000e+02 : f32
    %34 = vector.broadcast %cst_20 : f32 to vector<16x1xf32>
    %35 = arith.divf %33, %34 : vector<16x1xf32>
    %36 = vector.broadcast %35 : vector<16x1xf32> to vector<16x256xf32>
    %37 = arith.subf %29, %36 : vector<16x256xf32>
    %38 = arith.mulf %37, %37 : vector<16x256xf32>
    %cst_21 = arith.constant dense<0.000000e+00> : vector<16xf32>
    %39 = vector.multi_reduction <add>, %38, %cst_21 [1] : vector<16x256xf32> to vector<16xf32>
    %40 = vector.shape_cast %39 : vector<16xf32> to vector<16x1xf32>
    %cst_22 = arith.constant 2.560000e+02 : f32
    %41 = vector.broadcast %cst_22 : f32 to vector<16x1xf32>
    %42 = arith.divf %40, %41 : vector<16x1xf32>
    %cst_23 = arith.constant 9.99999974E-6 : f32
    %43 = vector.broadcast %cst_23 : f32 to vector<16x1xf32>
    %44 = arith.addf %42, %43 : vector<16x1xf32>
    %45 = math.rsqrt %44 : vector<16x1xf32>
    %46 = vector.broadcast %45 : vector<16x1xf32> to vector<16x256xf32>
    %47 = arith.mulf %37, %46 : vector<16x256xf32>
    %48 = vector.broadcast %30 : vector<1x256xf32> to vector<16x256xf32>
    %49 = arith.mulf %47, %48 : vector<16x256xf32>
    %50 = vector.broadcast %31 : vector<1x256xf32> to vector<16x256xf32>
    %51 = arith.addf %49, %50 : vector<16x256xf32>
    %cst_24 = arith.constant 0.000000e+00 : f32
    %52 = vector.broadcast %cst_24 : f32 to vector<16x256xf32>
    %53 = arith.subf %52, %51 : vector<16x256xf32>
    %54 = math.exp %53 : vector<16x256xf32>
    %cst_25 = arith.constant 1.000000e+00 : f32
    %55 = vector.broadcast %cst_25 : f32 to vector<16x256xf32>
    %56 = arith.addf %55, %54 : vector<16x256xf32>
    %57 = tpu.reciprocal %56 {approx = true} : vector<16x256xf32> -> vector<16x256xf32>
    %58 = arith.mulf %51, %57 : vector<16x256xf32>
    %59 = arith.truncf %58 : vector<16x256xf32> to vector<16x256xbf16>
    %c0_26 = arith.constant 0 : index
    %c0_27 = arith.constant 0 : index
    %60 = vector.load %arg8[%c0_26, %c0_27] : memref<256x128xbf16, #tpu.memory_space<vmem>>, vector<256x128xbf16>
    %cst_28 = arith.constant dense<0.000000e+00> : vector<16x128xf32>
    %61 = tpu.matmul %59, %60, %cst_28 {dimension_numbers = #tpu.dot_dimension_numbers<[1], [0], [0], [1], [0, 0, 1, 1], [], []>} : vector<16x256xbf16>, vector<256x128xbf16>, vector<16x128xf32> -> vector<16x128xf32>
    %c0_29 = arith.constant 0 : index
    %c0_30 = arith.constant 0 : index
    %62 = vector.load %arg9[%c0_29, %c0_30] : memref<1x128xf32, #tpu.memory_space<vmem>>, vector<1x128xf32>
    %63 = vector.broadcast %62 : vector<1x128xf32> to vector<16x128xf32>
    %64 = arith.addf %61, %63 : vector<16x128xf32>
    %c0_31 = arith.constant 0 : index
    %c0_32 = arith.constant 0 : index
    %c0_33 = arith.constant 0 : index
    %65 = vector.load %arg10[%c0_31, %c0_32, %c0_33] : memref<1x16x128xf32, #tpu.memory_space<vmem>>, vector<1x16x128xf32>
    %66 = vector.shape_cast %65 : vector<1x16x128xf32> to vector<16x128xf32>
    %67 = vector.shape_cast %64 : vector<16x128xf32> to vector<1x16x128xf32>
    tpu.vector_store %arg10[%c0_31, %c0_32, %c0_33], %67 {strides = array<i32>} : memref<1x16x128xf32, #tpu.memory_space<vmem>>, vector<1x16x128xf32>,
    return
  }
  func.func @transform_0(%arg0: i32) -> (i32, i32, i32) {
    %c0_i32 = arith.constant 0 : i32
    %c0_i32_0 = arith.constant 0 : i32
    %c0_i32_1 = arith.constant 0 : i32
    return %arg0, %c0_i32, %c0_i32_0 : i32, i32, i32
  }
  func.func @transform_1(%arg0: i32) -> (i32, i32) {
    %c0_i32 = arith.constant 0 : i32
    %c0_i32_0 = arith.constant 0 : i32
    %c0_i32_1 = arith.constant 0 : i32
    return %c0_i32, %c0_i32_0 : i32, i32
  }
  func.func @transform_2(%arg0: i32) -> (i32, i32) {
    %c0_i32 = arith.constant 0 : i32
    %c0_i32_0 = arith.constant 0 : i32
    %c0_i32_1 = arith.constant 0 : i32
    return %c0_i32, %c0_i32_0 : i32, i32
  }
  func.func @transform_3(%arg0: i32) -> (i32, i32) {
    %c0_i32 = arith.constant 0 : i32
    %c0_i32_0 = arith.constant 0 : i32
    %c0_i32_1 = arith.constant 0 : i32
    return %c0_i32, %c0_i32_0 : i32, i32
  }
  func.func @transform_4(%arg0: i32) -> (i32, i32) {
    %c0_i32 = arith.constant 0 : i32
    %c0_i32_0 = arith.constant 0 : i32
    %c0_i32_1 = arith.constant 0 : i32
    return %c0_i32, %c0_i32_0 : i32, i32
  }
  func.func @transform_5(%arg0: i32) -> (i32, i32) {
    %c0_i32 = arith.constant 0 : i32
    %c0_i32_0 = arith.constant 0 : i32
    %c0_i32_1 = arith.constant 0 : i32
    return %c0_i32, %c0_i32_0 : i32, i32
  }
  func.func @transform_6(%arg0: i32) -> (i32, i32) {
    %c0_i32 = arith.constant 0 : i32
    %c0_i32_0 = arith.constant 0 : i32
    %c0_i32_1 = arith.constant 0 : i32
    return %c0_i32, %c0_i32_0 : i32, i32
  }
  func.func @transform_7(%arg0: i32) -> (i32, i32) {
    %c0_i32 = arith.constant 0 : i32
    %c0_i32_0 = arith.constant 0 : i32
    %c0_i32_1 = arith.constant 0 : i32
    return %c0_i32, %c0_i32_0 : i32, i32
  }
  func.func @transform_8(%arg0: i32) -> (i32, i32) {
    %c0_i32 = arith.constant 0 : i32
    %c0_i32_0 = arith.constant 0 : i32
    %c0_i32_1 = arith.constant 0 : i32
    return %c0_i32, %c0_i32_0 : i32, i32
  }
  func.func @transform_9(%arg0: i32) -> (i32, i32, i32) {
    %c0_i32 = arith.constant 0 : i32
    %c0_i32_0 = arith.constant 0 : i32
    %c0_i32_1 = arith.constant 0 : i32
    return %arg0, %c0_i32, %c0_i32_0 : i32, i32, i32
  }
}

module attributes {stable_mosaic.version = 11 : i64} {
  func.func @_encoder_kernel(%arg0: i32, %arg1: i32, %arg2: memref<1x16x256xf32, #tpu.memory_space<vmem>>, %arg3: memref<1x1x256xf32, #tpu.memory_space<vmem>>, %arg4: memref<1x1x256xf32, #tpu.memory_space<vmem>>, %arg5: memref<1x256x256xbf16, #tpu.memory_space<vmem>>, %arg6: memref<1x256x256xbf16, #tpu.memory_space<vmem>>, %arg7: memref<1x256x256xbf16, #tpu.memory_space<vmem>>, %arg8: memref<1x1x256xf32, #tpu.memory_space<vmem>>, %arg9: memref<1x1x256xf32, #tpu.memory_space<vmem>>, %arg10: memref<1x1x256xf32, #tpu.memory_space<vmem>>, %arg11: memref<1x256x256xbf16, #tpu.memory_space<vmem>>, %arg12: memref<1x1x256xf32, #tpu.memory_space<vmem>>, %arg13: memref<1x1x256xf32, #tpu.memory_space<vmem>>, %arg14: memref<1x1x256xf32, #tpu.memory_space<vmem>>, %arg15: memref<1x256x256xbf16, #tpu.memory_space<vmem>>, %arg16: memref<1x1x256xf32, #tpu.memory_space<vmem>>, %arg17: memref<1x256x256xbf16, #tpu.memory_space<vmem>>, %arg18: memref<1x1x256xf32, #tpu.memory_space<vmem>>, %arg19: memref<1x16x256xf32, #tpu.memory_space<vmem>>, %arg20: memref<16x256xf32, #tpu.memory_space<vmem>>) attributes {dimension_semantics = [#tpu.dimension_semantics<parallel>, #tpu.dimension_semantics<arbitrary>], iteration_bounds = array<i64: 2, 2>, scalar_prefetch = 0 : i64, scratch_operands = 1 : i64, tpu.core_type = #tpu.core_type<tc>, window_params = [{transform_indices = @transform_0, window_bounds = array<i64: 1, 16, 256>}, {transform_indices = @transform_1, window_bounds = array<i64: 1, 1, 256>}, {transform_indices = @transform_2, window_bounds = array<i64: 1, 1, 256>}, {transform_indices = @transform_3, window_bounds = array<i64: 1, 256, 256>}, {transform_indices = @transform_4, window_bounds = array<i64: 1, 256, 256>}, {transform_indices = @transform_5, window_bounds = array<i64: 1, 256, 256>}, {transform_indices = @transform_6, window_bounds = array<i64: 1, 1, 256>}, {transform_indices = @transform_7, window_bounds = array<i64: 1, 1, 256>}, {transform_indices = @transform_8, window_bounds = array<i64: 1, 1, 256>}, {transform_indices = @transform_9, window_bounds = array<i64: 1, 256, 256>}, {transform_indices = @transform_10, window_bounds = array<i64: 1, 1, 256>}, {transform_indices = @transform_11, window_bounds = array<i64: 1, 1, 256>}, {transform_indices = @transform_12, window_bounds = array<i64: 1, 1, 256>}, {transform_indices = @transform_13, window_bounds = array<i64: 1, 256, 256>}, {transform_indices = @transform_14, window_bounds = array<i64: 1, 1, 256>}, {transform_indices = @transform_15, window_bounds = array<i64: 1, 256, 256>}, {transform_indices = @transform_16, window_bounds = array<i64: 1, 1, 256>}, {transform_indices = @transform_17, window_bounds = array<i64: 1, 16, 256>}]} {
    %c0_i32 = arith.constant 0 : i32
    %0 = arith.cmpi eq, %arg1, %c0_i32 : i32
    %1 = arith.extui %0 : i1 to i32
    %c0_i32_0 = arith.constant 0 : i32
    %2 = arith.cmpi ne, %1, %c0_i32_0 : i32
    scf.if %2 {
      %c0_79 = arith.constant 0 : index
      %c0_80 = arith.constant 0 : index
      %c0_81 = arith.constant 0 : index
      %149 = vector.load %arg2[%c0_79, %c0_80, %c0_81] : memref<1x16x256xf32, #tpu.memory_space<vmem>>, vector<1x16x256xf32>
      %150 = vector.shape_cast %149 : vector<1x16x256xf32> to vector<16x256xf32>
      %c0_82 = arith.constant 0 : index
      %c0_83 = arith.constant 0 : index
      %151 = vector.load %arg20[%c0_82, %c0_83] : memref<16x256xf32, #tpu.memory_space<vmem>>, vector<16x256xf32>
      tpu.vector_store %arg20[%c0_82, %c0_83], %150 {strides = array<i32>} : memref<16x256xf32, #tpu.memory_space<vmem>>, vector<16x256xf32>,
    } else {
    }
    %c0 = arith.constant 0 : index
    %c0_1 = arith.constant 0 : index
    %3 = vector.load %arg20[%c0, %c0_1] : memref<16x256xf32, #tpu.memory_space<vmem>>, vector<16x256xf32>
    %c0_2 = arith.constant 0 : index
    %c0_3 = arith.constant 0 : index
    %c0_4 = arith.constant 0 : index
    %4 = vector.load %arg3[%c0_2, %c0_3, %c0_4] : memref<1x1x256xf32, #tpu.memory_space<vmem>>, vector<1x1x256xf32>
    %5 = vector.shape_cast %4 : vector<1x1x256xf32> to vector<1x256xf32>
    %c0_5 = arith.constant 0 : index
    %c0_6 = arith.constant 0 : index
    %c0_7 = arith.constant 0 : index
    %6 = vector.load %arg4[%c0_5, %c0_6, %c0_7] : memref<1x1x256xf32, #tpu.memory_space<vmem>>, vector<1x1x256xf32>
    %7 = vector.shape_cast %6 : vector<1x1x256xf32> to vector<1x256xf32>
    %cst = arith.constant dense<0.000000e+00> : vector<16xf32>
    %8 = vector.multi_reduction <add>, %3, %cst [1] : vector<16x256xf32> to vector<16xf32>
    %9 = vector.shape_cast %8 : vector<16xf32> to vector<16x1xf32>
    %cst_8 = arith.constant 2.560000e+02 : f32
    %10 = vector.broadcast %cst_8 : f32 to vector<16x1xf32>
    %11 = arith.divf %9, %10 : vector<16x1xf32>
    %12 = vector.broadcast %11 : vector<16x1xf32> to vector<16x256xf32>
    %13 = arith.subf %3, %12 : vector<16x256xf32>
    %14 = arith.mulf %13, %13 : vector<16x256xf32>
    %cst_9 = arith.constant dense<0.000000e+00> : vector<16xf32>
    %15 = vector.multi_reduction <add>, %14, %cst_9 [1] : vector<16x256xf32> to vector<16xf32>
    %16 = vector.shape_cast %15 : vector<16xf32> to vector<16x1xf32>
    %cst_10 = arith.constant 2.560000e+02 : f32
    %17 = vector.broadcast %cst_10 : f32 to vector<16x1xf32>
    %18 = arith.divf %16, %17 : vector<16x1xf32>
    %cst_11 = arith.constant 9.99999974E-6 : f32
    %19 = vector.broadcast %cst_11 : f32 to vector<16x1xf32>
    %20 = arith.addf %18, %19 : vector<16x1xf32>
    %21 = math.rsqrt %20 : vector<16x1xf32>
    %22 = vector.broadcast %21 : vector<16x1xf32> to vector<16x256xf32>
    %23 = arith.mulf %13, %22 : vector<16x256xf32>
    %24 = vector.broadcast %5 : vector<1x256xf32> to vector<16x256xf32>
    %25 = arith.mulf %23, %24 : vector<16x256xf32>
    %26 = vector.broadcast %7 : vector<1x256xf32> to vector<16x256xf32>
    %27 = arith.addf %25, %26 : vector<16x256xf32>
    %28 = arith.truncf %27 : vector<16x256xf32> to vector<16x256xbf16>
    %c0_12 = arith.constant 0 : index
    %c0_13 = arith.constant 0 : index
    %c0_14 = arith.constant 0 : index
    %29 = vector.load %arg5[%c0_12, %c0_13, %c0_14] : memref<1x256x256xbf16, #tpu.memory_space<vmem>>, vector<1x256x256xbf16>
    %30 = vector.shape_cast %29 : vector<1x256x256xbf16> to vector<256x256xbf16>
    %cst_15 = arith.constant dense<0.000000e+00> : vector<16x256xf32>
    %31 = tpu.matmul %28, %30, %cst_15 {dimension_numbers = #tpu.dot_dimension_numbers<[1], [0], [0], [1], [0, 0, 1, 1], [], []>} : vector<16x256xbf16>, vector<256x256xbf16>, vector<16x256xf32> -> vector<16x256xf32>
    %c0_16 = arith.constant 0 : index
    %c0_17 = arith.constant 0 : index
    %c0_18 = arith.constant 0 : index
    %32 = vector.load %arg8[%c0_16, %c0_17, %c0_18] : memref<1x1x256xf32, #tpu.memory_space<vmem>>, vector<1x1x256xf32>
    %33 = vector.shape_cast %32 : vector<1x1x256xf32> to vector<1x256xf32>
    %34 = vector.broadcast %33 : vector<1x256xf32> to vector<16x256xf32>
    %35 = arith.addf %31, %34 : vector<16x256xf32>
    %c0_19 = arith.constant 0 : index
    %c0_20 = arith.constant 0 : index
    %c0_21 = arith.constant 0 : index
    %36 = vector.load %arg6[%c0_19, %c0_20, %c0_21] : memref<1x256x256xbf16, #tpu.memory_space<vmem>>, vector<1x256x256xbf16>
    %37 = vector.shape_cast %36 : vector<1x256x256xbf16> to vector<256x256xbf16>
    %cst_22 = arith.constant dense<0.000000e+00> : vector<16x256xf32>
    %38 = tpu.matmul %28, %37, %cst_22 {dimension_numbers = #tpu.dot_dimension_numbers<[1], [0], [0], [1], [0, 0, 1, 1], [], []>} : vector<16x256xbf16>, vector<256x256xbf16>, vector<16x256xf32> -> vector<16x256xf32>
    %c0_23 = arith.constant 0 : index
    %c0_24 = arith.constant 0 : index
    %c0_25 = arith.constant 0 : index
    %39 = vector.load %arg9[%c0_23, %c0_24, %c0_25] : memref<1x1x256xf32, #tpu.memory_space<vmem>>, vector<1x1x256xf32>
    %40 = vector.shape_cast %39 : vector<1x1x256xf32> to vector<1x256xf32>
    %41 = vector.broadcast %40 : vector<1x256xf32> to vector<16x256xf32>
    %42 = arith.addf %38, %41 : vector<16x256xf32>
    %c0_26 = arith.constant 0 : index
    %c0_27 = arith.constant 0 : index
    %c0_28 = arith.constant 0 : index
    %43 = vector.load %arg7[%c0_26, %c0_27, %c0_28] : memref<1x256x256xbf16, #tpu.memory_space<vmem>>, vector<1x256x256xbf16>
    %44 = vector.shape_cast %43 : vector<1x256x256xbf16> to vector<256x256xbf16>
    %cst_29 = arith.constant dense<0.000000e+00> : vector<16x256xf32>
    %45 = tpu.matmul %28, %44, %cst_29 {dimension_numbers = #tpu.dot_dimension_numbers<[1], [0], [0], [1], [0, 0, 1, 1], [], []>} : vector<16x256xbf16>, vector<256x256xbf16>, vector<16x256xf32> -> vector<16x256xf32>
    %c0_30 = arith.constant 0 : index
    %c0_31 = arith.constant 0 : index
    %c0_32 = arith.constant 0 : index
    %46 = vector.load %arg10[%c0_30, %c0_31, %c0_32] : memref<1x1x256xf32, #tpu.memory_space<vmem>>, vector<1x1x256xf32>
    %47 = vector.shape_cast %46 : vector<1x1x256xf32> to vector<1x256xf32>
    %48 = vector.broadcast %47 : vector<1x256xf32> to vector<16x256xf32>
    %49 = arith.addf %45, %48 : vector<16x256xf32>
    %50 = vector.extract_strided_slice %35 {offsets = [0, 0], sizes = [16, 128], strides = [1, 1]} : vector<16x256xf32> to vector<16x128xf32>
    %51 = arith.truncf %50 : vector<16x128xf32> to vector<16x128xbf16>
    %52 = vector.extract_strided_slice %42 {offsets = [0, 0], sizes = [16, 128], strides = [1, 1]} : vector<16x256xf32> to vector<16x128xf32>
    %53 = arith.truncf %52 : vector<16x128xf32> to vector<16x128xbf16>
    %54 = vector.extract_strided_slice %49 {offsets = [0, 0], sizes = [16, 128], strides = [1, 1]} : vector<16x256xf32> to vector<16x128xf32>
    %55 = arith.truncf %54 : vector<16x128xf32> to vector<16x128xbf16>
    %cst_33 = arith.constant dense<0.000000e+00> : vector<16x16xf32>
    %56 = tpu.matmul %51, %53, %cst_33 {dimension_numbers = #tpu.dot_dimension_numbers<[1], [1], [0], [0], [0, 0, 1, 0], [], []>} : vector<16x128xbf16>, vector<16x128xbf16>, vector<16x16xf32> -> vector<16x16xf32>
    %cst_34 = arith.constant 0.0883883461 : f32
    %57 = vector.broadcast %cst_34 : f32 to vector<16x16xf32>
    %58 = arith.mulf %56, %57 : vector<16x16xf32>
    %cst_35 = arith.constant dense<0xFF800000> : vector<16xf32>
    %59 = vector.multi_reduction <maximumf>, %58, %cst_35 [1] : vector<16x16xf32> to vector<16xf32>
    %60 = vector.shape_cast %59 : vector<16xf32> to vector<16x1xf32>
    %61 = vector.broadcast %60 : vector<16x1xf32> to vector<16x16xf32>
    %62 = arith.subf %58, %61 : vector<16x16xf32>
    %63 = math.exp %62 : vector<16x16xf32>
    %cst_36 = arith.constant dense<0.000000e+00> : vector<16xf32>
    %64 = vector.multi_reduction <add>, %63, %cst_36 [1] : vector<16x16xf32> to vector<16xf32>
    %65 = vector.shape_cast %64 : vector<16xf32> to vector<16x1xf32>
    %66 = tpu.reciprocal %65 {approx = true} : vector<16x1xf32> -> vector<16x1xf32>
    %67 = vector.broadcast %66 : vector<16x1xf32> to vector<16x16xf32>
    %68 = arith.mulf %63, %67 : vector<16x16xf32>
    %69 = arith.truncf %68 : vector<16x16xf32> to vector<16x16xbf16>
    %cst_37 = arith.constant dense<0.000000e+00> : vector<16x128xf32>
    %70 = tpu.matmul %69, %55, %cst_37 {dimension_numbers = #tpu.dot_dimension_numbers<[1], [0], [0], [1], [0, 0, 1, 1], [], []>} : vector<16x16xbf16>, vector<16x128xbf16>, vector<16x128xf32> -> vector<16x128xf32>
    %71 = vector.extract_strided_slice %35 {offsets = [0, 128], sizes = [16, 128], strides = [1, 1]} : vector<16x256xf32> to vector<16x128xf32>
    %72 = arith.truncf %71 : vector<16x128xf32> to vector<16x128xbf16>
    %73 = vector.extract_strided_slice %42 {offsets = [0, 128], sizes = [16, 128], strides = [1, 1]} : vector<16x256xf32> to vector<16x128xf32>
    %74 = arith.truncf %73 : vector<16x128xf32> to vector<16x128xbf16>
    %75 = vector.extract_strided_slice %49 {offsets = [0, 128], sizes = [16, 128], strides = [1, 1]} : vector<16x256xf32> to vector<16x128xf32>
    %76 = arith.truncf %75 : vector<16x128xf32> to vector<16x128xbf16>
    %cst_38 = arith.constant dense<0.000000e+00> : vector<16x16xf32>
    %77 = tpu.matmul %72, %74, %cst_38 {dimension_numbers = #tpu.dot_dimension_numbers<[1], [1], [0], [0], [0, 0, 1, 0], [], []>} : vector<16x128xbf16>, vector<16x128xbf16>, vector<16x16xf32> -> vector<16x16xf32>
    %cst_39 = arith.constant 0.0883883461 : f32
    %78 = vector.broadcast %cst_39 : f32 to vector<16x16xf32>
    %79 = arith.mulf %77, %78 : vector<16x16xf32>
    %cst_40 = arith.constant dense<0xFF800000> : vector<16xf32>
    %80 = vector.multi_reduction <maximumf>, %79, %cst_40 [1] : vector<16x16xf32> to vector<16xf32>
    %81 = vector.shape_cast %80 : vector<16xf32> to vector<16x1xf32>
    %82 = vector.broadcast %81 : vector<16x1xf32> to vector<16x16xf32>
    %83 = arith.subf %79, %82 : vector<16x16xf32>
    %84 = math.exp %83 : vector<16x16xf32>
    %cst_41 = arith.constant dense<0.000000e+00> : vector<16xf32>
    %85 = vector.multi_reduction <add>, %84, %cst_41 [1] : vector<16x16xf32> to vector<16xf32>
    %86 = vector.shape_cast %85 : vector<16xf32> to vector<16x1xf32>
    %87 = tpu.reciprocal %86 {approx = true} : vector<16x1xf32> -> vector<16x1xf32>
    %88 = vector.broadcast %87 : vector<16x1xf32> to vector<16x16xf32>
    %89 = arith.mulf %84, %88 : vector<16x16xf32>
    %90 = arith.truncf %89 : vector<16x16xf32> to vector<16x16xbf16>
    %cst_42 = arith.constant dense<0.000000e+00> : vector<16x128xf32>
    %91 = tpu.matmul %90, %76, %cst_42 {dimension_numbers = #tpu.dot_dimension_numbers<[1], [0], [0], [1], [0, 0, 1, 1], [], []>} : vector<16x16xbf16>, vector<16x128xbf16>, vector<16x128xf32> -> vector<16x128xf32>
    %92 = tpu.concatenate %70, %91 in 1 : vector<16x128xf32>, vector<16x128xf32> -> vector<16x256xf32>
    %93 = arith.truncf %92 : vector<16x256xf32> to vector<16x256xbf16>
    %c0_43 = arith.constant 0 : index
    %c0_44 = arith.constant 0 : index
    %c0_45 = arith.constant 0 : index
    %94 = vector.load %arg11[%c0_43, %c0_44, %c0_45] : memref<1x256x256xbf16, #tpu.memory_space<vmem>>, vector<1x256x256xbf16>
    %95 = vector.shape_cast %94 : vector<1x256x256xbf16> to vector<256x256xbf16>
    %cst_46 = arith.constant dense<0.000000e+00> : vector<16x256xf32>
    %96 = tpu.matmul %93, %95, %cst_46 {dimension_numbers = #tpu.dot_dimension_numbers<[1], [0], [0], [1], [0, 0, 1, 1], [], []>} : vector<16x256xbf16>, vector<256x256xbf16>, vector<16x256xf32> -> vector<16x256xf32>
    %c0_47 = arith.constant 0 : index
    %c0_48 = arith.constant 0 : index
    %c0_49 = arith.constant 0 : index
    %97 = vector.load %arg12[%c0_47, %c0_48, %c0_49] : memref<1x1x256xf32, #tpu.memory_space<vmem>>, vector<1x1x256xf32>
    %98 = vector.shape_cast %97 : vector<1x1x256xf32> to vector<1x256xf32>
    %99 = vector.broadcast %98 : vector<1x256xf32> to vector<16x256xf32>
    %100 = arith.addf %96, %99 : vector<16x256xf32>
    %101 = arith.addf %3, %100 : vector<16x256xf32>
    %c0_50 = arith.constant 0 : index
    %c0_51 = arith.constant 0 : index
    %c0_52 = arith.constant 0 : index
    %102 = vector.load %arg13[%c0_50, %c0_51, %c0_52] : memref<1x1x256xf32, #tpu.memory_space<vmem>>, vector<1x1x256xf32>
    %103 = vector.shape_cast %102 : vector<1x1x256xf32> to vector<1x256xf32>
    %c0_53 = arith.constant 0 : index
    %c0_54 = arith.constant 0 : index
    %c0_55 = arith.constant 0 : index
    %104 = vector.load %arg14[%c0_53, %c0_54, %c0_55] : memref<1x1x256xf32, #tpu.memory_space<vmem>>, vector<1x1x256xf32>
    %105 = vector.shape_cast %104 : vector<1x1x256xf32> to vector<1x256xf32>
    %cst_56 = arith.constant dense<0.000000e+00> : vector<16xf32>
    %106 = vector.multi_reduction <add>, %101, %cst_56 [1] : vector<16x256xf32> to vector<16xf32>
    %107 = vector.shape_cast %106 : vector<16xf32> to vector<16x1xf32>
    %cst_57 = arith.constant 2.560000e+02 : f32
    %108 = vector.broadcast %cst_57 : f32 to vector<16x1xf32>
    %109 = arith.divf %107, %108 : vector<16x1xf32>
    %110 = vector.broadcast %109 : vector<16x1xf32> to vector<16x256xf32>
    %111 = arith.subf %101, %110 : vector<16x256xf32>
    %112 = arith.mulf %111, %111 : vector<16x256xf32>
    %cst_58 = arith.constant dense<0.000000e+00> : vector<16xf32>
    %113 = vector.multi_reduction <add>, %112, %cst_58 [1] : vector<16x256xf32> to vector<16xf32>
    %114 = vector.shape_cast %113 : vector<16xf32> to vector<16x1xf32>
    %cst_59 = arith.constant 2.560000e+02 : f32
    %115 = vector.broadcast %cst_59 : f32 to vector<16x1xf32>
    %116 = arith.divf %114, %115 : vector<16x1xf32>
    %cst_60 = arith.constant 9.99999974E-6 : f32
    %117 = vector.broadcast %cst_60 : f32 to vector<16x1xf32>
    %118 = arith.addf %116, %117 : vector<16x1xf32>
    %119 = math.rsqrt %118 : vector<16x1xf32>
    %120 = vector.broadcast %119 : vector<16x1xf32> to vector<16x256xf32>
    %121 = arith.mulf %111, %120 : vector<16x256xf32>
    %122 = vector.broadcast %103 : vector<1x256xf32> to vector<16x256xf32>
    %123 = arith.mulf %121, %122 : vector<16x256xf32>
    %124 = vector.broadcast %105 : vector<1x256xf32> to vector<16x256xf32>
    %125 = arith.addf %123, %124 : vector<16x256xf32>
    %126 = arith.truncf %125 : vector<16x256xf32> to vector<16x256xbf16>
    %c0_61 = arith.constant 0 : index
    %c0_62 = arith.constant 0 : index
    %c0_63 = arith.constant 0 : index
    %127 = vector.load %arg15[%c0_61, %c0_62, %c0_63] : memref<1x256x256xbf16, #tpu.memory_space<vmem>>, vector<1x256x256xbf16>
    %128 = vector.shape_cast %127 : vector<1x256x256xbf16> to vector<256x256xbf16>
    %cst_64 = arith.constant dense<0.000000e+00> : vector<16x256xf32>
    %129 = tpu.matmul %126, %128, %cst_64 {dimension_numbers = #tpu.dot_dimension_numbers<[1], [0], [0], [1], [0, 0, 1, 1], [], []>} : vector<16x256xbf16>, vector<256x256xbf16>, vector<16x256xf32> -> vector<16x256xf32>
    %c0_65 = arith.constant 0 : index
    %c0_66 = arith.constant 0 : index
    %c0_67 = arith.constant 0 : index
    %130 = vector.load %arg16[%c0_65, %c0_66, %c0_67] : memref<1x1x256xf32, #tpu.memory_space<vmem>>, vector<1x1x256xf32>
    %131 = vector.shape_cast %130 : vector<1x1x256xf32> to vector<1x256xf32>
    %132 = vector.broadcast %131 : vector<1x256xf32> to vector<16x256xf32>
    %133 = arith.addf %129, %132 : vector<16x256xf32>
    %cst_68 = arith.constant 0.000000e+00 : f32
    %134 = vector.broadcast %cst_68 : f32 to vector<16x256xf32>
    %135 = arith.maximumf %133, %134 : vector<16x256xf32>
    %136 = arith.truncf %135 : vector<16x256xf32> to vector<16x256xbf16>
    %c0_69 = arith.constant 0 : index
    %c0_70 = arith.constant 0 : index
    %c0_71 = arith.constant 0 : index
    %137 = vector.load %arg17[%c0_69, %c0_70, %c0_71] : memref<1x256x256xbf16, #tpu.memory_space<vmem>>, vector<1x256x256xbf16>
    %138 = vector.shape_cast %137 : vector<1x256x256xbf16> to vector<256x256xbf16>
    %cst_72 = arith.constant dense<0.000000e+00> : vector<16x256xf32>
    %139 = tpu.matmul %136, %138, %cst_72 {dimension_numbers = #tpu.dot_dimension_numbers<[1], [0], [0], [1], [0, 0, 1, 1], [], []>} : vector<16x256xbf16>, vector<256x256xbf16>, vector<16x256xf32> -> vector<16x256xf32>
    %c0_73 = arith.constant 0 : index
    %c0_74 = arith.constant 0 : index
    %c0_75 = arith.constant 0 : index
    %140 = vector.load %arg18[%c0_73, %c0_74, %c0_75] : memref<1x1x256xf32, #tpu.memory_space<vmem>>, vector<1x1x256xf32>
    %141 = vector.shape_cast %140 : vector<1x1x256xf32> to vector<1x256xf32>
    %142 = vector.broadcast %141 : vector<1x256xf32> to vector<16x256xf32>
    %143 = arith.addf %139, %142 : vector<16x256xf32>
    %144 = arith.addf %101, %143 : vector<16x256xf32>
    %c0_76 = arith.constant 0 : index
    %c0_77 = arith.constant 0 : index
    %145 = vector.load %arg20[%c0_76, %c0_77] : memref<16x256xf32, #tpu.memory_space<vmem>>, vector<16x256xf32>
    tpu.vector_store %arg20[%c0_76, %c0_77], %144 {strides = array<i32>} : memref<16x256xf32, #tpu.memory_space<vmem>>, vector<16x256xf32>,
    %c1_i32 = arith.constant 1 : i32
    %146 = arith.cmpi eq, %arg1, %c1_i32 : i32
    %147 = arith.extui %146 : i1 to i32
    %c0_i32_78 = arith.constant 0 : i32
    %148 = arith.cmpi ne, %147, %c0_i32_78 : i32
    scf.if %148 {
      %c0_79 = arith.constant 0 : index
      %c0_80 = arith.constant 0 : index
      %c0_81 = arith.constant 0 : index
      %149 = vector.load %arg19[%c0_79, %c0_80, %c0_81] : memref<1x16x256xf32, #tpu.memory_space<vmem>>, vector<1x16x256xf32>
      %150 = vector.shape_cast %149 : vector<1x16x256xf32> to vector<16x256xf32>
      %151 = vector.shape_cast %144 : vector<16x256xf32> to vector<1x16x256xf32>
      tpu.vector_store %arg19[%c0_79, %c0_80, %c0_81], %151 {strides = array<i32>} : memref<1x16x256xf32, #tpu.memory_space<vmem>>, vector<1x16x256xf32>,
    } else {
    }
    return
  }
  func.func @transform_0(%arg0: i32, %arg1: i32) -> (i32, i32, i32) {
    %c0_i32 = arith.constant 0 : i32
    %c0_i32_0 = arith.constant 0 : i32
    %c0_i32_1 = arith.constant 0 : i32
    return %arg0, %c0_i32, %c0_i32_0 : i32, i32, i32
  }
  func.func @transform_1(%arg0: i32, %arg1: i32) -> (i32, i32, i32) {
    %c0_i32 = arith.constant 0 : i32
    %c0_i32_0 = arith.constant 0 : i32
    %c0_i32_1 = arith.constant 0 : i32
    return %arg1, %c0_i32, %c0_i32_0 : i32, i32, i32
  }
  func.func @transform_2(%arg0: i32, %arg1: i32) -> (i32, i32, i32) {
    %c0_i32 = arith.constant 0 : i32
    %c0_i32_0 = arith.constant 0 : i32
    %c0_i32_1 = arith.constant 0 : i32
    return %arg1, %c0_i32, %c0_i32_0 : i32, i32, i32
  }
  func.func @transform_3(%arg0: i32, %arg1: i32) -> (i32, i32, i32) {
    %c0_i32 = arith.constant 0 : i32
    %c0_i32_0 = arith.constant 0 : i32
    %c0_i32_1 = arith.constant 0 : i32
    return %arg1, %c0_i32, %c0_i32_0 : i32, i32, i32
  }
  func.func @transform_4(%arg0: i32, %arg1: i32) -> (i32, i32, i32) {
    %c0_i32 = arith.constant 0 : i32
    %c0_i32_0 = arith.constant 0 : i32
    %c0_i32_1 = arith.constant 0 : i32
    return %arg1, %c0_i32, %c0_i32_0 : i32, i32, i32
  }
  func.func @transform_5(%arg0: i32, %arg1: i32) -> (i32, i32, i32) {
    %c0_i32 = arith.constant 0 : i32
    %c0_i32_0 = arith.constant 0 : i32
    %c0_i32_1 = arith.constant 0 : i32
    return %arg1, %c0_i32, %c0_i32_0 : i32, i32, i32
  }
  func.func @transform_6(%arg0: i32, %arg1: i32) -> (i32, i32, i32) {
    %c0_i32 = arith.constant 0 : i32
    %c0_i32_0 = arith.constant 0 : i32
    %c0_i32_1 = arith.constant 0 : i32
    return %arg1, %c0_i32, %c0_i32_0 : i32, i32, i32
  }
  func.func @transform_7(%arg0: i32, %arg1: i32) -> (i32, i32, i32) {
    %c0_i32 = arith.constant 0 : i32
    %c0_i32_0 = arith.constant 0 : i32
    %c0_i32_1 = arith.constant 0 : i32
    return %arg1, %c0_i32, %c0_i32_0 : i32, i32, i32
  }
  func.func @transform_8(%arg0: i32, %arg1: i32) -> (i32, i32, i32) {
    %c0_i32 = arith.constant 0 : i32
    %c0_i32_0 = arith.constant 0 : i32
    %c0_i32_1 = arith.constant 0 : i32
    return %arg1, %c0_i32, %c0_i32_0 : i32, i32, i32
  }
  func.func @transform_9(%arg0: i32, %arg1: i32) -> (i32, i32, i32) {
    %c0_i32 = arith.constant 0 : i32
    %c0_i32_0 = arith.constant 0 : i32
    %c0_i32_1 = arith.constant 0 : i32
    return %arg1, %c0_i32, %c0_i32_0 : i32, i32, i32
  }
  func.func @transform_10(%arg0: i32, %arg1: i32) -> (i32, i32, i32) {
    %c0_i32 = arith.constant 0 : i32
    %c0_i32_0 = arith.constant 0 : i32
    %c0_i32_1 = arith.constant 0 : i32
    return %arg1, %c0_i32, %c0_i32_0 : i32, i32, i32
  }
  func.func @transform_11(%arg0: i32, %arg1: i32) -> (i32, i32, i32) {
    %c0_i32 = arith.constant 0 : i32
    %c0_i32_0 = arith.constant 0 : i32
    %c0_i32_1 = arith.constant 0 : i32
    return %arg1, %c0_i32, %c0_i32_0 : i32, i32, i32
  }
  func.func @transform_12(%arg0: i32, %arg1: i32) -> (i32, i32, i32) {
    %c0_i32 = arith.constant 0 : i32
    %c0_i32_0 = arith.constant 0 : i32
    %c0_i32_1 = arith.constant 0 : i32
    return %arg1, %c0_i32, %c0_i32_0 : i32, i32, i32
  }
  func.func @transform_13(%arg0: i32, %arg1: i32) -> (i32, i32, i32) {
    %c0_i32 = arith.constant 0 : i32
    %c0_i32_0 = arith.constant 0 : i32
    %c0_i32_1 = arith.constant 0 : i32
    return %arg1, %c0_i32, %c0_i32_0 : i32, i32, i32
  }
  func.func @transform_14(%arg0: i32, %arg1: i32) -> (i32, i32, i32) {
    %c0_i32 = arith.constant 0 : i32
    %c0_i32_0 = arith.constant 0 : i32
    %c0_i32_1 = arith.constant 0 : i32
    return %arg1, %c0_i32, %c0_i32_0 : i32, i32, i32
  }
  func.func @transform_15(%arg0: i32, %arg1: i32) -> (i32, i32, i32) {
    %c0_i32 = arith.constant 0 : i32
    %c0_i32_0 = arith.constant 0 : i32
    %c0_i32_1 = arith.constant 0 : i32
    return %arg1, %c0_i32, %c0_i32_0 : i32, i32, i32
  }
  func.func @transform_16(%arg0: i32, %arg1: i32) -> (i32, i32, i32) {
    %c0_i32 = arith.constant 0 : i32
    %c0_i32_0 = arith.constant 0 : i32
    %c0_i32_1 = arith.constant 0 : i32
    return %arg1, %c0_i32, %c0_i32_0 : i32, i32, i32
  }
  func.func @transform_17(%arg0: i32, %arg1: i32) -> (i32, i32, i32) {
    %c0_i32 = arith.constant 0 : i32
    %c0_i32_0 = arith.constant 0 : i32
    %c0_i32_1 = arith.constant 0 : i32
    return %arg0, %c0_i32, %c0_i32_0 : i32, i32, i32
  }
}

</mosaic_0001>

<bundles_post_ra>
// kernel: diffusion_forward.5
= control target key start
LH: loop header
LB: loop body
LE: loop exit
PB: predicated region body
PF: predicated region fallthrough
CT: control target
= control target key end

     0   :  { %s1213_s30 = smov 0   ;;  %s1410_s0 = inlined_call_operand.vmem [shape: f32[2,16,256], index: 0, kind: input, shape index: {}]   ;;  %s1411_s1 = inlined_call_operand.vmem [shape: f32[1,256], index: 1, kind: input, shape index: {}]   ;;  %s1412_s2 = inlined_call_operand.vmem [shape: f32[1,256], index: 2, kind: input, shape index: {}]   ;;  %s1413_s3 = inlined_call_operand.vmem [shape: bf16[256,256], index: 3, kind: input, shape index: {}]   ;;  %s1414_s4 = inlined_call_operand.vmem [shape: f32[1,256], index: 4, kind: input, shape index: {}]   ;;  %s1415_s5 = inlined_call_operand.vmem [shape: f32[1,256], index: 5, kind: input, shape index: {}]   ;;  %s1416_s6 = inlined_call_operand.vmem [shape: f32[1,256], index: 6, kind: input, shape index: {}]   ;;  %s1417_s7 = inlined_call_operand.vmem [shape: bf16[256,128], index: 7, kind: input, shape index: {}]   ;;  %s1418_s8 = inlined_call_operand.vmem [shape: f32[1,128], index: 8, kind: input, shape index: {}]   ;;  %s1419_s9 = inlined_call_operand.vmem [shape: f32[2,16,128], index: 9, kind: output, shape index: {}]  }
   0x1 LB: > { %s975_s10 = sadd.s32 4294967295, %s1161_s30   ;;  %p979_p0 = scmp.ge.s32.totalorder %s1161_s30, 1  ;;  %s1161_s30 = sphi %s1213_s30, %s19_s30  }
   0x2   : > { %p287_p1 = scmp.lt.s32.totalorder %s1161_s30, 3 }
   0x4   : > { %p288_p2 = pnand %p979_p0, %p287_p1 }
   0x5   : > { %p323_p3 = scmp.lt.s32.totalorder (!%p288_p2), %s975_s10, 1 }
   0x6   : > { %291 = sbr.rel (%p288_p2) target bundleno = 1086 (0x43e), region = 56 }
   0xb   : > { %s1421_s10 = smov (!%p323_p3, %s975_s10), 1  ;;  %v1067_v6 = vld [vmem:[%s1413_s3 + $0x74] ss:$8 sps:$4 sm:$0xff]   ;;  %v1069_v7 = vld [vmem:[%s1413_s3 + $0x70] ss:$8 sps:$4 sm:$0xff]   ;;  %v374_v58 = vlaneseq }
   0xc   : > { %s1035_s11 = sshll.u32 %s1421_s10, 5  ;;  %v1070_v8 = vld [vmem:[%s1413_s3 + $0x64] ss:$8 sps:$4 sm:$0xff]   ;;  %609 = vmatprep.subr.bf16.mxu0 %v1067_v6  ;;  %v1072_v9 = vld [vmem:[%s1413_s3 + $0x60] ss:$8 sps:$4 sm:$0xff]   ;;  %s1036_s26 = sshll.u32 %s1421_s10, 4 }
   0xd   : > { %s327_s14 = scalar_lea.vmem %s1410_s0, %s1035_s11  ;;  %610 = vmatpush1.bf16.msra.mxu0 %v1069_v7  ;;  %v1073_v10 = vld [vmem:[%s1413_s3 + $0x54] ss:$8 sps:$4 sm:$0xff]   ;;  %v1075_v11 = vld [vmem:[%s1413_s3 + $0x50] ss:$8 sps:$4 sm:$0xff]   ;;  %v1076_v12 = vld [vmem:[%s1413_s3 + $0x44] ss:$8 sps:$4 sm:$0xff]   ;;  %s332_s12 = scalar_lea.vmem %s1419_s9, %s1036_s26 }
   0xe   : > { %v334_v0 = vld [vmem:[%s327_s14] sm:$0xff]  ;;  %v335_v1 = vld [vmem:[%s327_s14 + $0x8] sm:$0xff]  ;;  %v336_v2 = vld [vmem:[%s327_s14 + $0x10] sm:$0xff]  ;;  %611 = vmatprep.subr.bf16.mxu0 %v1070_v8  ;;  %v375_v59 = vshrl.u32 %v374_v58, 7 }
   0xf   : > { %v340_v3 = vadd.f32 %v335_v1, %v334_v0  ;;  %v337_v4 = vld [vmem:[%s327_s14 + $0x18] sm:$0xff]  ;;  %v1078_v13 = vld [vmem:[%s1413_s3 + $0x40] ss:$8 sps:$4 sm:$0xff]   ;;  %v1082_v16 = vld [vmem:[%s1413_s3 + $0x24] ss:$8 sps:$4 sm:$0xff]  }
  0x10   : > { %v343_v5 = vadd.f32 %v337_v4, %v336_v2  ;;  %v1079_v14 = vld [vmem:[%s1413_s3 + $0x34] ss:$8 sps:$4 sm:$0xff]   ;;  %v1081_v15 = vld [vmem:[%s1413_s3 + $0x30] ss:$8 sps:$4 sm:$0xff]   ;;  %v1084_v17 = vld [vmem:[%s1413_s3 + $0x20] ss:$8 sps:$4 sm:$0xff]  }
  0x11   : > { %341 = vadd.xlane.f32.xlu0 %v340_v3  ;;  %612 = vmatpush1.bf16.msra.mxu0 %v1072_v9  ;;  %v1085_v18 = vld [vmem:[%s1413_s3 + $0x14] ss:$8 sps:$4 sm:$0xff]   ;;  %v1087_v19 = vld [vmem:[%s1413_s3 + $0x10] ss:$8 sps:$4 sm:$0xff]   ;;  %v1088_v20 = vld [vmem:[%s1413_s3 + $0x4] ss:$8 sps:$4 sm:$0xff]  }
  0x12   : > { %613 = vmatprep.subr.bf16.mxu0 %v1073_v10  ;;  %v1090_v21 = vld [vmem:[%s1413_s3] ss:$8 sps:$4 sm:$0xff]   ;;  %v1091_v22 = vld [vmem:[%s1413_s3 + $0xf4] ss:$8 sps:$4 sm:$0xff]   ;;  %v1093_v37 = vld [vmem:[%s1413_s3 + $0xf0] ss:$8 sps:$4 sm:$0xff]  }
  0x13   : > { %v1094_v38 = vld [vmem:[%s1413_s3 + $0xe4] ss:$8 sps:$4 sm:$0xff]   ;;  %v1096_v39 = vld [vmem:[%s1413_s3 + $0xe0] ss:$8 sps:$4 sm:$0xff]   ;;  %v1097_v40 = vld [vmem:[%s1413_s3 + $0xd4] ss:$8 sps:$4 sm:$0xff]  }
  0x14   : > { %v1099_v41 = vld [vmem:[%s1413_s3 + $0xd0] ss:$8 sps:$4 sm:$0xff]   ;;  %v1100_v42 = vld [vmem:[%s1413_s3 + $0xc4] ss:$8 sps:$4 sm:$0xff]   ;;  %v1102_v43 = vld [vmem:[%s1413_s3 + $0xc0] ss:$8 sps:$4 sm:$0xff]  }
  0x15   : > { %344 = vadd.xlane.f32.xlu0 %v343_v5  ;;  %614 = vmatpush1.bf16.msra.mxu0 %v1075_v11  ;;  %v1103_v44 = vld [vmem:[%s1413_s3 + $0xb4] ss:$8 sps:$4 sm:$0xff]   ;;  %v1105_v45 = vld [vmem:[%s1413_s3 + $0xb0] ss:$8 sps:$4 sm:$0xff]   ;;  %v1106_v46 = vld [vmem:[%s1413_s3 + $0xa4] ss:$8 sps:$4 sm:$0xff]  }
  0x16   : > { %615 = vmatprep.subr.bf16.mxu0 %v1076_v12  ;;  %v1108_v47 = vld [vmem:[%s1413_s3 + $0xa0] ss:$8 sps:$4 sm:$0xff]   ;;  %v1109_v48 = vld [vmem:[%s1413_s3 + $0x94] ss:$8 sps:$4 sm:$0xff]   ;;  %v1111_v49 = vld [vmem:[%s1413_s3 + $0x90] ss:$8 sps:$4 sm:$0xff]  }
  0x17   : > { %v1112_v50 = vld [vmem:[%s1413_s3 + $0x84] ss:$8 sps:$4 sm:$0xff]   ;;  %v1114_v51 = vld [vmem:[%s1413_s3 + $0x80] ss:$8 sps:$4 sm:$0xff]   ;;  %v1323_v60 = vsub.s32 0, %v375_v59  ;;  %v1325_v61 = vsub.s32 1, %v375_v59 }
  0x18   : > { %v338_v62 = vld [vmem:[%s1411_s1] sm:$0x3]  ;;  %v1126_v58 = vld [vmem:[%s1417_s7 + $0x10] sm:$0xff]   ;;  %v1127_v59 = vld [vmem:[%s1417_s7 + $0x48] sm:$0xff]  }
  0x19   : > { %616 = vmatpush1.bf16.msra.mxu0 %v1078_v13  ;;  %v381_v3 = vrot.slane %v338_v62, %v1325_v61 }
  0x1a   : > { %617 = vmatprep.subr.bf16.mxu0 %v1079_v14 }
  0x1d   : > { %618 = vmatpush1.bf16.msra.mxu0 %v1081_v15 }
  0x1e   : > { %619 = vmatprep.subr.bf16.mxu0 %v1082_v16 }
  0x21   : > { %620 = vmatpush1.bf16.msra.mxu0 %v1084_v17 }
  0x22   : > { %621 = vmatprep.subr.bf16.mxu0 %v1085_v18 }
  0x25   : > { %622 = vmatpush1.bf16.msra.mxu0 %v1087_v19 }
  0x26   : > { %623 = vmatprep.subr.bf16.mxu0 %v1088_v20  ;;  %v437_v20 = vld [vmem:[%s1414_s4] sm:$0x3] }
  0x29   : > { %624 = vmatpush1.bf16.msra.mxu0 %v1090_v21  ;;  %v442_v21 = vrot.slane %v437_v20, %v1323_v60 }
  0x2a   : > { %625 = vmatprep.subr.bf16.mxu0 %v1091_v22  ;;  %v446_v22 = vrot.slane %v437_v20, %v1325_v61 }
  0x2d   : > { %626 = vmatpush2.bf16.msra.mxu0 %v1093_v37 }
  0x2e   : > { %627 = vmatprep.subr.bf16.mxu0 %v1094_v38 }
  0x31   : > { %628 = vmatpush2.bf16.msra.mxu0 %v1096_v39 }
  0x32   : > { %629 = vmatprep.subr.bf16.mxu0 %v1097_v40 }
  0x35   : > { %630 = vmatpush2.bf16.msra.mxu0 %v1099_v41 }
  0x36   : > { %631 = vmatprep.subr.bf16.mxu0 %v1100_v42 }
  0x39   : > { %632 = vmatpush2.bf16.msra.mxu0 %v1102_v43 }
  0x3a   : > { %633 = vmatprep.subr.bf16.mxu0 %v1103_v44 }
  0x3d   : > { %634 = vmatpush2.bf16.msra.mxu0 %v1105_v45 }
  0x3e   : > { %635 = vmatprep.subr.bf16.mxu0 %v1106_v46 }
  0x41   : > { %636 = vmatpush2.bf16.msra.mxu0 %v1108_v47  ;;  %v1115_v47 = vld [vmem:[%s1417_s7 + $0x78] sm:$0xff]  }
  0x42   : > { %637 = vmatprep.subr.bf16.mxu0 %v1109_v48  ;;  %v1116_v48 = vld [vmem:[%s1417_s7 + $0x38] sm:$0xff]   ;;  %1037 = vmatprep.subr.bf16.mxu1 %v1115_v47 }
  0x43   : > { %1038 = vmatpush3.bf16.msra.mxu1 %v1116_v48 }
  0x45   : > { %638 = vmatpush2.bf16.msra.mxu0 %v1111_v49  ;;  %v1117_v49 = vld [vmem:[%s1417_s7 + $0x70] sm:$0xff]  }
  0x46   : > { %639 = vmatprep.subr.bf16.mxu0 %v1112_v50  ;;  %v1118_v50 = vld [vmem:[%s1417_s7 + $0x30] sm:$0xff]   ;;  %1039 = vmatprep.subr.bf16.mxu1 %v1117_v49 }
  0x47   : > { %1040 = vmatpush3.bf16.msra.mxu1 %v1118_v50 }
  0x49   : > { %640 = vmatpush2.bf16.msra.mxu0 %v1114_v51  ;;  %v1119_v51 = vld [vmem:[%s1417_s7 + $0x68] sm:$0xff]  }
  0x4a   : > { %1041 = vmatprep.subr.bf16.mxu1 %v1119_v51 }
  0x9a   : > { %v342_v23 = vpop.xlane.xlu0 %341 }
  0x9b   : > { %v347_v24 = vmul.f32 0.00390625, %v342_v23 }
  0x9d   : > { %v349_v25 = vsub.f32 %v334_v0, %v347_v24  ;;  %v350_v26 = vsub.f32 %v335_v1, %v347_v24  ;;  %v339_v0 = vld [vmem:[%s1412_s2] sm:$0x3] }
  0x9e   : > { %v345_v27 = vpop.xlane.xlu0 %344  ;;  %v392_v6 = vrot.slane %v339_v0, %v1323_v60  ;;  %v396_v7 = vrot.slane %v339_v0, %v1325_v61  ;;  %v1130_v0 = vld [vmem:[%s1417_s7] sm:$0xff]  }
  0x9f   : > { %v348_v28 = vmul.f32 0.00390625, %v345_v27  ;;  %v353_v29 = vmul.f32 %v349_v25, %v349_v25  ;;  %v354_v30 = vmul.f32 %v350_v26, %v350_v26 }
  0xa1   : > { %v351_v31 = vsub.f32 %v336_v2, %v348_v28  ;;  %v352_v32 = vsub.f32 %v337_v4, %v348_v28  ;;  %v357_v33 = vadd.f32 %v354_v30, %v353_v29  ;;  %v377_v2 = vrot.slane %v338_v62, %v1323_v60  ;;  %v1128_v62 = vld [vmem:[%s1417_s7 + $0x8] sm:$0xff]  }
  0xa3   : > { %358 = vadd.xlane.f32.xlu1 %v357_v33  ;;  %v355_v34 = vmul.f32 %v351_v31, %v351_v31  ;;  %v356_v35 = vmul.f32 %v352_v32, %v352_v32 }
  0xa5   : > { %v360_v36 = vadd.f32 %v356_v35, %v355_v34 }
  0xa7   : > { %361 = vadd.xlane.f32.xlu1 %v360_v36 }
 0x12c   : > { %v359_v52 = vpop.xlane.xlu1 %358 }
 0x12d   : > { %v363_v53 = vmul.f32 0.00390625, %v359_v52  ;;  %v1120_v52 = vld [vmem:[%s1417_s7 + $0x28] sm:$0xff]  }
 0x12e   : > { %1042 = vmatpush3.bf16.msra.mxu1 %v1120_v52  ;;  %v1016_v52 = vld [vmem:[%s1418_s8] ss:$0 sm:$0xff] }
 0x12f   : > { %v365_v54 = vadd.f32 1e-05, %v363_v53  ;;  %v1121_v53 = vld [vmem:[%s1417_s7 + $0x60] sm:$0xff]  }
 0x130   : > { %v362_v55 = vpop.xlane.xlu1 %361  ;;  %1043 = vmatprep.subr.bf16.mxu1 %v1121_v53 }
 0x131   : > { %1131 = vrsqrt.f32 %v365_v54  ;;  %v364_v56 = vmul.f32 0.00390625, %v362_v55  ;;  %v1122_v54 = vld [vmem:[%s1417_s7 + $0x20] sm:$0xff]   ;;  %v1123_v55 = vld [vmem:[%s1417_s7 + $0x58] sm:$0xff]  }
 0x132   : > { %1044 = vmatpush3.bf16.msra.mxu1 %v1122_v54 }
 0x133   : > { %v366_v57 = vadd.f32 1e-05, %v364_v56  ;;  %v1124_v56 = vld [vmem:[%s1417_s7 + $0x18] sm:$0xff]   ;;  %1045 = vmatprep.subr.bf16.mxu1 %v1123_v55 }
 0x135   : > { %1133 = vrsqrt.f32 %v366_v57  ;;  %v1125_v57 = vld [vmem:[%s1417_s7 + $0x50] sm:$0xff]  }
 0x136   : > { %1046 = vmatpush3.bf16.msra.mxu1 %v1124_v56 }
 0x137   : > { %1047 = vmatprep.subr.bf16.mxu1 %v1125_v57 }
 0x13a   : > { %1048 = vmatpush3.bf16.msra.mxu1 %v1126_v58 }
 0x13b   : > { %1049 = vmatprep.subr.bf16.mxu1 %v1127_v59 }
 0x13e   : > { %v1132_v63 = vpop.eup %1131  ;;  %1050 = vmatpush3.bf16.msra.mxu1 %v1128_v62 }
 0x13f   : > { %v370_v1 = vmul.f32 %v1132_v63, %v350_v26  ;;  %v369_v4 = vmul.f32 %v1132_v63, %v349_v25  ;;  %v1129_v63 = vld [vmem:[%s1417_s7 + $0x40] sm:$0xff]  }
 0x140   : > { %1051 = vmatprep.subr.bf16.mxu1 %v1129_v63 }
 0x141   : > { %v385_v9 = vmul.f32 %v381_v3, %v370_v1  ;;  %v384_v11 = vmul.f32 %v377_v2, %v369_v4 }
 0x142   : > { %v1134_v5 = vpop.eup %1133  ;;  %1052 = vmatpush3.bf16.msra.mxu1 %v1130_v0 }
 0x143   : > { %v372_v8 = vmul.f32 %v1134_v5, %v352_v32  ;;  %v371_v10 = vmul.f32 %v1134_v5, %v351_v31  ;;  %v400_v14 = vadd.f32 %v396_v7, %v385_v9  ;;  %v399_v16 = vadd.f32 %v392_v6, %v384_v11 }
 0x145   : > { %v387_v12 = vmul.f32 %v381_v3, %v372_v8  ;;  %v386_v13 = vmul.f32 %v377_v2, %v371_v10  ;;  %v653_v8 = vld [vmem:[%s1416_s6] sm:$0x3] }
 0x147   : > { %v402_v15 = vadd.f32 %v396_v7, %v387_v12  ;;  %v401_v17 = vadd.f32 %v392_v6, %v386_v13  ;;  %v652_v7 = vld [vmem:[%s1415_s5] sm:$0x3]  ;;  %v705_v13 = vrot.slane %v653_v8, %v1323_v60 }
 0x148   : > { %v690_v9 = vrot.slane %v652_v7, %v1323_v60  ;;  %v694_v10 = vrot.slane %v652_v7, %v1325_v61 }
 0x149   : > { %v404_v18 = vpack.c.bf16 %v402_v15, %v400_v14  ;;  %v403_v19 = vpack.c.bf16 %v401_v17, %v399_v16  ;;  %v709_v14 = vrot.slane %v653_v8, %v1325_v61 }
 0x14b   : > { %641 = vmatprep.mubr.bf16.mxu0 %v404_v18 }
 0x14c   : > { %642 = vmatmul.mubr.bf16.vlgmr.msra.gmra.mxu0 %v403_v19 }
 0x20c   : > { %v643_v23 = vpop.f32.mrf.mxu0 }
 0x20d   : > { %v644_v25 = vadd.f32 %v643_v23, %v442_v21 }
 0x20e   : > { %v645_v24 = vpop.f32.mrf.mxu0 }
 0x20f   : > { %v646_v26 = vadd.f32 %v645_v24, %v446_v22 }
 0x210   : > { %v647_v27 = vpop.f32.mrf.mxu0 }
 0x211   : > { %v654_v28 = vadd.f32 %v646_v26, %v644_v25  ;;  %v648_v30 = vadd.f32 %v647_v27, %v442_v21 }
 0x212   : > { %v649_v29 = vpop.f32.mrf.mxu0 }
 0x213   : > { %v650_v31 = vadd.f32 %v649_v29, %v446_v22  ;;  %655 = vadd.xlane.f32.xlu0 %v654_v28 }
 0x215   : > { %v657_v32 = vadd.f32 %v650_v31, %v648_v30 }
 0x217   : > { %658 = vadd.xlane.f32.xlu1 %v657_v32 }
 0x29c   : > { %v656_v33 = vpop.xlane.xlu0 %655 }
 0x29d   : > { %v660_v34 = vmul.f32 0.00390625, %v656_v33 }
 0x29f   : > { %v662_v35 = vsub.f32 %v644_v25, %v660_v34  ;;  %v663_v36 = vsub.f32 %v646_v26, %v660_v34 }
 0x2a0   : > { %v659_v37 = vpop.xlane.xlu1 %658 }
 0x2a1   : > { %v661_v38 = vmul.f32 0.00390625, %v659_v37  ;;  %v666_v39 = vmul.f32 %v662_v35, %v662_v35  ;;  %v667_v40 = vmul.f32 %v663_v36, %v663_v36 }
 0x2a3   : > { %v664_v41 = vsub.f32 %v648_v30, %v661_v38  ;;  %v665_v42 = vsub.f32 %v650_v31, %v661_v38  ;;  %v670_v43 = vadd.f32 %v667_v40, %v666_v39 }
 0x2a5   : > { %671 = vadd.xlane.f32.xlu0 %v670_v43  ;;  %v668_v44 = vmul.f32 %v664_v41, %v664_v41  ;;  %v669_v45 = vmul.f32 %v665_v42, %v665_v42 }
 0x2a7   : > { %v673_v46 = vadd.f32 %v669_v45, %v668_v44 }
 0x2a9   : > { %674 = vadd.xlane.f32.xlu1 %v673_v46 }
 0x32e   : > { %v672_v1 = vpop.xlane.xlu0 %671 }
 0x32f   : > { %v676_v2 = vmul.f32 0.00390625, %v672_v1 }
 0x331   : > { %v678_v3 = vadd.f32 1e-05, %v676_v2 }
 0x332   : > { %v675_v4 = vpop.xlane.xlu1 %674 }
 0x333   : > { %1135 = vrsqrt.f32 %v678_v3  ;;  %v677_v5 = vmul.f32 0.00390625, %v675_v4 }
 0x335   : > { %v679_v6 = vadd.f32 1e-05, %v677_v5 }
 0x337   : > { %1137 = vrsqrt.f32 %v679_v6 }
 0x340   : > { %v1136_v11 = vpop.eup %1135 }
 0x341   : > { %v683_v12 = vmul.f32 %v1136_v11, %v663_v36  ;;  %v682_v15 = vmul.f32 %v1136_v11, %v662_v35 }
 0x343   : > { %v698_v16 = vmul.f32 %v694_v10, %v683_v12  ;;  %v697_v17 = vmul.f32 %v690_v9, %v682_v15 }
 0x344   : > { %v1138_v18 = vpop.eup %1137 }
 0x345   : > { %v685_v19 = vmul.f32 %v1138_v18, %v665_v42  ;;  %v713_v20 = vadd.f32 %v709_v14, %v698_v16  ;;  %v684_v21 = vmul.f32 %v1138_v18, %v664_v41  ;;  %v712_v22 = vadd.f32 %v705_v13, %v697_v17 }
 0x347   : > { %v700_v23 = vmul.f32 %v694_v10, %v685_v19  ;;  %v717_v24 = vsub.f32 0.0, %v713_v20  ;;  %v699_v25 = vmul.f32 %v690_v9, %v684_v21  ;;  %v716_v26 = vsub.f32 0.0, %v712_v22 }
 0x349   : > { %v715_v27 = vadd.f32 %v709_v14, %v700_v23  ;;  %v722_v28 = vmul.f32 1.442695, %v717_v24  ;;  %v714_v29 = vadd.f32 %v705_v13, %v699_v25  ;;  %v720_v30 = vmul.f32 1.442695, %v716_v26 }
 0x34b   : > { %v719_v31 = vsub.f32 0.0, %v715_v27  ;;  %1139 = vpow2.f32 %v722_v28  ;;  %v718_v60 = vsub.f32 0.0, %v714_v29 }
 0x34c   : > { %1141 = vpow2.f32 %v720_v30 }
 0x34d   : > { %v726_v61 = vmul.f32 1.442695, %v719_v31  ;;  %v724_v32 = vmul.f32 1.442695, %v718_v60 }
 0x34f   : > { %1143 = vpow2.f32 %v726_v61 }
 0x350   : > { %1145 = vpow2.f32 %v724_v32 }
 0x358   : > { %v1140_v33 = vpop.eup %1139 }
 0x359   : > { %v1142_v34 = vpop.eup %1141  ;;  %v729_v35 = vadd.f32 1.0, %v1140_v33 }
 0x35a   : > { %v728_v36 = vadd.f32 1.0, %v1142_v34 }
 0x35b   : > { %1147 = vrcp.f32 %v729_v35 }
 0x35c   : > { %v1144_v37 = vpop.eup %1143  ;;  %1149 = vrcp.f32 %v728_v36 }
 0x35d   : > { %v1146_v38 = vpop.eup %1145  ;;  %v731_v39 = vadd.f32 1.0, %v1144_v37 }
 0x35e   : > { %v730_v40 = vadd.f32 1.0, %v1146_v38 }
 0x35f   : > { %1151 = vrcp.f32 %v731_v39 }
 0x360   : > { %1153 = vrcp.f32 %v730_v40 }
 0x368   : > { %v1148_v41 = vpop.eup %1147 }
 0x369   : > { %v1150_v42 = vpop.eup %1149  ;;  %v737_v45 = vmul.f32 %v1148_v41, %v713_v20 }
 0x36a   : > { %v736_v47 = vmul.f32 %v1150_v42, %v712_v22 }
 0x36c   : > { %v1152_v43 = vpop.eup %1151 }
 0x36d   : > { %v1154_v44 = vpop.eup %1153  ;;  %v739_v46 = vmul.f32 %v1152_v43, %v715_v27 }
 0x36e   : > { %v738_v48 = vmul.f32 %v1154_v44, %v714_v29 }
 0x36f   : > { %v741_v49 = vpack.c.bf16 %v739_v46, %v737_v45 }
 0x370   : > { %v740_v50 = vpack.c.bf16 %v738_v48, %v736_v47 }
 0x371   : > { %909 = vmatprep.mubr.bf16.mxu1 %v741_v49 }
 0x372   : > { %910 = vmatmul.mubr.bf16.vlgmr.msra.gmra.mxu1 %v740_v50 }
 0x432   : > { %v1053_v51 = vpop.f32.mrf.mxu1 }
 0x434   : > { %v1054_v53 = vpop.f32.mrf.mxu1 }
 0x435   : > { %v1055_v54 = vadd.f32 %v1054_v53, %v1053_v51 }
 0x436   : > { %v1056_v55 = vpop.f32.mrf.mxu1 }
 0x437   : > { %v912_v56 = vadd.f32 %v1055_v54, %v1016_v52 }
 0x438   : > { %v1057_v57 = vpop.f32.mrf.mxu1 }
 0x439   : > { %918 = vst [vmem:[%s332_s12] sm:$0xff] %v912_v56  ;;  %v1058_v58 = vadd.f32 %v1057_v57, %v1056_v55 }
 0x43b   : > { %v915_v59 = vadd.f32 %v1058_v58, %v1016_v52 }
 0x43d   : > { %919 = vst [vmem:[%s332_s12 + $0x8] sm:$0xff] %v915_v59 }
 0x43e PF: > { %s19_s30 = sadd.s32 1, %s1161_s30  }
 0x43f   : > { %p16_p4 = scmp.ge.s32.totalorder %s19_s30, 4  }
 0x441   :  { %18 = sbr.rel (!%p16_p4) target bundleno = 1 (0x1), region = 86 }

// kernel: diffusion_forward.3
= control target key start
LH: loop header
LB: loop body
LE: loop exit
PB: predicated region body
PF: predicated region fallthrough
CT: control target
= control target key end

     0   :  { %s2258_s0 = inlined_call_operand.vmem [shape: f32[2,256], index: 0, kind: input, shape index: {}]   ;;  %s2259_s1 = inlined_call_operand.vmem [shape: f32[2,16,32], index: 1, kind: input, shape index: {}]   ;;  %s2260_s2 = inlined_call_operand.vmem [shape: f32[2,16,32], index: 2, kind: input, shape index: {}]   ;;  %s2261_s3 = inlined_call_operand.vmem [shape: f32[2,16,1], index: 3, kind: input, shape index: {}]   ;;  %s2262_s4 = inlined_call_operand.vmem [shape: f32[2,16,1], index: 4, kind: input, shape index: {}]   ;;  %s2263_s5 = inlined_call_operand.vmem [shape: bf16[256,256], index: 5, kind: input, shape index: {}]   ;;  %s2264_s6 = inlined_call_operand.vmem [shape: f32[1,256], index: 6, kind: input, shape index: {}]   ;;  %s2265_s7 = inlined_call_operand.vmem [shape: f32[1,256], index: 7, kind: input, shape index: {}]   ;;  %s2266_s8 = inlined_call_operand.vmem [shape: f32[1,256], index: 8, kind: input, shape index: {}]   ;;  %s2267_s9 = inlined_call_operand.hbm [shape: bf16[256,256], index: 9, kind: input, shape index: {}]   ;;  %s2268_s10 = inlined_call_operand.vmem [shape: f32[1,256], index: 10, kind: input, shape index: {}]   ;;  %s2269_s11 = inlined_call_operand.hbm [shape: bf16[32,256], index: 11, kind: input, shape index: {}]   ;;  %s2270_s12 = inlined_call_operand.vmem [shape: f32[1,256], index: 12, kind: input, shape index: {}]   ;;  %s2271_s13 = inlined_call_operand.hbm [shape: f32[1,256], index: 13, kind: input, shape index: {}]   ;;  %s2272_s14 = inlined_call_operand.hbm [shape: f32[1,256], index: 14, kind: input, shape index: {}]   ;;  %s2273_s15 = inlined_call_operand.hbm [shape: bf16[256,256], index: 15, kind: input, shape index: {}]   ;;  %s2274_s16 = inlined_call_operand.hbm [shape: f32[1,256], index: 16, kind: input, shape index: {}]   ;;  %s2275_s17 = inlined_call_operand.vmem [shape: f32[2,16,256], index: 17, kind: output, shape index: {}]  }
   0x1   :  { %2277 = sst [smem:[#allocation16_spill]] %s2258_s0 }
   0x2   :  { %2278 = sst [smem:[#allocation17_spill]] %s2259_s1 }
   0x3   :  { %22 = vsyncpa [#allocation3], 0 }
   0x4   :  { %23 = vsyncpa [#allocation5], 0 }
   0x5   :  { %24 = vsyncpa [#allocation8], 0 }
   0x6   :  { %25 = vsyncpa [#allocation11], 0  ;;  %s1792_s24 = smov [#allocation4]   ;;  %s1793_s26 = smov [#allocation7]  }
   0x7   :  { %s63_s25 = sshll.u32 %s1792_s24, 4  ;;  %s88_s27 = sshll.u32 %s1793_s26, 4  ;;  %s64_s25 = int_to_ptr.vmem [resolvable:$true] %s63_s25  ;;  %s89_s27 = int_to_ptr.vmem [resolvable:$true] %s88_s27 }
   0x8   :  { %s1672_s28 = scalar_lea.vmem %s64_s25, 512  ;;  %p1677_p1 = scmp.lt.s32.totalorder %s64_s25, %s64_s25 }
   0x9   :  { %p1673_p0 = scmp.ne.s32.totalorder %s64_s25, %s1672_s28  ;;  %p1678_p2 = scmp.lt.s32.totalorder %s1672_s28, %s1672_s28 }
   0xb   :  { %p1679_p3 = por %p1678_p2, %p1677_p1 }
   0xd   :  { %p1680_p4 = pnand %p1679_p3, %p1673_p0 }
   0xf   :  { %1683 = shalt.err (!%p1680_p4)
}
  0x10   :  { %s1794_s29 = smov 128   ;;  %s1795_s0 = smov 8  }
  0x11   :  { %69 = dma.hbm_to_vmem [thread:$0]  %s2269_s11, 512, %s64_s25, [#allocation5], %s1794_s29, %s1794_s29, %s1795_s0  }
  0x12   :  { %s1692_s19 = scalar_lea.vmem %s89_s27, 32  ;;  %p1697_p6 = scmp.lt.s32.totalorder %s89_s27, %s89_s27 }
  0x13   :  { %p1693_p5 = scmp.ne.s32.totalorder %s89_s27, %s1692_s19  ;;  %p1698_p7 = scmp.lt.s32.totalorder %s1692_s19, %s1692_s19 }
  0x15   :  { %p1699_p8 = por %p1698_p7, %p1697_p6 }
  0x17   :  { %p1700_p9 = pnand %p1699_p8, %p1693_p5 }
  0x19   :  { %1703 = shalt.err (!%p1700_p9)
}
  0x1a   :  { %91 = dma.hbm_to_vmem [thread:$0]  %s2272_s14, 32, %s89_s27, [#allocation8]  }
  0x1b   :  { %s1796_s21 = smov [#allocation2]   ;;  %s1797_s23 = smov [#allocation6]  }
  0x1c   :  { %s49_s22 = sshll.u32 %s1796_s21, 4  ;;  %s78_s24 = sshll.u32 %s1797_s23, 4  ;;  %s50_s22 = int_to_ptr.vmem [resolvable:$true] %s49_s22  ;;  %s79_s24 = int_to_ptr.vmem [resolvable:$true] %s78_s24 }
  0x1d   :  { %s1712_s26 = scalar_lea.vmem %s50_s22, 4096  ;;  %p1717_p11 = scmp.lt.s32.totalorder %s50_s22, %s50_s22 }
  0x1e   :  { %p1713_p10 = scmp.ne.s32.totalorder %s50_s22, %s1712_s26  ;;  %p1718_p12 = scmp.lt.s32.totalorder %s1712_s26, %s1712_s26 }
  0x20   :  { %p1719_p13 = por %p1718_p12, %p1717_p11 }
  0x22   :  { %p1720_p0 = pnand %p1719_p13, %p1713_p10 }
  0x24   :  { %1723 = shalt.err (!%p1720_p0)
}
  0x25   :  { %55 = dma.hbm_to_vmem [thread:$0]  %s2267_s9, 4096, %s50_s22, [#allocation3], %s1794_s29, %s1794_s29, %s1795_s0  }
  0x26   :  { %s1732_s14 = scalar_lea.vmem %s79_s24, 32  ;;  %p1737_p2 = scmp.lt.s32.totalorder %s79_s24, %s79_s24 }
  0x27   :  { %p1733_p1 = scmp.ne.s32.totalorder %s79_s24, %s1732_s14  ;;  %p1738_p3 = scmp.lt.s32.totalorder %s1732_s14, %s1732_s14 }
  0x29   :  { %p1739_p4 = por %p1738_p3, %p1737_p2 }
  0x2b   :  { %p1740_p5 = pnand %p1739_p4, %p1733_p1 }
  0x2d   :  { %1743 = shalt.err (!%p1740_p5)
}
  0x2e   :  { %81 = dma.hbm_to_vmem [thread:$0]  %s2271_s13, 32, %s79_s24, [#allocation5]  }
  0x2f   :  { %s1798_s30 = smov [#allocation9]   ;;  %s1799_s19 = smov [#allocation10]  }
  0x30   :  { %s97_s18 = sshll.u32 %s1798_s30, 4  ;;  %s110_s1 = sshll.u32 %s1799_s19, 4  ;;  %s98_s18 = int_to_ptr.vmem [resolvable:$true] %s97_s18  ;;  %s111_s1 = int_to_ptr.vmem [resolvable:$true] %s110_s1 }
  0x31   :  { %s1752_s20 = scalar_lea.vmem %s98_s18, 4096  ;;  %p1757_p7 = scmp.lt.s32.totalorder %s98_s18, %s98_s18 }
  0x32   :  { %p1753_p6 = scmp.ne.s32.totalorder %s98_s18, %s1752_s20  ;;  %p1758_p8 = scmp.lt.s32.totalorder %s1752_s20, %s1752_s20 }
  0x34   :  { %p1759_p9 = por %p1758_p8, %p1757_p7 }
  0x36   :  { %p1760_p10 = pnand %p1759_p9, %p1753_p6 }
  0x38   :  { %1763 = shalt.err (!%p1760_p10)
}
  0x39   :  { %103 = dma.hbm_to_vmem [thread:$0]  %s2273_s15, 4096, %s98_s18, [#allocation8], %s1794_s29, %s1794_s29, %s1795_s0  }
  0x3a   :  { %s1772_s13 = scalar_lea.vmem %s111_s1, 32  ;;  %p1777_p12 = scmp.lt.s32.totalorder %s111_s1, %s111_s1 }
  0x3b   :  { %p1773_p11 = scmp.ne.s32.totalorder %s111_s1, %s1772_s13  ;;  %p1778_p13 = scmp.lt.s32.totalorder %s1772_s13, %s1772_s13 }
  0x3d   :  { %p1779_p0 = por %p1778_p13, %p1777_p12 }
  0x3f   :  { %p1780_p1 = pnand %p1779_p0, %p1773_p11 }
  0x41   :  { %1783 = shalt.err (!%p1780_p1)
}
  0x42   :  { %113 = dma.hbm_to_vmem [thread:$0]  %s2274_s16, 32, %s111_s1, [#allocation11]  }
  0x43   :  { %1784 = dma.done.wait [#allocation3], 4096  }
  0x44   :  { %1785 = vsyncadd [#allocation3], 4294963200 }
  0x45   :  { %1786 = dma.done.wait [#allocation5], 544  }
  0x46   :  { %1787 = vsyncadd [#allocation5], 4294966752 }
  0x47   :  { %1788 = dma.done.wait [#allocation8], 4128  }
  0x48   :  { %1789 = vsyncadd [#allocation8], 4294963168 }
  0x49   :  { %1790 = dma.done.wait [#allocation11], 32  }
  0x4a   :  { %1791 = vsyncadd [#allocation11], 4294967264  ;;  %v1800_v0 = vmov 0   ;;  %v733_v1 = vld [vmem:[%s2262_s4] sm:$0xff]  ;;  %v1464_v3 = vld [vmem:[%s2263_s5 + $0x74] ss:$8 sps:$4 sm:$0xff]  }
  0x4b   :  { %1463 = vset.pattern.permute.xlu1 %v1800_v0  ;;  %1462 = vset.pattern.permute.xlu0 %v1800_v0  ;;  %v701_v2 = vld [vmem:[%s2261_s3] sm:$0xff]  ;;  %v1466_v4 = vld [vmem:[%s2263_s5 + $0x70] ss:$8 sps:$4 sm:$0xff]   ;;  %v734_v5 = vld [vmem:[%s2262_s4 + $0x8] sm:$0xff]  ;;  %s2279_s0 = sld [smem:[#allocation16_spill]]  ;;  %vm807_vm0 = vcmask 261120  }
  0x4c   :  { %743 = vperm.xlu1 %1463, %v733_v1   ;;  %711 = vperm.xlu0 %1462, %v701_v2   ;;  %v702_v6 = vld [vmem:[%s2261_s3 + $0x8] sm:$0xff]  ;;  %v704_v9 = vld [vmem:[%s2261_s3 + $0x18] sm:$0xff]  ;;  %v703_v10 = vld [vmem:[%s2261_s3 + $0x10] sm:$0xff]  ;;  %s2280_s21 = sld [smem:[#allocation17_spill]]  ;;  %vm394_vm1 = vcmask 1041408  }
  0x4d   :  { %351 = vmatprep.subr.bf16.mxu0 %v1464_v3  ;;  %v1467_v7 = vld [vmem:[%s2263_s5 + $0x64] ss:$8 sps:$4 sm:$0xff]   ;;  %v1469_v8 = vld [vmem:[%s2263_s5 + $0x60] ss:$8 sps:$4 sm:$0xff]   ;;  %v1470_v11 = vld [vmem:[%s2263_s5 + $0x54] ss:$8 sps:$4 sm:$0xff]  }
  0x4e   :  { %352 = vmatpush1.bf16.msra.mxu0 %v1466_v4  ;;  %v1472_v12 = vld [vmem:[%s2263_s5 + $0x50] ss:$8 sps:$4 sm:$0xff]   ;;  %v1473_v15 = vld [vmem:[%s2263_s5 + $0x44] ss:$8 sps:$4 sm:$0xff]   ;;  %v1475_v16 = vld [vmem:[%s2263_s5 + $0x40] ss:$8 sps:$4 sm:$0xff]  }
  0x4f   :  { %353 = vmatprep.subr.bf16.mxu0 %v1467_v7  ;;  %v736_v13 = vld [vmem:[%s2262_s4 + $0x18] sm:$0xff]  ;;  %v735_v14 = vld [vmem:[%s2262_s4 + $0x10] sm:$0xff]  ;;  %v1479_v19 = vld [vmem:[%s2263_s5 + $0x24] ss:$8 sps:$4 sm:$0xff]  }
  0x50   :  { %748 = vperm.xlu1 %1463, %v734_v5   ;;  %716 = vperm.xlu0 %1462, %v702_v6   ;;  %v1476_v17 = vld [vmem:[%s2263_s5 + $0x34] ss:$8 sps:$4 sm:$0xff]   ;;  %v1478_v18 = vld [vmem:[%s2263_s5 + $0x30] ss:$8 sps:$4 sm:$0xff]   ;;  %v1481_v20 = vld [vmem:[%s2263_s5 + $0x20] ss:$8 sps:$4 sm:$0xff]  }
  0x51   :  { %v1482_v21 = vld [vmem:[%s2263_s5 + $0x14] ss:$8 sps:$4 sm:$0xff]   ;;  %v1484_v22 = vld [vmem:[%s2263_s5 + $0x10] ss:$8 sps:$4 sm:$0xff]   ;;  %v1485_v24 = vld [vmem:[%s2263_s5 + $0x4] ss:$8 sps:$4 sm:$0xff]  }
  0x52   :  { %354 = vmatpush1.bf16.msra.mxu0 %v1469_v8  ;;  %v1349_v23 = vld.sshfl [vmem:[%s2279_s0] sm:$0x33 pattern:$0x76325410]  ;;  %v1488_v28 = vld [vmem:[%s2263_s5 + $0xf4] ss:$8 sps:$4 sm:$0xff]  }
  0x53   :  { %355 = vmatprep.subr.bf16.mxu0 %v1470_v11  ;;  %v142_v25 = vcombine.high %v1349_v23, %v1349_v23  ;;  %v1487_v27 = vld [vmem:[%s2263_s5] ss:$8 sps:$4 sm:$0xff]   ;;  %v1490_v29 = vld [vmem:[%s2263_s5 + $0xf0] ss:$8 sps:$4 sm:$0xff]   ;;  %v1491_v30 = vld [vmem:[%s2263_s5 + $0xe4] ss:$8 sps:$4 sm:$0xff]   ;;  %v145_v45 = vpack.c.bf16 %v1349_v23, %v1349_v23 }
  0x54   :  { %726 = vperm.xlu1 %1463, %v704_v9   ;;  %721 = vperm.xlu0 %1462, %v703_v10   ;;  %v1493_v31 = vld [vmem:[%s2263_s5 + $0xe0] ss:$8 sps:$4 sm:$0xff]   ;;  %v1494_v32 = vld [vmem:[%s2263_s5 + $0xd4] ss:$8 sps:$4 sm:$0xff]   ;;  %v1496_v33 = vld [vmem:[%s2263_s5 + $0xd0] ss:$8 sps:$4 sm:$0xff]  }
  0x55   :  { %v146_v26 = vpack.c.bf16 %v142_v25, %v142_v25  ;;  %v1497_v34 = vld [vmem:[%s2263_s5 + $0xc4] ss:$8 sps:$4 sm:$0xff]   ;;  %v1499_v35 = vld [vmem:[%s2263_s5 + $0xc0] ss:$8 sps:$4 sm:$0xff]   ;;  %v1500_v36 = vld [vmem:[%s2263_s5 + $0xb4] ss:$8 sps:$4 sm:$0xff]  }
  0x56   :  { %356 = vmatpush1.bf16.msra.mxu0 %v1472_v12  ;;  %v1502_v37 = vld [vmem:[%s2263_s5 + $0xb0] ss:$8 sps:$4 sm:$0xff]   ;;  %v1503_v38 = vld [vmem:[%s2263_s5 + $0xa4] ss:$8 sps:$4 sm:$0xff]   ;;  %v1505_v39 = vld [vmem:[%s2263_s5 + $0xa0] ss:$8 sps:$4 sm:$0xff]  }
  0x57   :  { %357 = vmatprep.subr.bf16.mxu0 %v1473_v15  ;;  %383 = vmatprep.mubr.bf16.mxu0 %v146_v26  ;;  %v1506_v40 = vld [vmem:[%s2263_s5 + $0x94] ss:$8 sps:$4 sm:$0xff]   ;;  %v1508_v41 = vld [vmem:[%s2263_s5 + $0x90] ss:$8 sps:$4 sm:$0xff]   ;;  %v1509_v42 = vld [vmem:[%s2263_s5 + $0x84] ss:$8 sps:$4 sm:$0xff]  }
  0x58   :  { %758 = vperm.xlu1 %1463, %v736_v13   ;;  %753 = vperm.xlu0 %1462, %v735_v14   ;;  %v1511_v43 = vld [vmem:[%s2263_s5 + $0x80] ss:$8 sps:$4 sm:$0xff]   ;;  %v1514_v44 = vld [vmem:[#allocation4 + $0x14] ss:$8 sps:$4 sm:$0xff]   ;;  %v1512_v46 = vld [vmem:[#allocation4 + $0x10] ss:$8 sps:$4 sm:$0xff]  }
  0x59   :  { %v1517_v47 = vld [vmem:[#allocation4 + $0x4] ss:$8 sps:$4 sm:$0xff]   ;;  %v1515_v48 = vld [vmem:[#allocation4] ss:$8 sps:$4 sm:$0xff]   ;;  %v708_v3 = vld [vmem:[%s2280_s21 + $0x18] sm:$0xff] }
  0x5a   :  { %358 = vmatpush1.bf16.msra.mxu0 %v1475_v16  ;;  %v737_v49 = vld [vmem:[%s2260_s2] sm:$0xff]  ;;  %v738_v53 = vld [vmem:[%s2260_s2 + $0x8] sm:$0xff]  ;;  %v707_v4 = vld [vmem:[%s2280_s21 + $0x10] sm:$0xff]  ;;  %v181_v16 = vlaneseq }
  0x5b   :  { %359 = vmatprep.subr.bf16.mxu0 %v1476_v17  ;;  %v705_v51 = vld [vmem:[%s2280_s21] sm:$0xff]  ;;  %v706_v54 = vld [vmem:[%s2280_s21 + $0x8] sm:$0xff]  ;;  %v740_v5 = vld [vmem:[%s2260_s2 + $0x18] sm:$0xff] }
  0x5c   :  { %v739_v6 = vld [vmem:[%s2260_s2 + $0x10] sm:$0xff]  ;;  %v2072_v17 = vshrl.u32 %v181_v16, 7 }
  0x5d   :  { %v1542_v16 = vld [vmem:[#allocation2 + $0xf4] ss:$8 sps:$4 sm:$0xff]  }
  0x5e   :  { %360 = vmatpush1.bf16.msra.mxu0 %v1478_v18  ;;  %v2075_v18 = vsub.s32 0, %v2072_v17 }
  0x5f   :  { %361 = vmatprep.subr.bf16.mxu0 %v1479_v19  ;;  %v179_v19 = vld [vmem:[%s2264_s6] sm:$0x3] }
  0x62   :  { %362 = vmatpush1.bf16.msra.mxu0 %v1481_v20  ;;  %v184_v20 = vrot.slane %v179_v19, %v2075_v18 }
  0x63   :  { %363 = vmatprep.subr.bf16.mxu0 %v1482_v21 }
  0x66   :  { %364 = vmatpush1.bf16.msra.mxu0 %v1484_v22 }
  0x67   :  { %365 = vmatprep.subr.bf16.mxu0 %v1485_v24 }
  0x6a   :  { %366 = vmatpush1.bf16.msra.mxu0 %v1487_v27 }
  0x6b   :  { %367 = vmatprep.subr.bf16.mxu0 %v1488_v28 }
  0x6e   :  { %368 = vmatpush2.bf16.msra.mxu0 %v1490_v29 }
  0x6f   :  { %369 = vmatprep.subr.bf16.mxu0 %v1491_v30 }
  0x72   :  { %370 = vmatpush2.bf16.msra.mxu0 %v1493_v31  ;;  %v775_v31 = vld [vmem:[%s2270_s12] sm:$0x3] }
  0x73   :  { %371 = vmatprep.subr.bf16.mxu0 %v1494_v32  ;;  %v780_v32 = vrot.slane %v775_v31, %v2075_v18 }
  0x76   :  { %372 = vmatpush2.bf16.msra.mxu0 %v1496_v33 }
  0x77   :  { %373 = vmatprep.subr.bf16.mxu0 %v1497_v34 }
  0x7a   :  { %374 = vmatpush2.bf16.msra.mxu0 %v1499_v35 }
  0x7b   :  { %375 = vmatprep.subr.bf16.mxu0 %v1500_v36 }
  0x7e   :  { %376 = vmatpush2.bf16.msra.mxu0 %v1502_v37 }
  0x7f   :  { %377 = vmatprep.subr.bf16.mxu0 %v1503_v38 }
  0x82   :  { %378 = vmatpush2.bf16.msra.mxu0 %v1505_v39 }
  0x83   :  { %379 = vmatprep.subr.bf16.mxu0 %v1506_v40 }
  0x86   :  { %380 = vmatpush2.bf16.msra.mxu0 %v1508_v41 }
  0x87   :  { %381 = vmatprep.subr.bf16.mxu0 %v1509_v42 }
  0x8a   :  { %382 = vmatpush2.bf16.msra.mxu0 %v1511_v43 }
  0x8b   :  { %826 = vmatprep.subr.bf16.mxu0 %v1514_v44 }
  0x8d   :  { %384 = vmatmul.mubr.bf16.vlgmr.msra.gmra.mxu0 %v145_v45 }
  0x8e   :  { %827 = vmatpush1.bf16.msra.mxu0 %v1512_v46  ;;  %846 = vmatprep.mubr.bf16.mxu0 %v1800_v0 }
  0x8f   :  { %828 = vmatprep.subr.bf16.mxu0 %v1517_v47 }
  0x92   :  { %829 = vmatpush1.bf16.msra.mxu0 %v1515_v48 }
  0xc7   :  { %v744_v50 = vpop.permute.xlu1 %743  ;;  %v712_v52 = vpop.permute.xlu0 %711 }
  0xc8   :  { %v761_v55 = vmul.f32 %v744_v50, %v737_v49  ;;  %v729_v56 = vmul.f32 %v712_v52, %v705_v51 }
  0xca   :  { %v765_v61 = vadd.f32 %v761_v55, %v729_v56 }
  0xcb   :  { %v749_v57 = vpop.permute.xlu1 %748  ;;  %v717_v58 = vpop.permute.xlu0 %716 }
  0xcc   :  { %v762_v59 = vmul.f32 %v749_v57, %v738_v53  ;;  %v730_v60 = vmul.f32 %v717_v58, %v706_v54  ;;  %v1518_v54 = vld [vmem:[#allocation2 + $0x74] ss:$8 sps:$4 sm:$0xff]  }
  0xcd   :  { %660 = vmatprep.subr.bf16.mxu1 %v1518_v54  ;;  %v1565_v54 = vld [vmem:[#allocation2 + $0x80] ss:$8 sps:$4 sm:$0xff]  }
  0xce   :  { %v766_v62 = vadd.f32 %v762_v59, %v730_v60 }
  0xcf   :  { %v727_v63 = vpop.permute.xlu1 %726  ;;  %v722_v1 = vpop.permute.xlu0 %721 }
  0xd0   :  { %v769_v2 = vpack.c.bf16 %v766_v62, %v765_v61  ;;  %v732_v9 = vmul.f32 %v727_v63, %v708_v3  ;;  %v731_v10 = vmul.f32 %v722_v1, %v707_v4  ;;  %v1520_v1 = vld [vmem:[#allocation2 + $0x70] ss:$8 sps:$4 sm:$0xff]   ;;  %v1523_v3 = vld [vmem:[#allocation2 + $0x60] ss:$8 sps:$4 sm:$0xff]   ;;  %v1524_v4 = vld [vmem:[#allocation2 + $0x54] ss:$8 sps:$4 sm:$0xff]  }
  0xd1   :  { %661 = vmatpush1.bf16.msra.mxu1 %v1520_v1 }
  0xd2   :  { %1418 = vmatmul.mubr.msk.bf16.vlgmr.msra.gmra.mxu0 %vm807_vm0, %v769_v2  ;;  %v1521_v2 = vld [vmem:[#allocation2 + $0x64] ss:$8 sps:$4 sm:$0xff]  }
  0xd3   :  { %v759_v7 = vpop.permute.xlu1 %758  ;;  %v754_v8 = vpop.permute.xlu0 %753  ;;  %856 = vmatprep.mubr.bf16.mxu0 %v1800_v0  ;;  %v2081_v0 = vsub.s32 1, %v2072_v17  ;;  %662 = vmatprep.subr.bf16.mxu1 %v1521_v2 }
  0xd4   :  { %v764_v11 = vmul.f32 %v759_v7, %v740_v5  ;;  %v763_v12 = vmul.f32 %v754_v8, %v739_v6  ;;  %v1526_v5 = vld [vmem:[#allocation2 + $0x50] ss:$8 sps:$4 sm:$0xff]   ;;  %v1527_v6 = vld [vmem:[#allocation2 + $0x44] ss:$8 sps:$4 sm:$0xff]   ;;  %v1529_v7 = vld [vmem:[#allocation2 + $0x40] ss:$8 sps:$4 sm:$0xff]  }
  0xd5   :  { %v188_v21 = vrot.slane %v179_v19, %v2081_v0  ;;  %v784_v33 = vrot.slane %v775_v31, %v2081_v0  ;;  %663 = vmatpush1.bf16.msra.mxu1 %v1523_v3  ;;  %v1530_v8 = vld [vmem:[#allocation2 + $0x34] ss:$8 sps:$4 sm:$0xff]   ;;  %v1544_v19 = vld [vmem:[#allocation2 + $0xf0] ss:$8 sps:$4 sm:$0xff]   ;;  %v1559_v31 = vld [vmem:[#allocation2 + $0xa0] ss:$8 sps:$4 sm:$0xff]  }
  0xd6   :  { %v768_v13 = vadd.f32 %v764_v11, %v732_v9  ;;  %v767_v14 = vadd.f32 %v763_v12, %v731_v10  ;;  %664 = vmatprep.subr.bf16.mxu1 %v1524_v4  ;;  %v1532_v9 = vld [vmem:[#allocation2 + $0x30] ss:$8 sps:$4 sm:$0xff]   ;;  %v1533_v10 = vld [vmem:[#allocation2 + $0x24] ss:$8 sps:$4 sm:$0xff]   ;;  %v1535_v11 = vld [vmem:[#allocation2 + $0x20] ss:$8 sps:$4 sm:$0xff]  }
  0xd7   :  { %v1536_v12 = vld [vmem:[#allocation2 + $0x14] ss:$8 sps:$4 sm:$0xff]   ;;  %v1568_v3 = vld [vmem:[#allocation9 + $0x74] ss:$8 sps:$4 sm:$0xff]  }
  0xd8   :  { %v770_v15 = vpack.c.bf16 %v768_v13, %v767_v14  ;;  %v1538_v13 = vld [vmem:[#allocation2 + $0x10] ss:$8 sps:$4 sm:$0xff]   ;;  %v1539_v14 = vld [vmem:[#allocation2 + $0x4] ss:$8 sps:$4 sm:$0xff]  }
  0xd9   :  { %665 = vmatpush1.bf16.msra.mxu1 %v1526_v5 }
  0xda   :  { %1419 = vmatmul.mubr.msk.bf16.gmra.mxu0 %vm807_vm0, %v770_v15  ;;  %666 = vmatprep.subr.bf16.mxu1 %v1527_v6  ;;  %v1541_v15 = vld [vmem:[#allocation2] ss:$8 sps:$4 sm:$0xff]  }
  0xdd   :  { %667 = vmatpush1.bf16.msra.mxu1 %v1529_v7 }
  0xde   :  { %668 = vmatprep.subr.bf16.mxu1 %v1530_v8 }
  0xe1   :  { %669 = vmatpush1.bf16.msra.mxu1 %v1532_v9 }
  0xe2   :  { %670 = vmatprep.subr.bf16.mxu1 %v1533_v10 }
  0xe5   :  { %671 = vmatpush1.bf16.msra.mxu1 %v1535_v11 }
  0xe6   :  { %672 = vmatprep.subr.bf16.mxu1 %v1536_v12 }
  0xe9   :  { %673 = vmatpush1.bf16.msra.mxu1 %v1538_v13 }
  0xea   :  { %674 = vmatprep.subr.bf16.mxu1 %v1539_v14 }
  0xed   :  { %675 = vmatpush1.bf16.msra.mxu1 %v1541_v15 }
  0xee   :  { %676 = vmatprep.subr.bf16.mxu1 %v1542_v16 }
  0xf1   :  { %677 = vmatpush2.bf16.msra.mxu1 %v1544_v19 }
 0x14d   :  { %v385_v22 = vpop.f32.mrf.mxu0 }
 0x14e   :  { %v386_v23 = vadd.f32 %v385_v22, %v184_v20  ;;  %v1545_v20 = vld [vmem:[#allocation2 + $0xe4] ss:$8 sps:$4 sm:$0xff]   ;;  %v1548_v22 = vld [vmem:[#allocation2 + $0xd4] ss:$8 sps:$4 sm:$0xff]  }
 0x14f   :  { %v387_v24 = vpop.f32.mrf.mxu0  ;;  %678 = vmatprep.subr.bf16.mxu1 %v1545_v20 }
 0x150   :  { %v388_v25 = vadd.f32 %v387_v24, %v188_v21  ;;  %v395_v26 = vsel %vm394_vm1, %v386_v23, 0.0  ;;  %v1547_v21 = vld [vmem:[#allocation2 + $0xe0] ss:$8 sps:$4 sm:$0xff]   ;;  %v1551_v24 = vld [vmem:[#allocation2 + $0xc4] ss:$8 sps:$4 sm:$0xff]  }
 0x151   :  { %v389_v27 = vpop.f32.mrf.mxu0  ;;  %679 = vmatpush2.bf16.msra.mxu1 %v1547_v21 }
 0x152   :  { %v396_v28 = vsel %vm394_vm1, %v388_v25, 0.0  ;;  %680 = vmatprep.subr.bf16.mxu1 %v1548_v22  ;;  %v1556_v27 = vld [vmem:[#allocation2 + $0xb0] ss:$8 sps:$4 sm:$0xff]  }
 0x153   :  { %v390_v29 = vpop.f32.mrf.mxu0  ;;  %v397_v30 = vadd.f32 %v396_v28, %v395_v26  ;;  %v1554_v26 = vld [vmem:[#allocation2 + $0xb4] ss:$8 sps:$4 sm:$0xff]   ;;  %v1557_v28 = vld [vmem:[#allocation2 + $0xa4] ss:$8 sps:$4 sm:$0xff]  }
 0x155   :  { %398 = vadd.xlane.f32.xlu0 %v397_v30 }
 0x192   :  { %v848_v34 = vpop.f32.mrf.mxu0 }
 0x193   :  { %v2092_v36 = vadd.f32 %v848_v34, %v780_v32 }
 0x194   :  { %v850_v35 = vpop.f32.mrf.mxu0 }
 0x195   :  { %v2094_v37 = vadd.f32 %v850_v35, %v784_v33 }
 0x196   :  { %v852_v38 = vpop.f32.mrf.mxu0 }
 0x197   :  { %v869_v39 = vadd.f32 %v2094_v37, %v2092_v36  ;;  %v2098_v41 = vadd.f32 %v852_v38, %v780_v32 }
 0x198   :  { %v854_v40 = vpop.f32.mrf.mxu0 }
 0x199   :  { %v2100_v42 = vadd.f32 %v854_v40, %v784_v33  ;;  %870 = vadd.xlane.f32.xlu1 %v869_v39 }
 0x19a   :  { %v858_v43 = vpop.f32.mrf.mxu0 }
 0x19b   :  { %v872_v44 = vadd.f32 %v2100_v42, %v2098_v41  ;;  %v2104_v46 = vadd.f32 %v858_v43, %v780_v32  ;;  %v1562_v43 = vld [vmem:[#allocation2 + $0x90] ss:$8 sps:$4 sm:$0xff]  }
 0x19c   :  { %v860_v45 = vpop.f32.mrf.mxu0 }
 0x19d   :  { %v2106_v47 = vadd.f32 %v860_v45, %v784_v33  ;;  %873 = vadd.xlane.f32.xlu0 %v872_v44  ;;  %v1563_v44 = vld [vmem:[#allocation2 + $0x84] ss:$8 sps:$4 sm:$0xff]  }
 0x19e   :  { %v862_v48 = vpop.f32.mrf.mxu0 }
 0x19f   :  { %v875_v49 = vadd.f32 %v2106_v47, %v2104_v46  ;;  %v2110_v51 = vadd.f32 %v862_v48, %v780_v32  ;;  %v1560_v32 = vld [vmem:[#allocation2 + $0x94] ss:$8 sps:$4 sm:$0xff]  }
 0x1a0   :  { %v864_v50 = vpop.f32.mrf.mxu0 }
 0x1a1   :  { %v2112_v52 = vadd.f32 %v864_v50, %v784_v33  ;;  %876 = vadd.xlane.f32.xlu0 %v875_v49 }
 0x1a3   :  { %v878_v53 = vadd.f32 %v2112_v52, %v2110_v51 }
 0x1a5   :  { %879 = vadd.xlane.f32.xlu1 %v878_v53 }
 0x1de   :  { %v399_v55 = vpop.xlane.xlu0 %398 }
 0x1df   :  { %v401_v56 = vmul.f32 0.00390625, %v399_v55 }
 0x1e1   :  { %v2116_v57 = vsub.f32 %v386_v23, %v401_v56  ;;  %v2118_v58 = vsub.f32 %v388_v25, %v401_v56  ;;  %v1550_v23 = vld [vmem:[#allocation2 + $0xd0] ss:$8 sps:$4 sm:$0xff]   ;;  %v1553_v25 = vld [vmem:[#allocation2 + $0xc0] ss:$8 sps:$4 sm:$0xff]  }
 0x1e2   :  { %681 = vmatpush2.bf16.msra.mxu1 %v1550_v23 }
 0x1e3   :  { %v404_v59 = vmul.f32 %v2116_v57, %v2116_v57  ;;  %v405_v60 = vmul.f32 %v2118_v58, %v2118_v58  ;;  %682 = vmatprep.subr.bf16.mxu1 %v1551_v24 }
 0x1e5   :  { %v406_v61 = vsel %vm394_vm1, %v404_v59, 0.0  ;;  %v407_v62 = vsel %vm394_vm1, %v405_v60, 0.0 }
 0x1e6   :  { %v408_v63 = vadd.f32 %v407_v62, %v406_v61  ;;  %683 = vmatpush2.bf16.msra.mxu1 %v1553_v25 }
 0x1e7   :  { %684 = vmatprep.subr.bf16.mxu1 %v1554_v26 }
 0x1e8   :  { %409 = vadd.xlane.f32.xlu0 %v408_v63 }
 0x1ea   :  { %685 = vmatpush2.bf16.msra.mxu1 %v1556_v27 }
 0x1eb   :  { %686 = vmatprep.subr.bf16.mxu1 %v1557_v28 }
 0x1ee   :  { %687 = vmatpush2.bf16.msra.mxu1 %v1559_v31  ;;  %v1566_v31 = vld [vmem:[#allocation9 + $0x70] ss:$8 sps:$4 sm:$0xff]  }
 0x1ef   :  { %688 = vmatprep.subr.bf16.mxu1 %v1560_v32 }
 0x1f2   :  { %689 = vmatpush2.bf16.msra.mxu1 %v1562_v43 }
 0x1f3   :  { %690 = vmatprep.subr.bf16.mxu1 %v1563_v44 }
 0x1f6   :  { %691 = vmatpush2.bf16.msra.mxu1 %v1565_v54  ;;  %v1575_v54 = vld [vmem:[#allocation9 + $0x40] ss:$8 sps:$4 sm:$0xff]  }
 0x1f7   :  { %1227 = vmatprep.subr.bf16.mxu1 %v1568_v3 }
 0x222   :  { %v871_v29 = vpop.xlane.xlu1 %870 }
 0x223   :  { %v881_v30 = vmul.f32 0.00390625, %v871_v29 }
 0x225   :  { %v2127_v33 = vsub.f32 %v2092_v36, %v881_v30  ;;  %v2130_v34 = vsub.f32 %v2094_v37, %v881_v30 }
 0x226   :  { %v874_v35 = vpop.xlane.xlu0 %873 }
 0x227   :  { %v882_v38 = vmul.f32 0.00390625, %v874_v35  ;;  %v893_v39 = vmul.f32 %v2127_v33, %v2127_v33  ;;  %v894_v40 = vmul.f32 %v2130_v34, %v2130_v34  ;;  %v1571_v35 = vld [vmem:[#allocation9 + $0x64] ss:$8 sps:$4 sm:$0xff]  }
 0x229   :  { %v2137_v45 = vsub.f32 %v2098_v41, %v882_v38  ;;  %v2140_v36 = vsub.f32 %v2100_v42, %v882_v38  ;;  %v901_v37 = vadd.f32 %v894_v40, %v893_v39  ;;  %v1569_v38 = vld [vmem:[#allocation9 + $0x60] ss:$8 sps:$4 sm:$0xff]   ;;  %v1574_v40 = vld [vmem:[#allocation9 + $0x54] ss:$8 sps:$4 sm:$0xff]  }
 0x22a   :  { %v877_v48 = vpop.xlane.xlu0 %876 }
 0x22b   :  { %v883_v49 = vmul.f32 0.00390625, %v877_v48  ;;  %902 = vadd.xlane.f32.xlu1 %v901_v37  ;;  %v895_v50 = vmul.f32 %v2137_v45, %v2137_v45  ;;  %v896_v53 = vmul.f32 %v2140_v36, %v2140_v36  ;;  %v1572_v37 = vld [vmem:[#allocation9 + $0x50] ss:$8 sps:$4 sm:$0xff]  }
 0x22d   :  { %v2147_v55 = vsub.f32 %v2104_v46, %v883_v49  ;;  %v2150_v41 = vsub.f32 %v2106_v47, %v883_v49  ;;  %v904_v42 = vadd.f32 %v896_v53, %v895_v50  ;;  %v1577_v49 = vld [vmem:[#allocation9 + $0x44] ss:$8 sps:$4 sm:$0xff]  }
 0x22e   :  { %v880_v56 = vpop.xlane.xlu1 %879 }
 0x22f   :  { %v884_v59 = vmul.f32 0.00390625, %v880_v56  ;;  %905 = vadd.xlane.f32.xlu0 %v904_v42  ;;  %v897_v60 = vmul.f32 %v2147_v55, %v2147_v55  ;;  %v898_v61 = vmul.f32 %v2150_v41, %v2150_v41  ;;  %v1580_v56 = vld [vmem:[#allocation9 + $0x34] ss:$8 sps:$4 sm:$0xff]  }
 0x231   :  { %v2157_v62 = vsub.f32 %v2110_v51, %v884_v59  ;;  %v2160_v46 = vsub.f32 %v2112_v52, %v884_v59  ;;  %v907_v63 = vadd.f32 %v898_v61, %v897_v60  ;;  %v392_v51 = vld [vmem:[%s2265_s7] sm:$0x3]  ;;  %v1578_v61 = vld [vmem:[#allocation9 + $0x30] ss:$8 sps:$4 sm:$0xff]  }
 0x232   :  { %v393_v52 = vld [vmem:[%s2266_s8] sm:$0x3]  ;;  %v420_v7 = vrot.slane %v392_v51, %v2075_v18  ;;  %v424_v8 = vrot.slane %v392_v51, %v2081_v0 }
 0x233   :  { %908 = vadd.xlane.f32.xlu1 %v907_v63  ;;  %v899_v47 = vmul.f32 %v2157_v62, %v2157_v62  ;;  %v900_v1 = vmul.f32 %v2160_v46, %v2160_v46  ;;  %v433_v11 = vrot.slane %v393_v52, %v2075_v18  ;;  %v437_v12 = vrot.slane %v393_v52, %v2081_v0 }
 0x235   :  { %v910_v2 = vadd.f32 %v900_v1, %v899_v47  ;;  %v1583_v47 = vld [vmem:[#allocation9 + $0x24] ss:$8 sps:$4 sm:$0xff]  }
 0x237   :  { %911 = vadd.xlane.f32.xlu0 %v910_v2  ;;  %v867_v2 = vld [vmem:[#allocation6] sm:$0x3] }
 0x238   :  { %v937_v51 = vrot.slane %v867_v2, %v2075_v18  ;;  %v941_v52 = vrot.slane %v867_v2, %v2081_v0  ;;  %v1599_v2 = vld [vmem:[#allocation9 + $0xc0] ss:$8 sps:$4 sm:$0xff]  }
 0x271   :  { %v410_v4 = vpop.xlane.xlu0 %409 }
 0x272   :  { %v411_v5 = vmul.f32 0.00390625, %v410_v4  ;;  %v1581_v4 = vld [vmem:[#allocation9 + $0x20] ss:$8 sps:$4 sm:$0xff]  }
 0x274   :  { %v412_v6 = vadd.f32 1e-05, %v411_v5  ;;  %v1586_v5 = vld [vmem:[#allocation9 + $0x14] ss:$8 sps:$4 sm:$0xff]  }
 0x276   :  { %1614 = vrsqrt.f32 %v412_v6  ;;  %v868_v6 = vld [vmem:[#allocation7] sm:$0x3] }
 0x283   :  { %v1615_v9 = vpop.eup %1614 }
 0x284   :  { %v415_v10 = vmul.f32 %v1615_v9, %v2118_v58  ;;  %v414_v13 = vmul.f32 %v1615_v9, %v2116_v57 }
 0x286   :  { %v428_v14 = vmul.f32 %v424_v8, %v415_v10  ;;  %v427_v15 = vmul.f32 %v420_v7, %v414_v13  ;;  %v1584_v8 = vld [vmem:[#allocation9 + $0x10] ss:$8 sps:$4 sm:$0xff]   ;;  %v956_v10 = vrot.slane %v868_v6, %v2075_v18  ;;  %v1589_v13 = vld [vmem:[#allocation9 + $0x4] ss:$8 sps:$4 sm:$0xff]  }
 0x288   :  { %v441_v16 = vadd.f32 %v437_v12, %v428_v14  ;;  %v440_v19 = vadd.f32 %v433_v11, %v427_v15  ;;  %v960_v11 = vrot.slane %v868_v6, %v2081_v0 }
 0x28a   :  { %v443_v20 = vsub.f32 0.0, %v441_v16  ;;  %v442_v21 = vsub.f32 0.0, %v440_v19 }
 0x28c   :  { %v446_v22 = vmul.f32 1.442695, %v443_v20  ;;  %v444_v23 = vmul.f32 1.442695, %v442_v21 }
 0x28e   :  { %1616 = vpow2.f32 %v446_v22 }
 0x28f   :  { %1618 = vpow2.f32 %v444_v23  ;;  %v1592_v23 = vld [vmem:[#allocation9 + $0xf4] ss:$8 sps:$4 sm:$0xff]  }
 0x29b   :  { %v1617_v24 = vpop.eup %1616 }
 0x29c   :  { %v1619_v25 = vpop.eup %1618  ;;  %v449_v26 = vadd.f32 1.0, %v1617_v24 }
 0x29d   :  { %v448_v58 = vadd.f32 1.0, %v1619_v25 }
 0x29e   :  { %1620 = vrcp.f32 %v449_v26 }
 0x29f   :  { %1622 = vrcp.f32 %v448_v58 }
 0x2ab   :  { %v1621_v27 = vpop.eup %1620 }
 0x2ac   :  { %v1623_v28 = vpop.eup %1622  ;;  %v453_v29 = vmul.f32 %v1621_v27, %v441_v16  ;;  %v1590_v27 = vld [vmem:[#allocation9 + $0xf0] ss:$8 sps:$4 sm:$0xff]  }
 0x2ad   :  { %v452_v57 = vmul.f32 %v1623_v28, %v440_v19  ;;  %v1587_v19 = vld [vmem:[#allocation9] ss:$8 sps:$4 sm:$0xff]  }
 0x2ae   :  { %v455_v30 = vpack.c.bf16 %v453_v29, %v453_v29 }
 0x2af   :  { %v454_v32 = vpack.c.bf16 %v452_v57, %v452_v57 }
 0x2b0   :  { %692 = vmatprep.mubr.bf16.mxu1 %v455_v30 }
 0x2b1   :  { %693 = vmatmul.mubr.bf16.vlgmr.msra.gmra.mxu1 %v454_v32 }
 0x2b2   :  { %1228 = vmatpush1.bf16.msra.mxu1 %v1566_v31 }
 0x2b3   :  { %1229 = vmatprep.subr.bf16.mxu1 %v1571_v35 }
 0x2b4   :  { %v903_v39 = vpop.xlane.xlu1 %902 }
 0x2b5   :  { %v913_v43 = vmul.f32 0.00390625, %v903_v39 }
 0x2b6   :  { %1230 = vmatpush1.bf16.msra.mxu1 %v1569_v38 }
 0x2b7   :  { %v917_v44 = vadd.f32 1e-05, %v913_v43  ;;  %1231 = vmatprep.subr.bf16.mxu1 %v1574_v40  ;;  %v1593_v43 = vld [vmem:[#allocation9 + $0xe0] ss:$8 sps:$4 sm:$0xff]  }
 0x2b8   :  { %v906_v48 = vpop.xlane.xlu0 %905 }
 0x2b9   :  { %1624 = vrsqrt.f32 %v917_v44  ;;  %v914_v50 = vmul.f32 0.00390625, %v906_v48 }
 0x2ba   :  { %1232 = vmatpush1.bf16.msra.mxu1 %v1572_v37 }
 0x2bb   :  { %v918_v53 = vadd.f32 1e-05, %v914_v50  ;;  %1233 = vmatprep.subr.bf16.mxu1 %v1577_v49 }
 0x2bc   :  { %v909_v42 = vpop.xlane.xlu1 %908 }
 0x2bd   :  { %1626 = vrsqrt.f32 %v918_v53  ;;  %v915_v59 = vmul.f32 0.00390625, %v909_v42 }
 0x2be   :  { %1234 = vmatpush1.bf16.msra.mxu1 %v1575_v54 }
 0x2bf   :  { %v919_v60 = vadd.f32 1e-05, %v915_v59  ;;  %1235 = vmatprep.subr.bf16.mxu1 %v1580_v56  ;;  %v1596_v59 = vld [vmem:[#allocation9 + $0xd0] ss:$8 sps:$4 sm:$0xff]  }
 0x2c0   :  { %v912_v63 = vpop.xlane.xlu0 %911 }
 0x2c1   :  { %1628 = vrsqrt.f32 %v919_v60  ;;  %v916_v1 = vmul.f32 0.00390625, %v912_v63 }
 0x2c2   :  { %1236 = vmatpush1.bf16.msra.mxu1 %v1578_v61 }
 0x2c3   :  { %v920_v3 = vadd.f32 1e-05, %v916_v1  ;;  %1237 = vmatprep.subr.bf16.mxu1 %v1583_v47 }
 0x2c5   :  { %1630 = vrsqrt.f32 %v920_v3 }
 0x2c6   :  { %v1625_v7 = vpop.eup %1624  ;;  %1238 = vmatpush1.bf16.msra.mxu1 %v1581_v4 }
 0x2c7   :  { %v926_v9 = vmul.f32 %v1625_v7, %v2130_v34  ;;  %v925_v12 = vmul.f32 %v1625_v7, %v2127_v33  ;;  %1239 = vmatprep.subr.bf16.mxu1 %v1586_v5  ;;  %v1604_v5 = vld [vmem:[#allocation9 + $0xb4] ss:$8 sps:$4 sm:$0xff]  }
 0x2c9   :  { %v945_v14 = vmul.f32 %v941_v52, %v926_v9  ;;  %v944_v15 = vmul.f32 %v937_v51, %v925_v12  ;;  %v1605_v12 = vld [vmem:[#allocation9 + $0xa0] ss:$8 sps:$4 sm:$0xff]  }
 0x2ca   :  { %v1627_v16 = vpop.eup %1626  ;;  %1240 = vmatpush1.bf16.msra.mxu1 %v1584_v8  ;;  %v1607_v8 = vld [vmem:[#allocation9 + $0xa4] ss:$8 sps:$4 sm:$0xff]  }
 0x2cb   :  { %v928_v20 = vmul.f32 %v1627_v16, %v2140_v36  ;;  %v2185_v21 = vadd.f32 %v960_v11, %v945_v14  ;;  %v927_v22 = vmul.f32 %v1627_v16, %v2137_v45  ;;  %v2188_v34 = vadd.f32 %v956_v10, %v944_v15  ;;  %1241 = vmatprep.subr.bf16.mxu1 %v1589_v13  ;;  %v1595_v45 = vld [vmem:[#allocation9 + $0xe4] ss:$8 sps:$4 sm:$0xff]   ;;  %v1610_v14 = vld [vmem:[#allocation9 + $0x94] ss:$8 sps:$4 sm:$0xff]  }
 0x2cd   :  { %v947_v24 = vmul.f32 %v941_v52, %v928_v20  ;;  %v972_v33 = vsub.f32 0.0, %v2185_v21  ;;  %v946_v25 = vmul.f32 %v937_v51, %v927_v22  ;;  %v971_v26 = vsub.f32 0.0, %v2188_v34  ;;  %v1613_v22 = vld [vmem:[#allocation9 + $0x84] ss:$8 sps:$4 sm:$0xff]  }
 0x2ce   :  { %v1629_v58 = vpop.eup %1628  ;;  %1242 = vmatpush1.bf16.msra.mxu1 %v1587_v19  ;;  %v1608_v19 = vld [vmem:[#allocation9 + $0x90] ss:$8 sps:$4 sm:$0xff]  }
 0x2cf   :  { %v2192_v28 = vadd.f32 %v960_v11, %v947_v24  ;;  %v981_v36 = vmul.f32 1.442695, %v972_v33  ;;  %v2194_v29 = vadd.f32 %v956_v10, %v946_v25  ;;  %v979_v57 = vmul.f32 1.442695, %v971_v26  ;;  %1243 = vmatprep.subr.bf16.mxu1 %v1592_v23  ;;  %v1611_v26 = vld [vmem:[#allocation9 + $0x80] ss:$8 sps:$4 sm:$0xff]  }
 0x2d0   :  { %v930_v30 = vmul.f32 %v1629_v58, %v2150_v41  ;;  %v929_v31 = vmul.f32 %v1629_v58, %v2147_v55  ;;  %v1598_v41 = vld [vmem:[#allocation9 + $0xd4] ss:$8 sps:$4 sm:$0xff]  }
 0x2d1   :  { %v974_v32 = vsub.f32 0.0, %v2192_v28  ;;  %1632 = vpow2.f32 %v981_v36  ;;  %v973_v35 = vsub.f32 0.0, %v2194_v29 }
 0x2d2   :  { %v1631_v38 = vpop.eup %1630  ;;  %1634 = vpow2.f32 %v979_v57  ;;  %v949_v39 = vmul.f32 %v941_v52, %v930_v30  ;;  %v948_v40 = vmul.f32 %v937_v51, %v929_v31  ;;  %1244 = vmatpush2.bf16.msra.mxu1 %v1590_v27 }
 0x2d3   :  { %v985_v44 = vmul.f32 1.442695, %v974_v32  ;;  %v983_v37 = vmul.f32 1.442695, %v973_v35  ;;  %v932_v48 = vmul.f32 %v1631_v38, %v2160_v46  ;;  %v931_v49 = vmul.f32 %v1631_v38, %v2157_v62  ;;  %1245 = vmatprep.subr.bf16.mxu1 %v1595_v45  ;;  %v1601_v62 = vld [vmem:[#allocation9 + $0xc4] ss:$8 sps:$4 sm:$0xff]  }
 0x2d4   :  { %v2202_v55 = vadd.f32 %v960_v11, %v949_v39  ;;  %v2204_v50 = vadd.f32 %v956_v10, %v948_v40 }
 0x2d5   :  { %1636 = vpow2.f32 %v985_v44  ;;  %v951_v53 = vmul.f32 %v941_v52, %v932_v48  ;;  %v950_v54 = vmul.f32 %v937_v51, %v931_v49  ;;  %v1602_v52 = vld [vmem:[#allocation9 + $0xb0] ss:$8 sps:$4 sm:$0xff]  }
 0x2d6   :  { %1638 = vpow2.f32 %v983_v37  ;;  %v976_v42 = vsub.f32 0.0, %v2202_v55  ;;  %v975_v56 = vsub.f32 0.0, %v2204_v50  ;;  %1246 = vmatpush2.bf16.msra.mxu1 %v1593_v43 }
 0x2d7   :  { %v2208_v60 = vadd.f32 %v960_v11, %v951_v53  ;;  %v2210_v46 = vadd.f32 %v956_v10, %v950_v54  ;;  %1247 = vmatprep.subr.bf16.mxu1 %v1598_v41 }
 0x2d8   :  { %v989_v61 = vmul.f32 1.442695, %v976_v42  ;;  %v987_v63 = vmul.f32 1.442695, %v975_v56 }
 0x2d9   :  { %v978_v47 = vsub.f32 0.0, %v2208_v60  ;;  %v977_v1 = vsub.f32 0.0, %v2210_v46 }
 0x2da   :  { %1640 = vpow2.f32 %v989_v61  ;;  %1248 = vmatpush2.bf16.msra.mxu1 %v1596_v59  ;;  %v488_v59 = vld [vmem:[%s2268_s10] sm:$0x3] }
 0x2db   :  { %v993_v3 = vmul.f32 1.442695, %v978_v47  ;;  %1642 = vpow2.f32 %v987_v63  ;;  %v991_v4 = vmul.f32 1.442695, %v977_v1  ;;  %1249 = vmatprep.subr.bf16.mxu1 %v1601_v62  ;;  %v1801_v62 = vmov 1966171168  }
 0x2dd   :  { %1644 = vpow2.f32 %v993_v3  ;;  %v1055_v3 = vld [vmem:[#allocation10] sm:$0x3] }
 0x2de   :  { %v1633_v6 = vpop.eup %1632  ;;  %1646 = vpow2.f32 %v991_v4  ;;  %1250 = vmatpush2.bf16.msra.mxu1 %v1599_v2  ;;  %v1060_v4 = vrot.slane %v1055_v3, %v2075_v18 }
 0x2df   :  { %v1635_v51 = vpop.eup %1634  ;;  %v996_v7 = vadd.f32 1.0, %v1633_v6  ;;  %1251 = vmatprep.subr.bf16.mxu1 %v1604_v5  ;;  %v1064_v6 = vrot.slane %v1055_v3, %v2081_v0 }
 0x2e0   :  { %v995_v9 = vadd.f32 1.0, %v1635_v51 }
 0x2e1   :  { %1648 = vrcp.f32 %v996_v7 }
 0x2e2   :  { %v1637_v10 = vpop.eup %1636  ;;  %1252 = vmatpush2.bf16.msra.mxu1 %v1602_v52  ;;  %1650 = vrcp.f32 %v995_v9 }
 0x2e3   :  { %v1639_v11 = vpop.eup %1638  ;;  %v998_v13 = vadd.f32 1.0, %v1637_v10  ;;  %1253 = vmatprep.subr.bf16.mxu1 %v1607_v8 }
 0x2e4   :  { %v997_v15 = vadd.f32 1.0, %v1639_v11 }
 0x2e5   :  { %1652 = vrcp.f32 %v998_v13 }
 0x2e6   :  { %1654 = vrcp.f32 %v997_v15  ;;  %1254 = vmatpush2.bf16.msra.mxu1 %v1605_v12 }
 0x2e7   :  { %v1641_v16 = vpop.eup %1640  ;;  %1255 = vmatprep.subr.bf16.mxu1 %v1610_v14 }
 0x2e8   :  { %v1643_v20 = vpop.eup %1642  ;;  %v1000_v23 = vadd.f32 1.0, %v1641_v16 }
 0x2e9   :  { %v999_v24 = vadd.f32 1.0, %v1643_v20 }
 0x2ea   :  { %v1645_v33 = vpop.eup %1644  ;;  %1256 = vmatpush2.bf16.msra.mxu1 %v1608_v19  ;;  %1656 = vrcp.f32 %v1000_v23 }
 0x2eb   :  { %v1647_v25 = vpop.eup %1646  ;;  %v1002_v58 = vadd.f32 1.0, %v1645_v33  ;;  %1257 = vmatprep.subr.bf16.mxu1 %v1613_v22  ;;  %1658 = vrcp.f32 %v999_v24 }
 0x2ec   :  { %v1001_v27 = vadd.f32 1.0, %v1647_v25 }
 0x2ed   :  { %1660 = vrcp.f32 %v1002_v58 }
 0x2ee   :  { %1662 = vrcp.f32 %v1001_v27  ;;  %1258 = vmatpush2.bf16.msra.mxu1 %v1611_v26  ;;  %v1649_v36 = vpop.eup %1648 }
 0x2ef   :  { %v1651_v57 = vpop.eup %1650  ;;  %v1012_v31 = vmul.f32 %v1649_v36, %v2185_v21 }
 0x2f0   :  { %v1011_v35 = vmul.f32 %v1651_v57, %v2188_v34 }
 0x2f2   :  { %v1653_v45 = vpop.eup %1652 }
 0x2f3   :  { %v1655_v30 = vpop.eup %1654  ;;  %v1014_v32 = vmul.f32 %v1653_v45, %v2192_v28 }
 0x2f4   :  { %v1013_v38 = vmul.f32 %v1655_v30, %v2194_v29 }
 0x2f5   :  { %v1020_v39 = vpack.c.bf16 %v1014_v32, %v1012_v31 }
 0x2f6   :  { %v1019_v40 = vpack.c.bf16 %v1013_v38, %v1011_v35 }
 0x2f7   :  { %1259 = vmatprep.mubr.bf16.mxu1 %v1020_v39  ;;  %v1657_v43 = vpop.eup %1656 }
 0x2f8   :  { %1260 = vmatmul.mubr.bf16.vlgmr.msra.gmra.mxu1 %v1019_v40  ;;  %v1659_v44 = vpop.eup %1658  ;;  %v1016_v49 = vmul.f32 %v1657_v43, %v2202_v55  ;;  %v497_v55 = vrot.slane %v488_v59, %v2081_v0 }
 0x2f9   :  { %v1015_v21 = vmul.f32 %v1659_v44, %v2204_v50  ;;  %v493_v50 = vrot.slane %v488_v59, %v2075_v18 }
 0x2fa   :  { %v1661_v37 = vpop.eup %1660 }
 0x2fb   :  { %v1663_v48 = vpop.eup %1662  ;;  %v1018_v41 = vmul.f32 %v1661_v37, %v2208_v60  ;;  %v1284_v60 = vunpack.c.l.s4 %v1801_v62 }
 0x2fc   :  { %v1017_v28 = vmul.f32 %v1663_v48, %v2210_v46 }
 0x2fd   :  { %v1022_v53 = vpack.c.bf16 %v1018_v41, %v1016_v49  ;;  %v1285_v46 = vunpack.c.0.s8 %v1284_v60 }
 0x2fe   :  { %v1021_v34 = vpack.c.bf16 %v1017_v28, %v1015_v21 }
 0x2ff   :  { %1269 = vmatprep.mubr.bf16.mxu1 %v1022_v53  ;;  %v1288_v1 = vsub.s32 %v1285_v46, %v2072_v17 }
 0x300   :  { %1270 = vmatmul.mubr.bf16.gmra.mxu1 %v1021_v34 }
 0x371   :  { %v694_v29 = vpop.f32.mrf.mxu1 }
 0x372   :  { %v695_v63 = vadd.f32 %v694_v29, %v493_v50 }
 0x373   :  { %v696_v54 = vpop.f32.mrf.mxu1 }
 0x374   :  { %v697_v61 = vadd.f32 %v696_v54, %v497_v55 }
 0x375   :  { %v698_v42 = vpop.f32.mrf.mxu1 }
 0x376   :  { %v1282_v47 = vcombine.low %v695_v63, %v697_v61 }
 0x377   :  { %v699_v56 = vpop.f32.mrf.mxu1 }
 0x378   :  { %v1289_v2 = vrot.slane %v1282_v47, %v1288_v1 }
 0x37a   :  { %v1297_v5 = vrot.slane %v1289_v2, %v1288_v1  ;;  %v1290_v52 = vcombine.high %v1289_v2, %v1289_v2 }
 0x37c   :  { %v1308_v8 = vrot.slane %v1297_v5, %v2075_v18  ;;  %v1312_v12 = vrot.slane %v1297_v5, %v2081_v0  ;;  %v1304_v15 = vrot.slane %v1290_v52, %v1288_v1 }
 0x37e   :  { %v1316_v33 = vrot.slane %v1304_v15, %v2075_v18  ;;  %v1320_v27 = vrot.slane %v1304_v15, %v2081_v0 }
 0x3b8   :  { %v1261_v51 = vpop.f32.mrf.mxu1 }
 0x3b9   :  { %v1262_v7 = vadd.f32 %v1261_v51, %v1060_v4 }
 0x3ba   :  { %v1263_v9 = vpop.f32.mrf.mxu1 }
 0x3bb   :  { %v1325_v10 = vadd.f32 %v1308_v8, %v1262_v7  ;;  %v1264_v11 = vadd.f32 %v1263_v9, %v1064_v6 }
 0x3bc   :  { %v1265_v13 = vpop.f32.mrf.mxu1 }
 0x3bd   :  { %1333 = vst [vmem:[%s2275_s17] sm:$0xff] %v1325_v10  ;;  %v1326_v17 = vadd.f32 %v1312_v12, %v1264_v11  ;;  %v1266_v14 = vadd.f32 %v1265_v13, %v1060_v4 }
 0x3be   :  { %v1267_v16 = vpop.f32.mrf.mxu1 }
 0x3bf   :  { %1334 = vst [vmem:[%s2275_s17 + $0x8] sm:$0xff] %v1326_v17  ;;  %v1327_v19 = vadd.f32 %v1308_v8, %v1266_v14  ;;  %v1268_v20 = vadd.f32 %v1267_v16, %v1064_v6 }
 0x3c0   :  { %v1271_v22 = vpop.f32.mrf.mxu1 }
 0x3c1   :  { %1335 = vst [vmem:[%s2275_s17 + $0x10] sm:$0xff] %v1327_v19  ;;  %v1328_v23 = vadd.f32 %v1312_v12, %v1268_v20  ;;  %v1272_v24 = vadd.f32 %v1271_v22, %v1060_v4 }
 0x3c2   :  { %v1273_v25 = vpop.f32.mrf.mxu1 }
 0x3c3   :  { %1336 = vst [vmem:[%s2275_s17 + $0x18] sm:$0xff] %v1328_v23  ;;  %v1329_v26 = vadd.f32 %v1316_v33, %v1272_v24  ;;  %v1274_v58 = vadd.f32 %v1273_v25, %v1064_v6 }
 0x3c4   :  { %v1275_v36 = vpop.f32.mrf.mxu1 }
 0x3c5   :  { %1337 = vst [vmem:[%s2275_s17 + $0x20] sm:$0xff] %v1329_v26  ;;  %v1330_v57 = vadd.f32 %v1320_v27, %v1274_v58  ;;  %v1276_v45 = vadd.f32 %v1275_v36, %v1060_v4 }
 0x3c6   :  { %v1277_v30 = vpop.f32.mrf.mxu1 }
 0x3c7   :  { %1338 = vst [vmem:[%s2275_s17 + $0x28] sm:$0xff] %v1330_v57  ;;  %v1331_v18 = vadd.f32 %v1316_v33, %v1276_v45  ;;  %v1278_v31 = vadd.f32 %v1277_v30, %v1064_v6 }
 0x3c9   :  { %1339 = vst [vmem:[%s2275_s17 + $0x30] sm:$0xff] %v1331_v18  ;;  %v1332_v32 = vadd.f32 %v1320_v27, %v1278_v31 }
 0x3cb   :  { %1340 = vst [vmem:[%s2275_s17 + $0x38] sm:$0xff] %v1332_v32 }
 0x3cc   :  { %1345 = vsyncpa [#allocation3], 1 }
 0x3cd   :  { %1346 = vsyncpa [#allocation5], 1 }
 0x3ce   :  { %1347 = vsyncpa [#allocation8], 1 }
 0x3cf   :  { %1348 = vsyncpa [#allocation11], 1 }

// kernel: diffusion_forward.4
= control target key start
LH: loop header
LB: loop body
LE: loop exit
PB: predicated region body
PF: predicated region fallthrough
CT: control target
= control target key end

     0   :  { %s4922_s0 = inlined_call_operand.vmem [shape: f32[2,16,256], index: 0, kind: input, shape index: {}]   ;;  %s4923_s1 = inlined_call_operand.vmem [shape: f32[2,1,256], index: 1, kind: input, shape index: {}]   ;;  %s4924_s2 = inlined_call_operand.vmem [shape: f32[2,1,256], index: 2, kind: input, shape index: {}]   ;;  %s4925_s3 = inlined_call_operand.vmem [shape: bf16[2,256,256], index: 3, kind: input, shape index: {}]   ;;  %s4926_s4 = inlined_call_operand.vmem [shape: bf16[2,256,256], index: 4, kind: input, shape index: {}]   ;;  %s4927_s5 = inlined_call_operand.vmem [shape: bf16[2,256,256], index: 5, kind: input, shape index: {}]   ;;  %s4928_s6 = inlined_call_operand.vmem [shape: f32[2,1,256], index: 6, kind: input, shape index: {}]   ;;  %s4929_s7 = inlined_call_operand.hbm [shape: f32[2,1,256], index: 7, kind: input, shape index: {}]   ;;  %s4930_s8 = inlined_call_operand.hbm [shape: f32[2,1,256], index: 8, kind: input, shape index: {}]   ;;  %s4931_s9 = inlined_call_operand.vmem [shape: bf16[2,256,256], index: 9, kind: input, shape index: {}]   ;;  %s4932_s10 = inlined_call_operand.hbm [shape: f32[2,1,256], index: 10, kind: input, shape index: {}]   ;;  %s4933_s11 = inlined_call_operand.hbm [shape: f32[2,1,256], index: 11, kind: input, shape index: {}]   ;;  %s4934_s12 = inlined_call_operand.hbm [shape: f32[2,1,256], index: 12, kind: input, shape index: {}]   ;;  %s4935_s13 = inlined_call_operand.vmem [shape: bf16[2,256,256], index: 13, kind: input, shape index: {}]   ;;  %s4936_s14 = inlined_call_operand.hbm [shape: f32[2,1,256], index: 14, kind: input, shape index: {}]   ;;  %s4937_s15 = inlined_call_operand.vmem [shape: bf16[2,256,256], index: 15, kind: input, shape index: {}]   ;;  %s4938_s16 = inlined_call_operand.hbm [shape: f32[2,1,256], index: 16, kind: input, shape index: {}]   ;;  %s4939_s17 = inlined_call_operand.vmem [shape: f32[2,16,256], index: 17, kind: output, shape index: {}]  }
   0x1   :  { %4947 = sst [smem:[#allocation23_spill]] %s4922_s0 }
   0x2   :  { %4948 = sst [smem:[#allocation24_spill]] %s4923_s1 }
   0x3   :  { %4949 = sst [smem:[#allocation25_spill]] %s4925_s3 }
   0x4   :  { %4950 = sst [smem:[#allocation26_spill]] %s4926_s4 }
   0x5   :  { %4951 = sst [smem:[#allocation27_spill]] %s4927_s5 }
   0x6   :  { %4952 = sst [smem:[#allocation28_spill]] %s4928_s6 }
   0x7   :  { %4953 = sst [smem:[#allocation29_spill]] %s4929_s7 }
   0x8   :  { %4954 = sst [smem:[#allocation30_spill]] %s4930_s8 }
   0x9   :  { %4955 = sst [smem:[#allocation31_spill]] %s4931_s9 }
   0xa   :  { %4956 = sst [smem:[#allocation32_spill]] %s4932_s10 }
   0xb   :  { %4957 = sst [smem:[#allocation33_spill]] %s4933_s11 }
   0xc   :  { %4958 = sst [smem:[#allocation34_spill]] %s4934_s12 }
   0xd   :  { %4959 = sst [smem:[#allocation35_spill]] %s4935_s13 }
   0xe   :  { %4960 = sst [smem:[#allocation36_spill]] %s4936_s14 }
   0xf   :  { %4961 = sst [smem:[#allocation37_spill]] %s4937_s15 }
  0x10   :  { %4962 = sst [smem:[#allocation38_spill]] %s4939_s17 }
  0x11   :  { %22 = vsyncpa [#allocation4], 0 }
  0x12   :  { %24 = vsyncpa [#allocation4 + $0x1], 0 }
  0x13   :  { %25 = vsyncpa [#allocation6], 0 }
  0x14   :  { %27 = vsyncpa [#allocation6 + $0x1], 0 }
  0x15   :  { %28 = vsyncpa [#allocation9], 0 }
  0x16   :  { %30 = vsyncpa [#allocation9 + $0x1], 0 }
  0x17   :  { %31 = vsyncpa [#allocation12], 0 }
  0x18   :  { %33 = vsyncpa [#allocation12 + $0x1], 0  ;;  %s4294_s24 = smov 0   ;;  %s4296_s25 = smov 0  }
  0x19   :  { %s4298_s26 = smov 0   ;;  %s4300_s27 = smov 0  }
  0x1a   :  { %s4302_s28 = smov 0   ;;  %s4304_s29 = smov 0  }
  0x1b   :  { %s4306_s0 = smov 0   ;;  %s4308_s30 = smov 0  }
  0x1c LB: > { %4963 = sst [smem:[#allocation18_spill]] %s4185_s29  ;;  %s4941_s18 = sadd.s32 4294967295, %s4193_s30   ;;  %s4193_s30 = sphi %s4308_s30, %s39_s30   ;;  %s4189_s0 = sphi %s4306_s0, %s5007_s0   ;;  %s4185_s29 = sphi %s4304_s29, %s5006_s29   ;;  %s4181_s28 = sphi %s4302_s28, %s5005_s28   ;;  %s4177_s27 = sphi %s4300_s27, %s5004_s27   ;;  %s4173_s26 = sphi %s4298_s26, %s5010_s26   ;;  %s4169_s25 = sphi %s4296_s25, %s5009_s25   ;;  %s4165_s24 = sphi %s4294_s24, %s5008_s24  }
  0x1d   : > { %4964 = sst [smem:[#allocation19_spill]] %s4189_s0  ;;  %s48_s19 = sadd.s32 1, %s4185_s29 }
  0x1e   : > { %p49_p0 = scmp.ge.s32.totalorder %s48_s19, 2  ;;  %s51_s1 = sadd.s32 1, %s4189_s0 }
  0x1f   : > { %s240_s20 = sadd.s32 1, %s4173_s26  ;;  %p247_p1 = scmp.ne.s32.totalorder %s4173_s26, %s4169_s25 }
  0x20   : > { %s5012_s19 = smov (%p49_p0, %s48_s19), 0  ;;  %s5014_s1 = smov (!%p49_p0, %s51_s1), %s4189_s0 }
  0x21   : > { %4965 = sst [smem:[#allocation20_spill]] %s5012_s19  ;;  %s237_s21 = ssub.s32 %s4185_s29, %s5012_s19 }
  0x22   : > { %p248_p2 = scmp.eq.s32.totalorder %s4193_s30, 0  ;;  %p53_p3 = scmp.ge.s32.totalorder %s5014_s1, 2 }
  0x23   : > { %p238_p4 = scmp.eq.s32.totalorder %s237_s21, 0  ;;  %p253_p6 = scmp.ne.s32.totalorder %s4169_s25, %s4165_s24 }
  0x24   : > { %p249_p5 = por %p248_p2, %p247_p1  ;;  %s5016_s1 = smov (%p53_p3, %s5014_s1), 0 }
  0x25   : > { %4966 = sst [smem:[#allocation21_spill]] %s5016_s1  ;;  %p254_p7 = scmp.eq.s32.totalorder %s4941_s18, 0 }
  0x26   : > { %s4348_s22 = scalar_select %p238_p4, %s4173_s26, %s240_s20  }
  0x27   : > { %p3536_p8 = scmp.lt.s32.totalorder %s4193_s30, 4  ;;  %s4943_s23 = sand.u32 1, %s4173_s26  }
  0x28   : > { %4967 = sst [smem:[#allocation22_spill]] %s4348_s22  ;;  %p4354_p9 = por %p254_p7, %p253_p6 }
  0x29   : > { %s4360_s19 = sshll.u32 %s4943_s23, 1  ;;  %s4363_s21 = sshll.u32 %s4185_s29, 5 }
  0x2a   : > { %p4365_p10 = pnand %p3536_p8, %p249_p5  ;;  %s4370_s20 = sand.u32 1, %s4193_s30  }
  0x2b   : > { %s4970_s8 = sld [smem:[#allocation30_spill]]  ;;  %s613_s22 = scalar_lea.vmem [#allocation5], %s4360_s19 }
  0x2c   : > { %s621_s15 = sshll.u32 %s613_s22, 4  ;;  %p3228_p11 = scmp.ge.s32.totalorder %s4193_s30, 1  ;;  %s622_s15 = int_to_ptr.vmem [resolvable:$true] %s621_s15 }
  0x2d   : > { %s4945_s23 = scalar_lea.sflag [#allocation6], %s4370_s20  ;;  %p4381_p12 = pneg %p4365_p10 }
  0x2e   : > { %s3932_s13 = scalar_lea.vmem %s622_s15, 32  ;;  %s4195_s9 = smov [#allocation5]  }
  0x2f   : > { %p3933_p13 = scmp.ne.s32.totalorder %s622_s15, %s3932_s13  ;;  %s3937_s18 = sshll.u32 %s4195_s9, 4  ;;  %s3938_s18 = int_to_ptr.vmem [resolvable:$false] %s3937_s18 }
  0x30   : > { %s3939_s1 = scalar_lea.vmem %s3938_s18, 64  ;;  %p3940_p2 = scmp.lt.s32.totalorder %s622_s15, %s3938_s18 }
  0x31   : > { %s619_s0 = scalar_lea.hbm %s4970_s8, %s4363_s21  ;;  %p3935_p0 = pnand %p3933_p13, %p4381_p12 }
  0x32   : > { %p3941_p3 = scmp.lt.s32.totalorder %s3939_s1, %s3932_s13 }
  0x33   : > { %p3936_p1 = pneg %p3935_p0 }
  0x34   : > { %p3942_p4 = por %p3941_p3, %p3940_p2 }
  0x36   : > { %p3943_p5 = pnand %p3942_p4, %p3936_p1 }
  0x38   : > { %3946 = shalt.err (!%p3943_p5)
}
  0x39   : > { %3520 = dma.hbm_to_vmem [thread:$0]  (!%p4365_p10), %s619_s0, 32, %s622_s15, %s4945_s23  }
  0x3a   : > { %p745_p6 = scmp.lt.s32.totalorder %s4193_s30, 5  ;;  %s4972_s11 = sld [smem:[#allocation33_spill]] }
  0x3b   : > { %s659_s1 = scalar_lea.vmem [#allocation8], %s4360_s19  ;;  %s4946_s5 = scalar_lea.sflag [#allocation9], %s4370_s20 }
  0x3c   : > { %p4398_p7 = pnand %p3228_p11, %p745_p6  ;;  %s667_s8 = sshll.u32 %s659_s1, 4  ;;  %s668_s8 = int_to_ptr.vmem [resolvable:$true] %s667_s8 }
  0x3d   : > { %s3960_s4 = scalar_lea.vmem %s668_s8, 32  ;;  %s4196_s15 = smov [#allocation8]  }
  0x3e   : > { %p3961_p8 = scmp.ne.s32.totalorder %s668_s8, %s3960_s4  ;;  %s3965_s0 = sshll.u32 %s4196_s15, 4  ;;  %s3966_s0 = int_to_ptr.vmem [resolvable:$false] %s3965_s0 }
  0x3f   : > { %s3967_s23 = scalar_lea.vmem %s3966_s0, 64  ;;  %p3968_p1 = scmp.lt.s32.totalorder %s668_s8, %s3966_s0 }
  0x40   : > { %s665_s18 = scalar_lea.hbm %s4972_s11, %s4363_s21  ;;  %p3963_p13 = pnand %p3961_p8, %p4381_p12 }
  0x41   : > { %p3969_p2 = scmp.lt.s32.totalorder %s3967_s23, %s3960_s4 }
  0x42   : > { %p3964_p0 = pneg %p3963_p13 }
  0x43   : > { %p3970_p3 = por %p3969_p2, %p3968_p1 }
  0x45   : > { %p3971_p11 = pnand %p3970_p3, %p3964_p0 }
  0x47   : > { %3974 = shalt.err (!%p3971_p11)
}
  0x48   : > { %3526 = dma.hbm_to_vmem [thread:$0]  (!%p4365_p10), %s665_s18, 32, %s668_s8, %s4946_s5  }
  0x49   : > { %s4974_s14 = sld [smem:[#allocation36_spill]]  ;;  %s705_s15 = scalar_lea.vmem [#allocation11], %s4360_s19 }
  0x4a   : > { %s713_s11 = sshll.u32 %s705_s15, 4  ;;  %s702_s4 = scalar_lea.sflag [#allocation12], %s4370_s20  ;;  %s714_s11 = int_to_ptr.vmem [resolvable:$true] %s713_s11 }
  0x4b   : > { %s3988_s23 = scalar_lea.vmem %s714_s11, 32  ;;  %s4197_s0 = smov [#allocation11]  }
  0x4c   : > { %p3989_p4 = scmp.ne.s32.totalorder %s714_s11, %s3988_s23  ;;  %s3993_s3 = sshll.u32 %s4197_s0, 4  ;;  %s3994_s3 = int_to_ptr.vmem [resolvable:$false] %s3993_s3 }
  0x4d   : > { %s3995_s6 = scalar_lea.vmem %s3994_s3, 64  ;;  %p3996_p8 = scmp.lt.s32.totalorder %s714_s11, %s3994_s3 }
  0x4e   : > { %p3991_p5 = pnand %p3989_p4, %p4381_p12  ;;  %p3997_p13 = scmp.lt.s32.totalorder %s3995_s6, %s3988_s23 }
  0x4f   : > { %s711_s1 = scalar_lea.hbm %s4974_s14, %s4363_s21 }
  0x50   : > { %p3992_p6 = pneg %p3991_p5  ;;  %p3998_p0 = por %p3997_p13, %p3996_p8 }
  0x52   : > { %p3999_p1 = pnand %p3998_p0, %p3992_p6 }
  0x54   : > { %4002 = shalt.err (!%p3999_p1)
}
  0x55   : > { %3532 = dma.hbm_to_vmem [thread:$0]  (!%p4365_p10), %s711_s1, 32, %s714_s11, %s702_s4  }
  0x56   : > { %s4975_s7 = sld [smem:[#allocation29_spill]]  ;;  %s594_s22 = scalar_lea.vmem [#allocation3], %s4360_s19 }
  0x57   : > { %s602_s15 = sshll.u32 %s594_s22, 4  ;;  %s4976_s3 = sand.u32 1, %s4173_s26   ;;  %s603_s15 = int_to_ptr.vmem [resolvable:$true] %s602_s15 }
  0x58   : > { %s591_s6 = scalar_lea.sflag [#allocation4], %s4976_s3  ;;  %s4016_s23 = scalar_lea.vmem %s603_s15, 32 }
  0x59   : > { %p4017_p2 = scmp.ne.s32.totalorder %s603_s15, %s4016_s23  ;;  %s4198_s0 = smov [#allocation3]  }
  0x5a   : > { %s4021_s5 = sshll.u32 %s4198_s0, 4  ;;  %s4022_s5 = int_to_ptr.vmem [resolvable:$false] %s4021_s5 }
  0x5b   : > { %p4019_p3 = pnand %p4017_p2, %p4381_p12  ;;  %s4023_s14 = scalar_lea.vmem %s4022_s5, 64 }
  0x5c   : > { %s600_s9 = scalar_lea.hbm %s4975_s7, %s4363_s21  ;;  %p4024_p4 = scmp.lt.s32.totalorder %s603_s15, %s4022_s5 }
  0x5d   : > { %p4020_p11 = pneg %p4019_p3  ;;  %p4025_p5 = scmp.lt.s32.totalorder %s4023_s14, %s4016_s23 }
  0x5f   : > { %p4026_p6 = por %p4025_p5, %p4024_p4 }
  0x61   : > { %p4027_p8 = pnand %p4026_p6, %p4020_p11 }
  0x63   : > { %4030 = shalt.err (!%p4027_p8)
}
  0x64   : > { %3517 = dma.hbm_to_vmem [thread:$0]  (!%p4365_p10), %s600_s9, 32, %s603_s15, %s591_s6  }
  0x65   : > { %s4977_s10 = sld [smem:[#allocation32_spill]]  ;;  %s640_s18 = scalar_lea.vmem [#allocation7], %s4360_s19 }
  0x66   : > { %s648_s22 = sshll.u32 %s640_s18, 4  ;;  %s4199_s5 = smov [#allocation7]   ;;  %s649_s22 = int_to_ptr.vmem [resolvable:$true] %s648_s22 }
  0x67   : > { %s4044_s3 = scalar_lea.vmem %s649_s22, 32  ;;  %s4049_s14 = sshll.u32 %s4199_s5, 4  ;;  %s4050_s14 = int_to_ptr.vmem [resolvable:$false] %s4049_s14 }
  0x68   : > { %p4045_p13 = scmp.ne.s32.totalorder %s649_s22, %s4044_s3  ;;  %s4051_s23 = scalar_lea.vmem %s4050_s14, 64 }
  0x69   : > { %p4052_p2 = scmp.lt.s32.totalorder %s649_s22, %s4050_s14  ;;  %p4053_p3 = scmp.lt.s32.totalorder %s4051_s23, %s4044_s3 }
  0x6a   : > { %p4047_p0 = pnand %p4045_p13, %p4381_p12 }
  0x6b   : > { %s646_s8 = scalar_lea.hbm %s4977_s10, %s4363_s21  ;;  %p4054_p11 = por %p4053_p3, %p4052_p2 }
  0x6c   : > { %p4048_p1 = pneg %p4047_p0 }
  0x6e   : > { %p4055_p4 = pnand %p4054_p11, %p4048_p1 }
  0x70   : > { %4058 = shalt.err (!%p4055_p4)
}
  0x71   : > { %s4978_s9 = scalar_lea.sflag [#allocation6], %s4370_s20  ;;  %s4979_s12 = sld [smem:[#allocation34_spill]] }
  0x72   : > { %3523 = dma.hbm_to_vmem [thread:$0]  (!%p4365_p10), %s646_s8, 32, %s649_s22, %s4978_s9  }
  0x73   : > { %s678_s11 = scalar_lea.vmem [#allocation10], %s4360_s19  ;;  %s4200_s3 = smov [#allocation10]  }
  0x74   : > { %s686_s1 = sshll.u32 %s678_s11, 4  ;;  %s4077_s5 = sshll.u32 %s4200_s3, 4  ;;  %s687_s1 = int_to_ptr.vmem [resolvable:$true] %s686_s1  ;;  %s4078_s5 = int_to_ptr.vmem [resolvable:$false] %s4077_s5 }
  0x75   : > { %s4072_s18 = scalar_lea.vmem %s687_s1, 32  ;;  %s4079_s14 = scalar_lea.vmem %s4078_s5, 64 }
  0x76   : > { %p4073_p5 = scmp.ne.s32.totalorder %s687_s1, %s4072_s18  ;;  %p4080_p13 = scmp.lt.s32.totalorder %s687_s1, %s4078_s5 }
  0x77   : > { %s684_s0 = scalar_lea.hbm %s4979_s12, %s4363_s21  ;;  %p4081_p0 = scmp.lt.s32.totalorder %s4079_s14, %s4072_s18 }
  0x78   : > { %p4075_p6 = pnand %p4073_p5, %p4381_p12 }
  0x79   : > { %p4082_p1 = por %p4081_p0, %p4080_p13 }
  0x7a   : > { %p4076_p8 = pneg %p4075_p6 }
  0x7c   : > { %p4083_p2 = pnand %p4082_p1, %p4076_p8 }
  0x7e   : > { %4086 = shalt.err (!%p4083_p2)
}
  0x7f   : > { %s4980_s8 = scalar_lea.sflag [#allocation9], %s4370_s20  ;;  %s738_s9 = scalar_lea.hbm %s4938_s16, %s4363_s21 }
  0x80   : > { %3529 = dma.hbm_to_vmem [thread:$0]  (!%p4365_p10), %s684_s0, 32, %s687_s1, %s4980_s8  }
  0x81   : > { %s732_s15 = scalar_lea.vmem [#allocation13], %s4360_s19  ;;  %s4201_s18 = smov [#allocation13]  }
  0x82   : > { %s740_s6 = sshll.u32 %s732_s15, 4  ;;  %s4105_s3 = sshll.u32 %s4201_s18, 4  ;;  %s741_s6 = int_to_ptr.vmem [resolvable:$true] %s740_s6  ;;  %s4106_s3 = int_to_ptr.vmem [resolvable:$false] %s4105_s3 }
  0x83   : > { %s4100_s11 = scalar_lea.vmem %s741_s6, 32  ;;  %s4107_s5 = scalar_lea.vmem %s4106_s3, 64 }
  0x84   : > { %p4101_p3 = scmp.ne.s32.totalorder %s741_s6, %s4100_s11  ;;  %p4108_p5 = scmp.lt.s32.totalorder %s741_s6, %s4106_s3 }
  0x85   : > { %p4109_p6 = scmp.lt.s32.totalorder %s4107_s5, %s4100_s11 }
  0x86   : > { %p4103_p11 = pnand %p4101_p3, %p4381_p12 }
  0x87   : > { %p4110_p8 = por %p4109_p6, %p4108_p5 }
  0x88   : > { %p4104_p4 = pneg %p4103_p11 }
  0x8a   : > { %p4111_p13 = pnand %p4110_p8, %p4104_p4 }
  0x8c   : > { %4114 = shalt.err (!%p4111_p13)
}
  0x8d   : > { %3535 = dma.hbm_to_vmem [thread:$0]  (!%p4365_p10), %s738_s9, 32, %s741_s6, %s702_s4  }
  0x8e   : > { %749 = sbr.rel (%p4398_p7) target bundleno = 2353 (0x931), region = 88  ;;  %s751_s29 = sand.u32 (!%p4398_p7), 1, %s4169_s25  }
  0x8f   : > { %s4469_s19 = sshll.u32 (!%p4398_p7), %s751_s29, 1  ;;  %s752_s21 = scalar_lea.sflag (!%p4398_p7), [#allocation4], %s751_s29 }
  0x93   : > { %4148 = dma.done.wait (%p4354_p9), %s752_s21, 32  }
  0x94   : > { %4150 = vsyncadd (%p4354_p9), %s752_s21, 4294967264  ;;  %s4981_s24 = sadd.s32 4294967295, %s4193_s30  }
  0x95   : > { %s760_s20 = sand.u32 1, %s4981_s24  }
  0x96   : > { %s761_s13 = scalar_lea.sflag [#allocation6], %s760_s20 }
  0x97   : > { %4152 = dma.done.wait (%p4354_p9), %s761_s13, 64  }
  0x98   : > { %4154 = vsyncadd (%p4354_p9), %s761_s13, 4294967232  ;;  %s779_s14 = scalar_lea.sflag [#allocation9], %s760_s20 }
  0x99   : > { %4156 = dma.done.wait (%p4354_p9), %s779_s14, 64  }
  0x9a   : > { %4158 = vsyncadd (%p4354_p9), %s779_s14, 4294967232  ;;  %s797_s23 = scalar_lea.sflag [#allocation12], %s760_s20 }
  0x9b   : > { %4160 = dma.done.wait (%p4354_p9), %s797_s23, 64  }
  0x9c   : > { %4162 = vsyncadd (%p4354_p9), %s797_s23, 4294967232  ;;  %p937_p10 = scmp.lt.s32.totalorder %s4181_s28, 1  ;;  %p942_p12 = scmp.lt.s32.totalorder %s4177_s27, 1 }
  0x9d   : > { %s4982_s3 = sld [smem:[#allocation23_spill]]  ;;  %s809_s24 = scalar_lea.vmem [#allocation13], %s4469_s19 }
  0x9e   : > { %s5018_s28 = smov (!%p937_p10, %s4181_s28), 1  ;;  %s4986_s21 = sld [smem:[#allocation26_spill]] }
  0x9f   : > { %s943_s15 = scalar_select %p942_p12, %s4177_s27, 1 }
  0xa0   : > { %s3460_s6 = sshll.u32 %s5018_s28, 5  ;;  %s4987_s10 = sld [smem:[#allocation27_spill]] }
  0xa1   : > { %s4502_s29 = sshll.u32 %s943_s15, 1  ;;  %s3461_s9 = sshll.u32 %s943_s15, 8 }
  0xa2   : > { %s4988_s23 = sld [smem:[#allocation31_spill]]  ;;  %p3255_p9 = scmp.ne.s32.totalorder %s4177_s27, 0 }
  0xa3   : > { %s941_s5 = scalar_lea.vmem %s4982_s3, %s3460_s6  ;;  %s4985_s3 = sld [smem:[#allocation25_spill]] }
  0xa4   : > { %s4524_s17 = scalar_lea.vmem %s4986_s21, %s3461_s9  ;;  %s4989_s11 = sld [smem:[#allocation35_spill]] }
  0xa5   : > { %s4990_s7 = sld [smem:[#allocation37_spill]] }
  0xa6   : > { %s4529_s13 = scalar_lea.vmem %s4987_s10, %s3461_s9  ;;  %s4991_s20 = sld [smem:[#allocation38_spill]] }
  0xa8   : > { %s4534_s22 = scalar_lea.vmem %s4988_s23, %s3461_s9  ;;  %993 = sbr.rel (%p3255_p9) target bundleno = 176 (0xb0), region = 120 }
  0xa9   : > { %s4519_s4 = scalar_lea.vmem %s4985_s3, %s3461_s9 }
  0xaa   : > { %s4539_s18 = scalar_lea.vmem %s4989_s11, %s3461_s9 }
  0xab   : > { %s4544_s0 = scalar_lea.vmem %s4990_s7, %s3461_s9 }
  0xac   : > { %s4549_s10 = scalar_lea.vmem %s4991_s20, %s3460_s6 }
  0xad   : > { %v994_v0 = vld [vmem:[%s941_s5] sm:$0xff]  ;;  %v995_v1 = vld [vmem:[%s941_s5 + $0x8] sm:$0xff]  ;;  %v996_v2 = vld [vmem:[%s941_s5 + $0x10] sm:$0xff] }
  0xae   : > { %998 = vst [vmem:[#allocation2 + $0x10] sm:$0xff] %v994_v0  ;;  %999 = vst [vmem:[#allocation2] sm:$0xff] %v995_v1  ;;  %v997_v3 = vld [vmem:[%s941_s5 + $0x18] sm:$0xff] }
  0xaf   : > { %1000 = vst [vmem:[#allocation2 + $0x18] sm:$0xff] %v996_v2  ;;  %1001 = vst [vmem:[#allocation2 + $0x8] sm:$0xff] %v997_v3 }
  0xb0 PF: > { %v3603_v10 = vld [vmem:[%s4519_s4 + $0x74] ss:$8 sps:$4 sm:$0xff]   ;;  %v3605_v11 = vld [vmem:[%s4519_s4 + $0x70] ss:$8 sps:$4 sm:$0xff]   ;;  %v3609_v14 = vld [vmem:[%s4519_s4 + $0x64] ss:$8 sps:$4 sm:$0xff]   ;;  %s4994_s23 = scalar_lea.vmem %s4924_s2, %s4502_s29 }
  0xb1   : > { %v3606_v12 = vld [vmem:[%s4524_s17 + $0x74] ss:$8 sps:$4 sm:$0xff]   ;;  %v3608_v13 = vld [vmem:[%s4524_s17 + $0x70] ss:$8 sps:$4 sm:$0xff]   ;;  %1277 = vmatprep.subr.bf16.mxu0 %v3603_v10  ;;  %v3612_v15 = vld [vmem:[%s4524_s17 + $0x64] ss:$8 sps:$4 sm:$0xff]  }
  0xb2   : > { %1524 = vmatprep.subr.bf16.mxu1 %v3606_v12  ;;  %1278 = vmatpush1.bf16.msra.mxu0 %v3605_v11  ;;  %v3611_v16 = vld [vmem:[%s4519_s4 + $0x60] ss:$8 sps:$4 sm:$0xff]   ;;  %v3615_v18 = vld [vmem:[%s4519_s4 + $0x54] ss:$8 sps:$4 sm:$0xff]   ;;  %v3617_v20 = vld [vmem:[%s4519_s4 + $0x50] ss:$8 sps:$4 sm:$0xff]  }
  0xb3   : > { %1525 = vmatpush1.bf16.msra.mxu1 %v3608_v13  ;;  %v3614_v17 = vld [vmem:[%s4524_s17 + $0x60] ss:$8 sps:$4 sm:$0xff]   ;;  %1279 = vmatprep.subr.bf16.mxu0 %v3609_v14  ;;  %v3618_v19 = vld [vmem:[%s4524_s17 + $0x54] ss:$8 sps:$4 sm:$0xff]   ;;  %v3620_v21 = vld [vmem:[%s4524_s17 + $0x50] ss:$8 sps:$4 sm:$0xff]  }
  0xb4   : > { %1526 = vmatprep.subr.bf16.mxu1 %v3612_v15  ;;  %v3621_v22 = vld [vmem:[%s4519_s4 + $0x44] ss:$8 sps:$4 sm:$0xff]   ;;  %v3623_v24 = vld [vmem:[%s4519_s4 + $0x40] ss:$8 sps:$4 sm:$0xff]   ;;  %v3627_v26 = vld [vmem:[%s4519_s4 + $0x34] ss:$8 sps:$4 sm:$0xff]  }
  0xb5   : > { %v4553_v4 = vld [vmem:[#allocation2 + $0x10] sm:$0xff]  ;;  %v4555_v5 = vld [vmem:[#allocation2] sm:$0xff]  ;;  %s4992_s1 = sld [smem:[#allocation24_spill]]  ;;  %vm4203_vm0 = vmmov 0   ;;  %vm1860_vm1 = vcmask 130048   ;;  %s4999_s28 = scalar_lea.vmem [#allocation7], %s4469_s19 }
  0xb6   : > { %v4557_v6 = vld [vmem:[#allocation2 + $0x18] sm:$0xff]  ;;  %v1008_v7 = vadd.f32 %v4555_v5, %v4553_v4  ;;  %v4561_v8 = vld [vmem:[#allocation2 + $0x8] sm:$0xff]  ;;  %1280 = vmatpush1.bf16.msra.mxu0 %v3611_v16  ;;  %s4996_s14 = sld [smem:[#allocation28_spill]]  ;;  %s5001_s11 = scalar_lea.vmem [#allocation10], %s4469_s19 }
  0xb7   : > { %v1011_v9 = vadd.f32 %v4561_v8, %v4557_v6  ;;  %1527 = vmatpush1.bf16.msra.mxu1 %v3614_v17  ;;  %1281 = vmatprep.subr.bf16.mxu0 %v3615_v18  ;;  %v3624_v23 = vld [vmem:[%s4524_s17 + $0x44] ss:$8 sps:$4 sm:$0xff]   ;;  %v3626_v25 = vld [vmem:[%s4524_s17 + $0x40] ss:$8 sps:$4 sm:$0xff]   ;;  %v3630_v27 = vld [vmem:[%s4524_s17 + $0x34] ss:$8 sps:$4 sm:$0xff]  }
  0xb8   : > { %1009 = vadd.xlane.f32.xlu0 %v1008_v7  ;;  %1528 = vmatprep.subr.bf16.mxu1 %v3618_v19  ;;  %v3629_v28 = vld [vmem:[%s4519_s4 + $0x30] ss:$8 sps:$4 sm:$0xff]   ;;  %v3633_v30 = vld [vmem:[%s4519_s4 + $0x24] ss:$8 sps:$4 sm:$0xff]   ;;  %v3635_v32 = vld [vmem:[%s4519_s4 + $0x20] ss:$8 sps:$4 sm:$0xff]  }
  0xb9   : > { %v3632_v29 = vld [vmem:[%s4524_s17 + $0x30] ss:$8 sps:$4 sm:$0xff]   ;;  %v3636_v31 = vld [vmem:[%s4524_s17 + $0x24] ss:$8 sps:$4 sm:$0xff]   ;;  %v3638_v33 = vld [vmem:[%s4524_s17 + $0x20] ss:$8 sps:$4 sm:$0xff]  }
  0xba   : > { %1282 = vmatpush1.bf16.msra.mxu0 %v3617_v20  ;;  %v3639_v34 = vld [vmem:[%s4519_s4 + $0x14] ss:$8 sps:$4 sm:$0xff]   ;;  %v3641_v36 = vld [vmem:[%s4519_s4 + $0x10] ss:$8 sps:$4 sm:$0xff]   ;;  %v3645_v38 = vld [vmem:[%s4519_s4 + $0x4] ss:$8 sps:$4 sm:$0xff]  }
  0xbb   : > { %1529 = vmatpush1.bf16.msra.mxu1 %v3620_v21  ;;  %1283 = vmatprep.subr.bf16.mxu0 %v3621_v22  ;;  %v3642_v35 = vld [vmem:[%s4524_s17 + $0x14] ss:$8 sps:$4 sm:$0xff]   ;;  %v3644_v37 = vld [vmem:[%s4524_s17 + $0x10] ss:$8 sps:$4 sm:$0xff]   ;;  %v3648_v39 = vld [vmem:[%s4524_s17 + $0x4] ss:$8 sps:$4 sm:$0xff]   ;;  %s4993_s9 = scalar_lea.vmem %s4992_s1, %s4502_s29 }
  0xbc   : > { %1012 = vadd.xlane.f32.xlu0 %v1011_v9  ;;  %1530 = vmatprep.subr.bf16.mxu1 %v3624_v23  ;;  %v3647_v40 = vld [vmem:[%s4519_s4] ss:$8 sps:$4 sm:$0xff]   ;;  %v3651_v42 = vld [vmem:[%s4519_s4 + $0xf4] ss:$8 sps:$4 sm:$0xff]   ;;  %v3653_v44 = vld [vmem:[%s4519_s4 + $0xf0] ss:$8 sps:$4 sm:$0xff]   ;;  %s4997_s8 = scalar_lea.vmem %s4996_s14, %s4502_s29 }
  0xbd   : > { %v3650_v41 = vld [vmem:[%s4524_s17] ss:$8 sps:$4 sm:$0xff]   ;;  %v3654_v43 = vld [vmem:[%s4524_s17 + $0xf4] ss:$8 sps:$4 sm:$0xff]   ;;  %v3656_v59 = vld [vmem:[%s4524_s17 + $0xf0] ss:$8 sps:$4 sm:$0xff]  }
  0xbe   : > { %1284 = vmatpush1.bf16.msra.mxu0 %v3623_v24  ;;  %v3657_v60 = vld [vmem:[%s4519_s4 + $0xe4] ss:$8 sps:$4 sm:$0xff]   ;;  %v3659_v61 = vld [vmem:[%s4519_s4 + $0xe0] ss:$8 sps:$4 sm:$0xff]   ;;  %v3663_v0 = vld [vmem:[%s4519_s4 + $0xd4] ss:$8 sps:$4 sm:$0xff]  }
  0xbf   : > { %1531 = vmatpush1.bf16.msra.mxu1 %v3626_v25  ;;  %1285 = vmatprep.subr.bf16.mxu0 %v3627_v26  ;;  %v3660_v62 = vld [vmem:[%s4524_s17 + $0xe4] ss:$8 sps:$4 sm:$0xff]   ;;  %v3662_v63 = vld [vmem:[%s4524_s17 + $0xe0] ss:$8 sps:$4 sm:$0xff]   ;;  %v3665_v1 = vld [vmem:[%s4519_s4 + $0xd0] ss:$8 sps:$4 sm:$0xff]  }
  0xc0   : > { %1532 = vmatprep.subr.bf16.mxu1 %v3630_v27  ;;  %v3666_v2 = vld [vmem:[%s4524_s17 + $0xd4] ss:$8 sps:$4 sm:$0xff]   ;;  %v3668_v3 = vld [vmem:[%s4524_s17 + $0xd0] ss:$8 sps:$4 sm:$0xff]   ;;  %v3674_v7 = vld [vmem:[%s4524_s17 + $0xc0] ss:$8 sps:$4 sm:$0xff]  }
  0xc1   : > { %v3678_v9 = vld [vmem:[%s4524_s17 + $0xb4] ss:$8 sps:$4 sm:$0xff]   ;;  %v3677_v10 = vld [vmem:[%s4519_s4 + $0xb0] ss:$8 sps:$4 sm:$0xff]   ;;  %v3681_v12 = vld [vmem:[%s4519_s4 + $0xa4] ss:$8 sps:$4 sm:$0xff]  }
  0xc2   : > { %1286 = vmatpush1.bf16.msra.mxu0 %v3629_v28  ;;  %v3680_v11 = vld [vmem:[%s4524_s17 + $0xb0] ss:$8 sps:$4 sm:$0xff]   ;;  %v3684_v13 = vld [vmem:[%s4524_s17 + $0xa4] ss:$8 sps:$4 sm:$0xff]   ;;  %v3683_v14 = vld [vmem:[%s4519_s4 + $0xa0] ss:$8 sps:$4 sm:$0xff]  }
  0xc3   : > { %1533 = vmatpush1.bf16.msra.mxu1 %v3632_v29  ;;  %1287 = vmatprep.subr.bf16.mxu0 %v3633_v30  ;;  %v3686_v15 = vld [vmem:[%s4524_s17 + $0xa0] ss:$8 sps:$4 sm:$0xff]   ;;  %v3687_v16 = vld [vmem:[%s4519_s4 + $0x94] ss:$8 sps:$4 sm:$0xff]   ;;  %v3689_v18 = vld [vmem:[%s4519_s4 + $0x90] ss:$8 sps:$4 sm:$0xff]  }
  0xc4   : > { %1534 = vmatprep.subr.bf16.mxu1 %v3636_v31  ;;  %v3690_v17 = vld [vmem:[%s4524_s17 + $0x94] ss:$8 sps:$4 sm:$0xff]   ;;  %v3692_v19 = vld [vmem:[%s4524_s17 + $0x90] ss:$8 sps:$4 sm:$0xff]   ;;  %v3693_v20 = vld [vmem:[%s4519_s4 + $0x84] ss:$8 sps:$4 sm:$0xff]   ;;  %v1042_v31 = vlaneseq }
  0xc5   : > { %v3696_v21 = vld [vmem:[%s4524_s17 + $0x84] ss:$8 sps:$4 sm:$0xff]   ;;  %v3695_v22 = vld [vmem:[%s4519_s4 + $0x80] ss:$8 sps:$4 sm:$0xff]   ;;  %v3701_v24 = vld [vmem:[%s4529_s13 + $0x74] ss:$8 sps:$4 sm:$0xff]  }
  0xc6   : > { %1288 = vmatpush1.bf16.msra.mxu0 %v3635_v32  ;;  %v3698_v23 = vld [vmem:[%s4524_s17 + $0x80] ss:$8 sps:$4 sm:$0xff]   ;;  %v1043_v32 = vshrl.u32 %v1042_v31, 7  ;;  %s4998_s29 = scalar_lea.vmem [#allocation5], %s4469_s19  ;;  %p3450_p7 = scmp.ne.s32.totalorder %s4177_s27, 1 }
  0xc7   : > { %1535 = vmatpush1.bf16.msra.mxu1 %v3638_v33  ;;  %1289 = vmatprep.subr.bf16.mxu0 %v3639_v34 }
  0xc8   : > { %1536 = vmatprep.subr.bf16.mxu1 %v3642_v35  ;;  %v4650_v33 = vsub.s32 1, %v1043_v32  ;;  %v4652_v34 = vsub.s32 0, %v1043_v32  ;;  %v1006_v35 = vld [vmem:[%s4993_s9] sm:$0x3] }
  0xca   : > { %1290 = vmatpush1.bf16.msra.mxu0 %v3641_v36 }
  0xcb   : > { %1537 = vmatpush1.bf16.msra.mxu1 %v3644_v37  ;;  %1291 = vmatprep.subr.bf16.mxu0 %v3645_v38  ;;  %v1007_v37 = vld [vmem:[%s4994_s23] sm:$0x3] }
  0xcc   : > { %1538 = vmatprep.subr.bf16.mxu1 %v3648_v39  ;;  %v1049_v39 = vrot.slane %v1006_v35, %v4650_v33 }
  0xce   : > { %1292 = vmatpush1.bf16.msra.mxu0 %v3647_v40 }
  0xcf   : > { %1539 = vmatpush1.bf16.msra.mxu1 %v3650_v41  ;;  %1293 = vmatprep.subr.bf16.mxu0 %v3651_v42  ;;  %v1045_v41 = vrot.slane %v1006_v35, %v4652_v34  ;;  %v1105_v35 = vld [vmem:[%s4997_s8] sm:$0x3] }
  0xd0   : > { %1540 = vmatprep.subr.bf16.mxu1 %v3654_v43  ;;  %v1064_v43 = vrot.slane %v1007_v37, %v4650_v33 }
  0xd2   : > { %1294 = vmatpush2.bf16.msra.mxu0 %v3653_v44  ;;  %v1060_v44 = vrot.slane %v1007_v37, %v4652_v34 }
  0xd3   : > { %1541 = vmatpush2.bf16.msra.mxu1 %v3656_v59  ;;  %1295 = vmatprep.subr.bf16.mxu0 %v3657_v60  ;;  %v3707_v60 = vld [vmem:[%s4529_s13 + $0x54] ss:$8 sps:$4 sm:$0xff]  }
  0xd4   : > { %1542 = vmatprep.subr.bf16.mxu1 %v3660_v62  ;;  %v3710_v62 = vld [vmem:[%s4529_s13 + $0x44] ss:$8 sps:$4 sm:$0xff]  }
  0xd6   : > { %1296 = vmatpush2.bf16.msra.mxu0 %v3659_v61  ;;  %v3705_v61 = vld [vmem:[%s4529_s13 + $0x50] ss:$8 sps:$4 sm:$0xff]  }
  0xd7   : > { %1543 = vmatpush2.bf16.msra.mxu1 %v3662_v63  ;;  %1297 = vmatprep.subr.bf16.mxu0 %v3663_v0  ;;  %v3708_v63 = vld [vmem:[%s4529_s13 + $0x40] ss:$8 sps:$4 sm:$0xff]   ;;  %v3713_v0 = vld [vmem:[%s4529_s13 + $0x34] ss:$8 sps:$4 sm:$0xff]  }
  0xd8   : > { %1544 = vmatprep.subr.bf16.mxu1 %v3666_v2  ;;  %v3716_v2 = vld [vmem:[%s4529_s13 + $0x24] ss:$8 sps:$4 sm:$0xff]  }
  0xda   : > { %1298 = vmatpush2.bf16.msra.mxu0 %v3665_v1  ;;  %v3711_v1 = vld [vmem:[%s4529_s13 + $0x30] ss:$8 sps:$4 sm:$0xff]  }
  0xdb   : > { %1545 = vmatpush2.bf16.msra.mxu1 %v3668_v3  ;;  %v3714_v3 = vld [vmem:[%s4529_s13 + $0x20] ss:$8 sps:$4 sm:$0xff]  }
 0x141   : > { %v1010_v45 = vpop.xlane.xlu0 %1009 }
 0x142   : > { %v1015_v46 = vmul.f32 0.00390625, %v1010_v45 }
 0x144   : > { %v4601_v47 = vsub.f32 %v4553_v4, %v1015_v46  ;;  %v4604_v48 = vsub.f32 %v4555_v5, %v1015_v46  ;;  %v3669_v4 = vld [vmem:[%s4519_s4 + $0xc4] ss:$8 sps:$4 sm:$0xff]   ;;  %v3671_v5 = vld [vmem:[%s4519_s4 + $0xc0] ss:$8 sps:$4 sm:$0xff]  }
 0x145   : > { %v1013_v49 = vpop.xlane.xlu0 %1012  ;;  %1299 = vmatprep.subr.bf16.mxu0 %v3669_v4  ;;  %v3719_v4 = vld [vmem:[%s4529_s13 + $0x14] ss:$8 sps:$4 sm:$0xff]  }
 0x146   : > { %v1016_v50 = vmul.f32 0.00390625, %v1013_v49  ;;  %v1021_v51 = vmul.f32 %v4601_v47, %v4601_v47  ;;  %v1022_v52 = vmul.f32 %v4604_v48, %v4604_v48  ;;  %1300 = vmatpush2.bf16.msra.mxu0 %v3671_v5  ;;  %v3717_v5 = vld [vmem:[%s4529_s13 + $0x10] ss:$8 sps:$4 sm:$0xff]  }
 0x148   : > { %v4611_v53 = vsub.f32 %v4557_v6, %v1016_v50  ;;  %v4614_v54 = vsub.f32 %v4561_v8, %v1016_v50  ;;  %v1025_v55 = vadd.f32 %v1022_v52, %v1021_v51  ;;  %v3672_v6 = vld [vmem:[%s4524_s17 + $0xc4] ss:$8 sps:$4 sm:$0xff]   ;;  %v3675_v8 = vld [vmem:[%s4519_s4 + $0xb4] ss:$8 sps:$4 sm:$0xff]   ;;  %s4995_s17 = scalar_lea.vmem [#allocation3], %s4469_s19 }
 0x149   : > { %1546 = vmatprep.subr.bf16.mxu1 %v3672_v6  ;;  %1301 = vmatprep.subr.bf16.mxu0 %v3675_v8  ;;  %v3722_v6 = vld [vmem:[%s4529_s13 + $0x4] ss:$8 sps:$4 sm:$0xff]   ;;  %v3725_v8 = vld [vmem:[%s4529_s13 + $0xf4] ss:$8 sps:$4 sm:$0xff]  }
 0x14a   : > { %1026 = vadd.xlane.f32.xlu1 %v1025_v55  ;;  %v1023_v56 = vmul.f32 %v4611_v53, %v4611_v53  ;;  %v1024_v57 = vmul.f32 %v4614_v54, %v4614_v54  ;;  %1547 = vmatpush2.bf16.msra.mxu1 %v3674_v7  ;;  %v3720_v7 = vld [vmem:[%s4529_s13] ss:$8 sps:$4 sm:$0xff]  }
 0x14b   : > { %1548 = vmatprep.subr.bf16.mxu1 %v3678_v9  ;;  %1302 = vmatpush2.bf16.msra.mxu0 %v3677_v10  ;;  %v3723_v9 = vld [vmem:[%s4529_s13 + $0xf0] ss:$8 sps:$4 sm:$0xff]   ;;  %v3728_v10 = vld [vmem:[%s4529_s13 + $0xe4] ss:$8 sps:$4 sm:$0xff]  }
 0x14c   : > { %v1028_v58 = vadd.f32 %v1024_v57, %v1023_v56  ;;  %1303 = vmatprep.subr.bf16.mxu0 %v3681_v12  ;;  %v3731_v12 = vld [vmem:[%s4529_s13 + $0xd4] ss:$8 sps:$4 sm:$0xff]  }
 0x14e   : > { %1029 = vadd.xlane.f32.xlu1 %v1028_v58  ;;  %1549 = vmatpush2.bf16.msra.mxu1 %v3680_v11  ;;  %v3699_v58 = vld [vmem:[%s4529_s13 + $0x70] ss:$8 sps:$4 sm:$0xff]   ;;  %v3726_v11 = vld [vmem:[%s4529_s13 + $0xe0] ss:$8 sps:$4 sm:$0xff]  }
 0x14f   : > { %1550 = vmatprep.subr.bf16.mxu1 %v3684_v13  ;;  %1304 = vmatpush2.bf16.msra.mxu0 %v3683_v14  ;;  %v3729_v13 = vld [vmem:[%s4529_s13 + $0xd0] ss:$8 sps:$4 sm:$0xff]   ;;  %v3734_v14 = vld [vmem:[%s4529_s13 + $0xc4] ss:$8 sps:$4 sm:$0xff]  }
 0x150   : > { %1305 = vmatprep.subr.bf16.mxu0 %v3687_v16  ;;  %v3737_v16 = vld [vmem:[%s4529_s13 + $0xb4] ss:$8 sps:$4 sm:$0xff]  }
 0x152   : > { %1551 = vmatpush2.bf16.msra.mxu1 %v3686_v15  ;;  %v3732_v15 = vld [vmem:[%s4529_s13 + $0xc0] ss:$8 sps:$4 sm:$0xff]  }
 0x153   : > { %1552 = vmatprep.subr.bf16.mxu1 %v3690_v17  ;;  %1306 = vmatpush2.bf16.msra.mxu0 %v3689_v18  ;;  %v3735_v17 = vld [vmem:[%s4529_s13 + $0xb0] ss:$8 sps:$4 sm:$0xff]   ;;  %v3740_v18 = vld [vmem:[%s4529_s13 + $0xa4] ss:$8 sps:$4 sm:$0xff]  }
 0x154   : > { %1307 = vmatprep.subr.bf16.mxu0 %v3693_v20  ;;  %v3743_v20 = vld [vmem:[%s4529_s13 + $0x94] ss:$8 sps:$4 sm:$0xff]  }
 0x156   : > { %1553 = vmatpush2.bf16.msra.mxu1 %v3692_v19  ;;  %v3738_v19 = vld [vmem:[%s4529_s13 + $0xa0] ss:$8 sps:$4 sm:$0xff]  }
 0x157   : > { %1554 = vmatprep.subr.bf16.mxu1 %v3696_v21  ;;  %1308 = vmatpush2.bf16.msra.mxu0 %v3695_v22  ;;  %v3741_v21 = vld [vmem:[%s4529_s13 + $0x90] ss:$8 sps:$4 sm:$0xff]   ;;  %v3746_v22 = vld [vmem:[%s4529_s13 + $0x84] ss:$8 sps:$4 sm:$0xff]  }
 0x158   : > { %1771 = vmatprep.subr.bf16.mxu0 %v3701_v24  ;;  %v4202_v24 = vmov 0.0  }
 0x15a   : > { %1555 = vmatpush2.bf16.msra.mxu1 %v3698_v23  ;;  %v3744_v23 = vld [vmem:[%s4529_s13 + $0x80] ss:$8 sps:$4 sm:$0xff]  }
 0x15b   : > { %3488 = vmatprep.subr.bf16.mxu1 %v4202_v24 }
 0x1d3   : > { %v1027_v25 = vpop.xlane.xlu1 %1026 }
 0x1d4   : > { %v1031_v26 = vmul.f32 0.00390625, %v1027_v25  ;;  %v1352_v25 = vld [vmem:[%s4995_s17] sm:$0x3] }
 0x1d5   : > { %v1361_v31 = vrot.slane %v1352_v25, %v4650_v33 }
 0x1d6   : > { %v1033_v27 = vadd.f32 1e-05, %v1031_v26 }
 0x1d7   : > { %v1030_v28 = vpop.xlane.xlu1 %1029 }
 0x1d8   : > { %3891 = vrsqrt.f32 %v1033_v27  ;;  %v1032_v29 = vmul.f32 0.00390625, %v1030_v28  ;;  %v1357_v28 = vrot.slane %v1352_v25, %v4652_v34 }
 0x1da   : > { %v1034_v30 = vadd.f32 1e-05, %v1032_v29 }
 0x1dc   : > { %3893 = vrsqrt.f32 %v1034_v30 }
 0x1e5   : > { %v3892_v36 = vpop.eup %3891 }
 0x1e6   : > { %v1038_v38 = vmul.f32 %v3892_v36, %v4604_v48  ;;  %v1037_v40 = vmul.f32 %v3892_v36, %v4601_v47 }
 0x1e8   : > { %v1053_v46 = vmul.f32 %v1049_v39, %v1038_v38  ;;  %v1052_v50 = vmul.f32 %v1045_v41, %v1037_v40 }
 0x1e9   : > { %v3894_v42 = vpop.eup %3893 }
 0x1ea   : > { %v1040_v45 = vmul.f32 %v3894_v42, %v4614_v54  ;;  %v1039_v49 = vmul.f32 %v3894_v42, %v4611_v53  ;;  %v1068_v52 = vadd.f32 %v1064_v43, %v1053_v46  ;;  %v1067_v55 = vadd.f32 %v1060_v44, %v1052_v50  ;;  %v3704_v54 = vld [vmem:[%s4529_s13 + $0x64] ss:$8 sps:$4 sm:$0xff]   ;;  %v3702_v53 = vld [vmem:[%s4529_s13 + $0x60] ss:$8 sps:$4 sm:$0xff]  }
 0x1eb   : > { %v1114_v46 = vrot.slane %v1105_v35, %v4650_v33 }
 0x1ec   : > { %v1055_v48 = vmul.f32 %v1049_v39, %v1040_v45  ;;  %v1054_v51 = vmul.f32 %v1045_v41, %v1039_v49 }
 0x1ee   : > { %v1070_v47 = vadd.f32 %v1064_v43, %v1055_v48  ;;  %v1069_v56 = vadd.f32 %v1060_v44, %v1054_v51  ;;  %v1110_v43 = vrot.slane %v1105_v35, %v4652_v34 }
 0x1f0   : > { %v1072_v57 = vpack.c.bf16 %v1070_v47, %v1068_v52  ;;  %v4673_v59 = vpack.c.bf16 %v1069_v56, %v1067_v55  ;;  %v1599_v55 = vld [vmem:[%s4998_s29] sm:$0x3] }
 0x1f2   : > { %1309 = vmatprep.mubr.bf16.mxu0 %v1072_v57  ;;  %1556 = vmatprep.mubr.bf16.mxu1 %v1072_v57 }
 0x1f3   : > { %1310 = vmatmul.mubr.bf16.vlgmr.msra.gmra.mxu0 %v4673_v59  ;;  %1557 = vmatmul.mubr.bf16.vlgmr.msra.gmra.mxu1 %v4673_v59 }
 0x1f4   : > { %1772 = vmatpush1.bf16.msra.mxu0 %v3699_v58  ;;  %1803 = vmatprep.mubr.bf16.mxu0 %v1072_v57  ;;  %v1604_v57 = vrot.slane %v1599_v55, %v4652_v34 }
 0x1f5   : > { %1773 = vmatprep.subr.bf16.mxu0 %v3704_v54  ;;  %3490 = vmatprep.mubr.msk.bf16.mxu1 %vm4203_vm0, %v4202_v24 }
 0x1f8   : > { %1774 = vmatpush1.bf16.msra.mxu0 %v3702_v53 }
 0x1f9   : > { %1775 = vmatprep.subr.bf16.mxu0 %v3707_v60 }
 0x1fc   : > { %1776 = vmatpush1.bf16.msra.mxu0 %v3705_v61 }
 0x1fd   : > { %1777 = vmatprep.subr.bf16.mxu0 %v3710_v62 }
 0x200   : > { %1778 = vmatpush1.bf16.msra.mxu0 %v3708_v63 }
 0x201   : > { %1779 = vmatprep.subr.bf16.mxu0 %v3713_v0 }
 0x204   : > { %1780 = vmatpush1.bf16.msra.mxu0 %v3711_v1 }
 0x205   : > { %1781 = vmatprep.subr.bf16.mxu0 %v3716_v2 }
 0x208   : > { %1782 = vmatpush1.bf16.msra.mxu0 %v3714_v3 }
 0x209   : > { %1783 = vmatprep.subr.bf16.mxu0 %v3719_v4 }
 0x20c   : > { %1784 = vmatpush1.bf16.msra.mxu0 %v3717_v5 }
 0x20d   : > { %1785 = vmatprep.subr.bf16.mxu0 %v3722_v6 }
 0x210   : > { %1786 = vmatpush1.bf16.msra.mxu0 %v3720_v7 }
 0x211   : > { %1787 = vmatprep.subr.bf16.mxu0 %v3725_v8 }
 0x214   : > { %1788 = vmatpush2.bf16.msra.mxu0 %v3723_v9 }
 0x215   : > { %1789 = vmatprep.subr.bf16.mxu0 %v3728_v10 }
 0x218   : > { %1790 = vmatpush2.bf16.msra.mxu0 %v3726_v11 }
 0x219   : > { %1791 = vmatprep.subr.bf16.mxu0 %v3731_v12 }
 0x21c   : > { %1792 = vmatpush2.bf16.msra.mxu0 %v3729_v13 }
 0x21d   : > { %1793 = vmatprep.subr.bf16.mxu0 %v3734_v14 }
 0x220   : > { %1794 = vmatpush2.bf16.msra.mxu0 %v3732_v15 }
 0x221   : > { %1795 = vmatprep.subr.bf16.mxu0 %v3737_v16 }
 0x224   : > { %1796 = vmatpush2.bf16.msra.mxu0 %v3735_v17 }
 0x225   : > { %1797 = vmatprep.subr.bf16.mxu0 %v3740_v18 }
 0x228   : > { %1798 = vmatpush2.bf16.msra.mxu0 %v3738_v19 }
 0x229   : > { %1799 = vmatprep.subr.bf16.mxu0 %v3743_v20 }
 0x22c   : > { %1800 = vmatpush2.bf16.msra.mxu0 %v3741_v21 }
 0x22d   : > { %1801 = vmatprep.subr.bf16.mxu0 %v3746_v22 }
 0x230   : > { %1802 = vmatpush2.bf16.msra.mxu0 %v3744_v23 }
 0x231   : > { %3476 = vmatprep.subr.bf16.mxu0 %v4202_v24 }
 0x233   : > { %1804 = vmatmul.mubr.bf16.vlgmr.msra.gmra.mxu0 %v4673_v59  ;;  %v1608_v59 = vrot.slane %v1599_v55, %v4650_v33 }
 0x234   : > { %3478 = vmatprep.mubr.msk.bf16.mxu0 %vm4203_vm0, %v4202_v24 }
 0x2b3   : > { %v1311_v26 = vpop.f32.mrf.mxu0  ;;  %v1558_v27 = vpop.f32.mrf.mxu1 }
 0x2b4   : > { %v1559_v36 = vadd.f32 %v1558_v27, %v1357_v28  ;;  %v1312_v50 = vadd.f32 %v1311_v26, %v1110_v43 }
 0x2b5   : > { %v1313_v29 = vpop.f32.mrf.mxu0  ;;  %v1560_v30 = vpop.f32.mrf.mxu1 }
 0x2b6   : > { %v1561_v40 = vadd.f32 %v1560_v30, %v1361_v31  ;;  %v1314_v51 = vadd.f32 %v1313_v29, %v1114_v46 }
 0x2b7   : > { %v1562_v32 = vpop.f32.mrf.mxu1  ;;  %v1315_v37 = vpop.f32.mrf.mxu0 }
 0x2b8   : > { %v1563_v38 = vadd.f32 %v1562_v32, %v1357_v28  ;;  %v1316_v49 = vadd.f32 %v1315_v37, %v1110_v43 }
 0x2b9   : > { %v1564_v39 = vpop.f32.mrf.mxu1  ;;  %v1317_v44 = vpop.f32.mrf.mxu0 }
 0x2ba   : > { %v1815_v41 = vpack.c.bf16 %v1563_v38, %v1559_v36  ;;  %v1565_v42 = vadd.f32 %v1564_v39, %v1361_v31  ;;  %v1318_v48 = vadd.f32 %v1317_v44, %v1114_v46  ;;  %v1814_v52 = vpack.c.bf16 %v1316_v49, %v1312_v50 }
 0x2bc   : > { %v1929_v45 = vpack.c.bf16 %v1565_v42, %v1561_v40  ;;  %3477 = vmatpush3.bf16.xpose.msra.mxu0 %v1815_v41  ;;  %v1928_v47 = vpack.c.bf16 %v1318_v48, %v1314_v51  ;;  %v3749_v40 = vld [vmem:[%s4534_s22 + $0x74] ss:$8 sps:$4 sm:$0xff]   ;;  %v3747_v51 = vld [vmem:[%s4534_s22 + $0x70] ss:$8 sps:$4 sm:$0xff]  }
 0x2bd   : > { %3482 = vmatprep.subr.bf16.mxu0 %v4202_v24 }
 0x2be   : > { %3489 = vmatpush3.bf16.xpose.msra.mxu1 %v1929_v45 }
 0x2bf   : > { %3494 = vmatprep.subr.bf16.mxu1 %v4202_v24 }
 0x2c3   : > { %3479 = vmatmul.mubr.bf16.vlgmr.msra.gmra.mxu0 %v1814_v52 }
 0x2c4   : > { %3484 = vmatprep.mubr.msk.bf16.mxu0 %vm4203_vm0, %v4202_v24 }
 0x2c5   : > { %3491 = vmatmul.mubr.bf16.vlgmr.msra.gmra.mxu1 %v1928_v47  ;;  %v3752_v47 = vld [vmem:[%s4534_s22 + $0x64] ss:$8 sps:$4 sm:$0xff]  }
 0x2c6   : > { %3496 = vmatprep.mubr.msk.bf16.mxu1 %vm4203_vm0, %v4202_v24 }
 0x2f3   : > { %v1805_v56 = vpop.f32.mrf.mxu0 }
 0x2f4   : > { %v1806_v53 = vadd.f32 %v1805_v56, %v1604_v57 }
 0x2f5   : > { %v1807_v58 = vpop.f32.mrf.mxu0 }
 0x2f6   : > { %v1808_v62 = vadd.f32 %v1807_v58, %v1608_v59  ;;  %v3750_v58 = vld [vmem:[%s4534_s22 + $0x60] ss:$8 sps:$4 sm:$0xff]  }
 0x2f7   : > { %v1809_v54 = vpop.f32.mrf.mxu0 }
 0x2f8   : > { %v1810_v60 = vadd.f32 %v1809_v54, %v1604_v57  ;;  %v3755_v54 = vld [vmem:[%s4534_s22 + $0x54] ss:$8 sps:$4 sm:$0xff]  }
 0x2f9   : > { %v1811_v61 = vpop.f32.mrf.mxu0 }
 0x2fa   : > { %v1816_v63 = vpack.c.bf16 %v1810_v60, %v1806_v53  ;;  %v1812_v0 = vadd.f32 %v1811_v61, %v1608_v59  ;;  %v3753_v53 = vld [vmem:[%s4534_s22 + $0x50] ss:$8 sps:$4 sm:$0xff]   ;;  %v3758_v60 = vld [vmem:[%s4534_s22 + $0x44] ss:$8 sps:$4 sm:$0xff]   ;;  %v3756_v61 = vld [vmem:[%s4534_s22 + $0x40] ss:$8 sps:$4 sm:$0xff]  }
 0x2fc   : > { %v1930_v1 = vpack.c.bf16 %v1812_v0, %v1808_v62  ;;  %3483 = vmatpush3.bf16.msra.mxu0 %v1816_v63  ;;  %v3761_v62 = vld [vmem:[%s4534_s22 + $0x34] ss:$8 sps:$4 sm:$0xff]   ;;  %v3759_v63 = vld [vmem:[%s4534_s22 + $0x30] ss:$8 sps:$4 sm:$0xff]   ;;  %v3764_v0 = vld [vmem:[%s4534_s22 + $0x24] ss:$8 sps:$4 sm:$0xff]  }
 0x2fe   : > { %3495 = vmatpush3.bf16.msra.mxu1 %v1930_v1  ;;  %v3762_v1 = vld [vmem:[%s4534_s22 + $0x20] ss:$8 sps:$4 sm:$0xff]  }
 0x2ff   : > { %2247 = vmatprep.subr.bf16.mxu1 %v3749_v40 }
 0x383   : > { %v1851_v2 = vpop.f32.mrf.mxu0 }
 0x384   : > { %v1858_v8 = vmul.f32 0.088388346, %v1851_v2  ;;  %v3767_v2 = vld [vmem:[%s4534_s22 + $0x14] ss:$8 sps:$4 sm:$0xff]  }
 0x385   : > { %v3480_v3 = vpop.f32.mrf.mxu0  ;;  %v1965_v4 = vpop.f32.mrf.mxu1 }
 0x386   : > { %v1972_v5 = vmul.f32 0.088388346, %v1965_v4  ;;  %v1861_v16 = vsel %vm1860_vm1, %v1858_v8, -inf  ;;  %v3765_v3 = vld [vmem:[%s4534_s22 + $0x10] ss:$8 sps:$4 sm:$0xff]  }
 0x387   : > { %v1854_v6 = vpop.f32.mrf.mxu0  ;;  %v3492_v7 = vpop.f32.mrf.mxu1  ;;  %v3770_v4 = vld [vmem:[%s4534_s22 + $0x4] ss:$8 sps:$4 sm:$0xff]  }
 0x388   : > { %v1974_v9 = vsel %vm1860_vm1, %v1972_v5, -inf  ;;  %v1859_v14 = vmul.f32 0.088388346, %v1854_v6  ;;  %v3773_v6 = vld [vmem:[%s4534_s22 + $0xf4] ss:$8 sps:$4 sm:$0xff]  }
 0x389   : > { %1975 = vmax.xlane.f32.xlu0 %v1974_v9  ;;  %v3481_v10 = vpop.f32.mrf.mxu0  ;;  %v1968_v11 = vpop.f32.mrf.mxu1  ;;  %v3771_v7 = vld [vmem:[%s4534_s22 + $0xf0] ss:$8 sps:$4 sm:$0xff]   ;;  %v3774_v9 = vld [vmem:[%s4534_s22 + $0xe0] ss:$8 sps:$4 sm:$0xff]  }
 0x38a   : > { %v1973_v12 = vmul.f32 0.088388346, %v1968_v11  ;;  %v1864_v17 = vsel %vm1860_vm1, %v1859_v14, -inf  ;;  %v3779_v10 = vld [vmem:[%s4534_s22 + $0xd4] ss:$8 sps:$4 sm:$0xff]  }
 0x38b   : > { %v3493_v13 = vpop.f32.mrf.mxu1  ;;  %v3777_v11 = vld [vmem:[%s4534_s22 + $0xd0] ss:$8 sps:$4 sm:$0xff]  }
 0x38c   : > { %v1977_v15 = vsel %vm1860_vm1, %v1973_v12, -inf  ;;  %v3780_v13 = vld [vmem:[%s4534_s22 + $0xc0] ss:$8 sps:$4 sm:$0xff]  }
 0x38d   : > { %1978 = vmax.xlane.f32.xlu1 %v1977_v15  ;;  %1862 = vmax.xlane.f32.xlu0 %v1861_v16  ;;  %v3783_v15 = vld [vmem:[%s4534_s22 + $0xb0] ss:$8 sps:$4 sm:$0xff]   ;;  %v3788_v16 = vld [vmem:[%s4534_s22 + $0xa4] ss:$8 sps:$4 sm:$0xff]  }
 0x391   : > { %1865 = vmax.xlane.f32.xlu1 %v1864_v17  ;;  %v3786_v17 = vld [vmem:[%s4534_s22 + $0xa0] ss:$8 sps:$4 sm:$0xff]  }
 0x412   : > { %v1976_v18 = vpop.xlane.xlu0 %1975 }
 0x413   : > { %v1980_v19 = vsub.f32 %v1972_v5, %v1976_v18  ;;  %v3768_v5 = vld [vmem:[%s4534_s22] ss:$8 sps:$4 sm:$0xff]   ;;  %v3789_v18 = vld [vmem:[%s4534_s22 + $0x90] ss:$8 sps:$4 sm:$0xff]  }
 0x415   : > { %v1982_v20 = vmul.f32 1.442695, %v1980_v19  ;;  %v3791_v19 = vld [vmem:[%s4534_s22 + $0x94] ss:$8 sps:$4 sm:$0xff]  }
 0x416   : > { %v1979_v21 = vpop.xlane.xlu1 %1978  ;;  %v1863_v22 = vpop.xlane.xlu0 %1862 }
 0x417   : > { %3895 = vpow2.f32 %v1982_v20  ;;  %v1981_v23 = vsub.f32 %v1973_v12, %v1979_v21  ;;  %v1867_v24 = vsub.f32 %v1858_v8, %v1863_v22  ;;  %v3776_v8 = vld [vmem:[%s4534_s22 + $0xe4] ss:$8 sps:$4 sm:$0xff]   ;;  %v3792_v20 = vld [vmem:[%s4534_s22 + $0x80] ss:$8 sps:$4 sm:$0xff]  }
 0x418   : > { %v3782_v12 = vld [vmem:[%s4534_s22 + $0xc4] ss:$8 sps:$4 sm:$0xff]  }
 0x419   : > { %v1984_v25 = vmul.f32 1.442695, %v1981_v23  ;;  %v1869_v26 = vmul.f32 1.442695, %v1867_v24  ;;  %v3794_v21 = vld [vmem:[%s4534_s22 + $0x84] ss:$8 sps:$4 sm:$0xff]  }
 0x41a   : > { %v1866_v27 = vpop.xlane.xlu1 %1865 }
 0x41b   : > { %3897 = vpow2.f32 %v1984_v25  ;;  %v1868_v28 = vsub.f32 %v1859_v14, %v1866_v27  ;;  %v3785_v14 = vld [vmem:[%s4534_s22 + $0xb4] ss:$8 sps:$4 sm:$0xff]   ;;  %s5000_s22 = scalar_lea.vmem [#allocation8], %s4469_s19 }
 0x41c   : > { %3899 = vpow2.f32 %v1869_v26 }
 0x41d   : > { %v1871_v29 = vmul.f32 1.442695, %v1868_v28 }
 0x41f   : > { %3901 = vpow2.f32 %v1871_v29 }
 0x424   : > { %v3896_v30 = vpop.eup %3895 }
 0x425   : > { %v1986_v31 = vsel %vm1860_vm1, %v3896_v30, 0.0 }
 0x426   : > { %1987 = vadd.xlane.f32.xlu0 %v1986_v31 }
 0x428   : > { %v3898_v32 = vpop.eup %3897 }
 0x429   : > { %v3900_v35 = vpop.eup %3899  ;;  %v1989_v36 = vsel %vm1860_vm1, %v3898_v32, 0.0 }
 0x42a   : > { %v1873_v37 = vsel %vm1860_vm1, %v3900_v35, 0.0  ;;  %1990 = vadd.xlane.f32.xlu1 %v1989_v36 }
 0x42b   : > { %1874 = vadd.xlane.f32.xlu0 %v1873_v37 }
 0x42c   : > { %v3902_v38 = vpop.eup %3901 }
 0x42d   : > { %v1876_v39 = vsel %vm1860_vm1, %v3902_v38, 0.0 }
 0x42e   : > { %1877 = vadd.xlane.f32.xlu1 %v1876_v39 }
 0x4af   : > { %v1988_v41 = vpop.xlane.xlu0 %1987 }
 0x4b0   : > { %3903 = vrcp.f32 %v1988_v41 }
 0x4b3   : > { %v1991_v42 = vpop.xlane.xlu1 %1990 }
 0x4b4   : > { %v1875_v43 = vpop.xlane.xlu0 %1874  ;;  %3905 = vrcp.f32 %v1991_v42  ;;  %v3915_v42 = vld [vmem:[#allocation2 + $0x10] sm:$0xff] }
 0x4b5   : > { %3907 = vrcp.f32 %v1875_v43 }
 0x4b7   : > { %v1878_v44 = vpop.xlane.xlu1 %1877 }
 0x4b8   : > { %3909 = vrcp.f32 %v1878_v44  ;;  %v3916_v44 = vld [vmem:[#allocation2] sm:$0xff] }
 0x4bd   : > { %v3904_v45 = vpop.eup %3903 }
 0x4be   : > { %v1994_v49 = vmul.f32 %v3904_v45, %v3896_v30 }
 0x4c1   : > { %v3906_v46 = vpop.eup %3905 }
 0x4c2   : > { %v1995_v50 = vmul.f32 %v3906_v46, %v3898_v32  ;;  %v3908_v48 = vpop.eup %3907  ;;  %v2075_v32 = vld [vmem:[%s4999_s28] sm:$0x3] }
 0x4c3   : > { %v1881_v56 = vmul.f32 %v3908_v48, %v3900_v35  ;;  %v2080_v35 = vrot.slane %v2075_v32, %v4652_v34  ;;  %v2084_v36 = vrot.slane %v2075_v32, %v4650_v33  ;;  %v3834_v32 = vld [vmem:[%s4539_s18 + $0xa0] ss:$8 sps:$4 sm:$0xff]  }
 0x4c4   : > { %v1996_v52 = vpack.c.bf16 %v1995_v50, %v1994_v49 }
 0x4c5   : > { %v3910_v55 = vpop.eup %3909 }
 0x4c6   : > { %3497 = vmatmul.mubr.msk.bf16.vlgmr.msra.gmra.mxu1 %vm1860_vm1, %v1996_v52  ;;  %v1882_v57 = vmul.f32 %v3910_v55, %v3902_v38 }
 0x4c7   : > { %2248 = vmatpush1.bf16.msra.mxu1 %v3747_v51  ;;  %v3917_v51 = vld [vmem:[#allocation2 + $0x18] sm:$0xff] }
 0x4c8   : > { %v1883_v59 = vpack.c.bf16 %v1882_v57, %v1881_v56  ;;  %2249 = vmatprep.subr.bf16.mxu1 %v3752_v47  ;;  %v3918_v47 = vld [vmem:[#allocation2 + $0x8] sm:$0xff]  ;;  %v3795_v57 = vld [vmem:[%s4539_s18 + $0x70] ss:$8 sps:$4 sm:$0xff]  }
 0x4ca   : > { %3485 = vmatmul.mubr.msk.bf16.vlgmr.msra.gmra.mxu0 %vm1860_vm1, %v1883_v59  ;;  %v3800_v59 = vld [vmem:[%s4539_s18 + $0x64] ss:$8 sps:$4 sm:$0xff]  }
 0x4cb   : > { %2250 = vmatpush1.bf16.msra.mxu1 %v3750_v58  ;;  %v3797_v58 = vld [vmem:[%s4539_s18 + $0x74] ss:$8 sps:$4 sm:$0xff]  }
 0x4cc   : > { %2251 = vmatprep.subr.bf16.mxu1 %v3755_v54  ;;  %2564 = vmatprep.subr.bf16.mxu0 %v3797_v58  ;;  %v3798_v54 = vld [vmem:[%s4539_s18 + $0x60] ss:$8 sps:$4 sm:$0xff]   ;;  %v3861_v58 = vld [vmem:[%s4544_s0 + $0x10] ss:$8 sps:$4 sm:$0xff]  }
 0x4cd   : > { %2565 = vmatpush1.bf16.msra.mxu0 %v3795_v57  ;;  %v3863_v57 = vld [vmem:[%s4544_s0 + $0x14] ss:$8 sps:$4 sm:$0xff]  }
 0x4ce   : > { %2566 = vmatprep.subr.bf16.mxu0 %v3800_v59  ;;  %v3866_v59 = vld [vmem:[%s4544_s0 + $0x4] ss:$8 sps:$4 sm:$0xff]  }
 0x4cf   : > { %2252 = vmatpush1.bf16.msra.mxu1 %v3753_v53  ;;  %v3803_v53 = vld [vmem:[%s4539_s18 + $0x54] ss:$8 sps:$4 sm:$0xff]  }
 0x4d0   : > { %2253 = vmatprep.subr.bf16.mxu1 %v3758_v60  ;;  %v3801_v60 = vld [vmem:[%s4539_s18 + $0x50] ss:$8 sps:$4 sm:$0xff]  }
 0x4d1   : > { %2567 = vmatpush1.bf16.msra.mxu0 %v3798_v54  ;;  %v3864_v54 = vld [vmem:[%s4544_s0] ss:$8 sps:$4 sm:$0xff]  }
 0x4d2   : > { %2568 = vmatprep.subr.bf16.mxu0 %v3803_v53  ;;  %v3869_v53 = vld [vmem:[%s4544_s0 + $0xf4] ss:$8 sps:$4 sm:$0xff]  }
 0x4d3   : > { %2254 = vmatpush1.bf16.msra.mxu1 %v3756_v61  ;;  %v3806_v61 = vld [vmem:[%s4539_s18 + $0x44] ss:$8 sps:$4 sm:$0xff]  }
 0x4d4   : > { %2255 = vmatprep.subr.bf16.mxu1 %v3761_v62  ;;  %v3804_v62 = vld [vmem:[%s4539_s18 + $0x40] ss:$8 sps:$4 sm:$0xff]  }
 0x4d5   : > { %2569 = vmatpush1.bf16.msra.mxu0 %v3801_v60  ;;  %v3867_v60 = vld [vmem:[%s4544_s0 + $0xf0] ss:$8 sps:$4 sm:$0xff]  }
 0x4d6   : > { %2570 = vmatprep.subr.bf16.mxu0 %v3806_v61  ;;  %v3872_v61 = vld [vmem:[%s4544_s0 + $0xe4] ss:$8 sps:$4 sm:$0xff]  }
 0x4d7   : > { %2256 = vmatpush1.bf16.msra.mxu1 %v3759_v63  ;;  %v3809_v63 = vld [vmem:[%s4539_s18 + $0x34] ss:$8 sps:$4 sm:$0xff]  }
 0x4d8   : > { %2257 = vmatprep.subr.bf16.mxu1 %v3764_v0  ;;  %v3807_v0 = vld [vmem:[%s4539_s18 + $0x30] ss:$8 sps:$4 sm:$0xff]  }
 0x4d9   : > { %2571 = vmatpush1.bf16.msra.mxu0 %v3804_v62  ;;  %v3870_v62 = vld [vmem:[%s4544_s0 + $0xe0] ss:$8 sps:$4 sm:$0xff]  }
 0x4da   : > { %2572 = vmatprep.subr.bf16.mxu0 %v3809_v63  ;;  %v3875_v63 = vld [vmem:[%s4544_s0 + $0xd4] ss:$8 sps:$4 sm:$0xff]  }
 0x4db   : > { %2258 = vmatpush1.bf16.msra.mxu1 %v3762_v1  ;;  %v3812_v1 = vld [vmem:[%s4539_s18 + $0x24] ss:$8 sps:$4 sm:$0xff]  }
 0x4dc   : > { %2259 = vmatprep.subr.bf16.mxu1 %v3767_v2  ;;  %v3810_v2 = vld [vmem:[%s4539_s18 + $0x20] ss:$8 sps:$4 sm:$0xff]  }
 0x4dd   : > { %2573 = vmatpush1.bf16.msra.mxu0 %v3807_v0  ;;  %v3873_v0 = vld [vmem:[%s4544_s0 + $0xd0] ss:$8 sps:$4 sm:$0xff]  }
 0x4de   : > { %2574 = vmatprep.subr.bf16.mxu0 %v3812_v1  ;;  %v3878_v1 = vld [vmem:[%s4544_s0 + $0xc4] ss:$8 sps:$4 sm:$0xff]  }
 0x4df   : > { %2260 = vmatpush1.bf16.msra.mxu1 %v3765_v3  ;;  %v3815_v3 = vld [vmem:[%s4539_s18 + $0x14] ss:$8 sps:$4 sm:$0xff]  }
 0x4e0   : > { %2261 = vmatprep.subr.bf16.mxu1 %v3770_v4  ;;  %v3813_v4 = vld [vmem:[%s4539_s18 + $0x10] ss:$8 sps:$4 sm:$0xff]  }
 0x4e1   : > { %2575 = vmatpush1.bf16.msra.mxu0 %v3810_v2  ;;  %v3876_v2 = vld [vmem:[%s4544_s0 + $0xc0] ss:$8 sps:$4 sm:$0xff]  }
 0x4e2   : > { %2576 = vmatprep.subr.bf16.mxu0 %v3815_v3  ;;  %v3881_v3 = vld [vmem:[%s4544_s0 + $0xb4] ss:$8 sps:$4 sm:$0xff]  }
 0x4e3   : > { %2262 = vmatpush1.bf16.msra.mxu1 %v3768_v5  ;;  %v3818_v5 = vld [vmem:[%s4539_s18 + $0x4] ss:$8 sps:$4 sm:$0xff]  }
 0x4e4   : > { %2263 = vmatprep.subr.bf16.mxu1 %v3773_v6  ;;  %v3816_v6 = vld [vmem:[%s4539_s18] ss:$8 sps:$4 sm:$0xff]  }
 0x4e5   : > { %2577 = vmatpush1.bf16.msra.mxu0 %v3813_v4  ;;  %v3879_v4 = vld [vmem:[%s4544_s0 + $0xb0] ss:$8 sps:$4 sm:$0xff]  }
 0x4e6   : > { %2578 = vmatprep.subr.bf16.mxu0 %v3818_v5 }
 0x4e7   : > { %2264 = vmatpush2.bf16.msra.mxu1 %v3771_v7  ;;  %v3821_v7 = vld [vmem:[%s4539_s18 + $0xf4] ss:$8 sps:$4 sm:$0xff]  }
 0x4e8   : > { %2265 = vmatprep.subr.bf16.mxu1 %v3776_v8  ;;  %v3819_v8 = vld [vmem:[%s4539_s18 + $0xf0] ss:$8 sps:$4 sm:$0xff]  }
 0x4e9   : > { %2579 = vmatpush1.bf16.msra.mxu0 %v3816_v6 }
 0x4ea   : > { %2580 = vmatprep.subr.bf16.mxu0 %v3821_v7 }
 0x4eb   : > { %2266 = vmatpush2.bf16.msra.mxu1 %v3774_v9 }
 0x4ec   : > { %2267 = vmatprep.subr.bf16.mxu1 %v3779_v10 }
 0x4ed   : > { %2581 = vmatpush2.bf16.msra.mxu0 %v3819_v8 }
 0x4ef   : > { %2268 = vmatpush2.bf16.msra.mxu1 %v3777_v11 }
 0x4f0   : > { %2269 = vmatprep.subr.bf16.mxu1 %v3782_v12 }
 0x4f3   : > { %2270 = vmatpush2.bf16.msra.mxu1 %v3780_v13 }
 0x4f4   : > { %2271 = vmatprep.subr.bf16.mxu1 %v3785_v14 }
 0x4f7   : > { %2272 = vmatpush2.bf16.msra.mxu1 %v3783_v15 }
 0x4f8   : > { %2273 = vmatprep.subr.bf16.mxu1 %v3788_v16 }
 0x4fb   : > { %2274 = vmatpush2.bf16.msra.mxu1 %v3786_v17 }
 0x4fc   : > { %2275 = vmatprep.subr.bf16.mxu1 %v3791_v19 }
 0x4ff   : > { %2276 = vmatpush2.bf16.msra.mxu1 %v3789_v18 }
 0x500   : > { %2277 = vmatprep.subr.bf16.mxu1 %v3794_v21 }
 0x503   : > { %2278 = vmatpush2.bf16.msra.mxu1 %v3792_v20 }
 0x586   : > { %v2034_v22 = vpop.f32.mrf.mxu1 }
 0x588   : > { %v3498_v23 = vpop.f32.mrf.mxu1 }
 0x589   : > { %v3824_v23 = vld [vmem:[%s4539_s18 + $0xe4] ss:$8 sps:$4 sm:$0xff]  }
 0x58a   : > { %v1921_v24 = vpop.f32.mrf.mxu0  ;;  %v2037_v25 = vpop.f32.mrf.mxu1  ;;  %2582 = vmatprep.subr.bf16.mxu0 %v3824_v23 }
 0x58b   : > { %v2042_v26 = vpack.c.bf16 %v2037_v25, %v2034_v22  ;;  %v3827_v25 = vld [vmem:[%s4539_s18 + $0xd4] ss:$8 sps:$4 sm:$0xff]  }
 0x58c   : > { %v3486_v27 = vpop.f32.mrf.mxu0  ;;  %v3499_v28 = vpop.f32.mrf.mxu1 }
 0x58d   : > { %2279 = vmatprep.mubr.bf16.mxu1 %v2042_v26  ;;  %v3825_v26 = vld [vmem:[%s4539_s18 + $0xd0] ss:$8 sps:$4 sm:$0xff]   ;;  %v3830_v27 = vld [vmem:[%s4539_s18 + $0xc4] ss:$8 sps:$4 sm:$0xff]   ;;  %v3828_v28 = vld [vmem:[%s4539_s18 + $0xc0] ss:$8 sps:$4 sm:$0xff]  }
 0x58e   : > { %v1924_v29 = vpop.f32.mrf.mxu0 }
 0x58f   : > { %v2041_v30 = vpack.c.bf16 %v1924_v29, %v1921_v24  ;;  %v3822_v24 = vld [vmem:[%s4539_s18 + $0xe0] ss:$8 sps:$4 sm:$0xff]   ;;  %v3833_v29 = vld [vmem:[%s4539_s18 + $0xb4] ss:$8 sps:$4 sm:$0xff]  }
 0x590   : > { %v3487_v31 = vpop.f32.mrf.mxu0  ;;  %2583 = vmatpush2.bf16.msra.mxu0 %v3822_v24 }
 0x591   : > { %2280 = vmatmul.mubr.bf16.vlgmr.msra.gmra.mxu1 %v2041_v30  ;;  %2584 = vmatprep.subr.bf16.mxu0 %v3827_v25  ;;  %v3831_v30 = vld [vmem:[%s4539_s18 + $0xb0] ss:$8 sps:$4 sm:$0xff]   ;;  %v3836_v31 = vld [vmem:[%s4539_s18 + $0xa4] ss:$8 sps:$4 sm:$0xff]  }
 0x594   : > { %2585 = vmatpush2.bf16.msra.mxu0 %v3825_v26 }
 0x595   : > { %2586 = vmatprep.subr.bf16.mxu0 %v3830_v27 }
 0x598   : > { %2587 = vmatpush2.bf16.msra.mxu0 %v3828_v28 }
 0x599   : > { %2588 = vmatprep.subr.bf16.mxu0 %v3833_v29 }
 0x59c   : > { %2589 = vmatpush2.bf16.msra.mxu0 %v3831_v30 }
 0x59d   : > { %2590 = vmatprep.subr.bf16.mxu0 %v3836_v31 }
 0x5a0   : > { %2591 = vmatpush2.bf16.msra.mxu0 %v3834_v32 }
 0x651   : > { %v2281_v37 = vpop.f32.mrf.mxu1 }
 0x652   : > { %v2282_v38 = vadd.f32 %v2281_v37, %v2080_v35  ;;  %v3842_v37 = vld [vmem:[%s4539_s18 + $0x84] ss:$8 sps:$4 sm:$0xff]  }
 0x653   : > { %v2283_v39 = vpop.f32.mrf.mxu1 }
 0x654   : > { %v2284_v40 = vadd.f32 %v2283_v39, %v2084_v36  ;;  %v4773_v43 = vadd.f32 %v3915_v42, %v2282_v38  ;;  %v3840_v38 = vld [vmem:[%s4539_s18 + $0x80] ss:$8 sps:$4 sm:$0xff]   ;;  %v3843_v39 = vld [vmem:[%s4544_s0 + $0x70] ss:$8 sps:$4 sm:$0xff]  }
 0x655   : > { %v2285_v41 = vpop.f32.mrf.mxu1  ;;  %v3846_v42 = vld [vmem:[%s4544_s0 + $0x60] ss:$8 sps:$4 sm:$0xff]  }
 0x656   : > { %v4775_v45 = vadd.f32 %v3916_v44, %v2284_v40  ;;  %v2286_v46 = vadd.f32 %v2285_v41, %v2080_v35  ;;  %v3839_v35 = vld [vmem:[%s4539_s18 + $0x94] ss:$8 sps:$4 sm:$0xff]   ;;  %v3848_v41 = vld [vmem:[%s4544_s0 + $0x64] ss:$8 sps:$4 sm:$0xff]  }
 0x657   : > { %v2287_v49 = vpop.f32.mrf.mxu1  ;;  %2592 = vmatprep.subr.bf16.mxu0 %v3839_v35  ;;  %v3845_v40 = vld [vmem:[%s4544_s0 + $0x74] ss:$8 sps:$4 sm:$0xff]  }
 0x658   : > { %v2288_v50 = vadd.f32 %v2287_v49, %v2084_v36  ;;  %v2296_v48 = vadd.f32 %v4775_v45, %v4773_v43  ;;  %v4779_v52 = vadd.f32 %v3917_v51, %v2286_v46  ;;  %v3837_v36 = vld [vmem:[%s4539_s18 + $0x90] ss:$8 sps:$4 sm:$0xff]   ;;  %2817 = vmatprep.subr.bf16.mxu1 %v3845_v40  ;;  %v3851_v44 = vld [vmem:[%s4544_s0 + $0x54] ss:$8 sps:$4 sm:$0xff]   ;;  %v3854_v49 = vld [vmem:[%s4544_s0 + $0x44] ss:$8 sps:$4 sm:$0xff]  }
 0x659   : > { %2593 = vmatpush2.bf16.msra.mxu0 %v3837_v36  ;;  %2818 = vmatpush1.bf16.msra.mxu1 %v3843_v39  ;;  %v3849_v46 = vld [vmem:[%s4544_s0 + $0x50] ss:$8 sps:$4 sm:$0xff]   ;;  %v3890_v39 = vld [vmem:[%s4544_s0 + $0x84] ss:$8 sps:$4 sm:$0xff]   ;;  %v3888_v40 = vld [vmem:[%s4544_s0 + $0x80] ss:$8 sps:$4 sm:$0xff]  }
 0x65a   : > { %v4781_v55 = vadd.f32 %v3918_v47, %v2288_v50  ;;  %2297 = vadd.xlane.f32.xlu0 %v2296_v48  ;;  %2594 = vmatprep.subr.bf16.mxu0 %v3842_v37  ;;  %v3852_v50 = vld [vmem:[%s4544_s0 + $0x40] ss:$8 sps:$4 sm:$0xff]   ;;  %v3857_v48 = vld [vmem:[%s4544_s0 + $0x34] ss:$8 sps:$4 sm:$0xff]   ;;  %v3855_v51 = vld [vmem:[%s4544_s0 + $0x30] ss:$8 sps:$4 sm:$0xff]  }
 0x65b   : > { %2819 = vmatprep.subr.bf16.mxu1 %v3848_v41  ;;  %v3860_v47 = vld [vmem:[%s4544_s0 + $0x24] ss:$8 sps:$4 sm:$0xff]   ;;  %v3882_v37 = vld [vmem:[%s4544_s0 + $0xa0] ss:$8 sps:$4 sm:$0xff]   ;;  %s5002_s18 = scalar_lea.vmem [#allocation11], %s4469_s19 }
 0x65c   : > { %v2299_v56 = vadd.f32 %v4781_v55, %v4779_v52  ;;  %v2392_v41 = vld [vmem:[%s5002_s18] sm:$0x3] }
 0x65d   : > { %2595 = vmatpush2.bf16.msra.mxu0 %v3840_v38  ;;  %2820 = vmatpush1.bf16.msra.mxu1 %v3846_v42  ;;  %v3885_v38 = vld [vmem:[%s4544_s0 + $0x90] ss:$8 sps:$4 sm:$0xff]  }
 0x65e   : > { %2300 = vadd.xlane.f32.xlu1 %v2299_v56  ;;  %2821 = vmatprep.subr.bf16.mxu1 %v3851_v44  ;;  %v3858_v56 = vld [vmem:[%s4544_s0 + $0x20] ss:$8 sps:$4 sm:$0xff]   ;;  %v2401_v44 = vrot.slane %v2392_v41, %v4650_v33 }
 0x661   : > { %2822 = vmatpush1.bf16.msra.mxu1 %v3849_v46  ;;  %v2397_v46 = vrot.slane %v2392_v41, %v4652_v34 }
 0x662   : > { %2823 = vmatprep.subr.bf16.mxu1 %v3854_v49 }
 0x665   : > { %2824 = vmatpush1.bf16.msra.mxu1 %v3852_v50 }
 0x666   : > { %2825 = vmatprep.subr.bf16.mxu1 %v3857_v48 }
 0x669   : > { %2826 = vmatpush1.bf16.msra.mxu1 %v3855_v51 }
 0x66a   : > { %2827 = vmatprep.subr.bf16.mxu1 %v3860_v47 }
 0x66d   : > { %2828 = vmatpush1.bf16.msra.mxu1 %v3858_v56 }
 0x66e   : > { %2829 = vmatprep.subr.bf16.mxu1 %v3863_v57 }
 0x671   : > { %2830 = vmatpush1.bf16.msra.mxu1 %v3861_v58 }
 0x672   : > { %2831 = vmatprep.subr.bf16.mxu1 %v3866_v59 }
 0x675   : > { %2832 = vmatpush1.bf16.msra.mxu1 %v3864_v54 }
 0x676   : > { %2833 = vmatprep.subr.bf16.mxu1 %v3869_v53 }
 0x679   : > { %2834 = vmatpush2.bf16.msra.mxu1 %v3867_v60 }
 0x67a   : > { %2835 = vmatprep.subr.bf16.mxu1 %v3872_v61 }
 0x67d   : > { %2836 = vmatpush2.bf16.msra.mxu1 %v3870_v62  ;;  %v2645_v62 = vld [vmem:[%s809_s24] sm:$0x3] }
 0x67e   : > { %2837 = vmatprep.subr.bf16.mxu1 %v3875_v63  ;;  %v2650_v63 = vrot.slane %v2645_v62, %v4652_v34 }
 0x681   : > { %2838 = vmatpush2.bf16.msra.mxu1 %v3873_v0  ;;  %v2654_v0 = vrot.slane %v2645_v62, %v4650_v33 }
 0x682   : > { %2839 = vmatprep.subr.bf16.mxu1 %v3878_v1 }
 0x685   : > { %2840 = vmatpush2.bf16.msra.mxu1 %v3876_v2 }
 0x686   : > { %2841 = vmatprep.subr.bf16.mxu1 %v3881_v3 }
 0x689   : > { %2842 = vmatpush2.bf16.msra.mxu1 %v3879_v4 }
 0x6e3   : > { %v2298_v9 = vpop.xlane.xlu0 %2297 }
 0x6e4   : > { %v2302_v10 = vmul.f32 0.00390625, %v2298_v9 }
 0x6e6   : > { %v4804_v11 = vsub.f32 %v4773_v43, %v2302_v10  ;;  %v4807_v12 = vsub.f32 %v4775_v45, %v2302_v10 }
 0x6e7   : > { %v2301_v13 = vpop.xlane.xlu1 %2300 }
 0x6e8   : > { %v2303_v14 = vmul.f32 0.00390625, %v2301_v13  ;;  %v2308_v15 = vmul.f32 %v4804_v11, %v4804_v11  ;;  %v2309_v16 = vmul.f32 %v4807_v12, %v4807_v12  ;;  %v2294_v13 = vld [vmem:[%s5000_s22] sm:$0x3] }
 0x6ea   : > { %v4814_v17 = vsub.f32 %v4779_v52, %v2303_v14  ;;  %v4817_v18 = vsub.f32 %v4781_v55, %v2303_v14  ;;  %v2312_v19 = vadd.f32 %v2309_v16, %v2308_v15  ;;  %v2295_v15 = vld [vmem:[%s5001_s11] sm:$0x3] }
 0x6eb   : > { %v2347_v23 = vrot.slane %v2295_v15, %v4652_v34  ;;  %v2351_v24 = vrot.slane %v2295_v15, %v4650_v33 }
 0x6ec   : > { %2313 = vadd.xlane.f32.xlu0 %v2312_v19  ;;  %v2310_v20 = vmul.f32 %v4814_v17, %v4814_v17  ;;  %v2311_v21 = vmul.f32 %v4817_v18, %v4817_v18  ;;  %v2332_v19 = vrot.slane %v2294_v13, %v4652_v34 }
 0x6ee   : > { %v2315_v22 = vadd.f32 %v2311_v21, %v2310_v20  ;;  %v2336_v20 = vrot.slane %v2294_v13, %v4650_v33 }
 0x6f0   : > { %2316 = vadd.xlane.f32.xlu1 %v2315_v22 }
 0x775   : > { %v2314_v5 = vpop.xlane.xlu0 %2313 }
 0x776   : > { %v2318_v6 = vmul.f32 0.00390625, %v2314_v5 }
 0x778   : > { %v2320_v7 = vadd.f32 1e-05, %v2318_v6 }
 0x779   : > { %v2317_v8 = vpop.xlane.xlu1 %2316 }
 0x77a   : > { %3911 = vrsqrt.f32 %v2320_v7  ;;  %v2319_v9 = vmul.f32 0.00390625, %v2317_v8 }
 0x77c   : > { %v2321_v10 = vadd.f32 1e-05, %v2319_v9 }
 0x77e   : > { %3913 = vrsqrt.f32 %v2321_v10 }
 0x787   : > { %v3912_v14 = vpop.eup %3911 }
 0x788   : > { %v2325_v16 = vmul.f32 %v3912_v14, %v4807_v12  ;;  %v2324_v21 = vmul.f32 %v3912_v14, %v4804_v11 }
 0x78a   : > { %v2340_v26 = vmul.f32 %v2336_v20, %v2325_v16  ;;  %v2339_v12 = vmul.f32 %v2332_v19, %v2324_v21 }
 0x78b   : > { %v3914_v22 = vpop.eup %3913 }
 0x78c   : > { %v2327_v25 = vmul.f32 %v3914_v22, %v4817_v18  ;;  %v2326_v27 = vmul.f32 %v3914_v22, %v4814_v17  ;;  %v2355_v30 = vadd.f32 %v2351_v24, %v2340_v26  ;;  %v2354_v31 = vadd.f32 %v2347_v23, %v2339_v12  ;;  %v3884_v18 = vld [vmem:[%s4544_s0 + $0xa4] ss:$8 sps:$4 sm:$0xff]   ;;  %v3887_v17 = vld [vmem:[%s4544_s0 + $0x94] ss:$8 sps:$4 sm:$0xff]  }
 0x78d   : > { %2843 = vmatprep.subr.bf16.mxu1 %v3884_v18 }
 0x78e   : > { %v2342_v28 = vmul.f32 %v2336_v20, %v2327_v25  ;;  %v2341_v29 = vmul.f32 %v2332_v19, %v2326_v27  ;;  %2844 = vmatpush2.bf16.msra.mxu1 %v3882_v37 }
 0x78f   : > { %2845 = vmatprep.subr.bf16.mxu1 %v3887_v17 }
 0x790   : > { %v2357_v11 = vadd.f32 %v2351_v24, %v2342_v28  ;;  %v2356_v32 = vadd.f32 %v2347_v23, %v2341_v29 }
 0x792   : > { %v2359_v35 = vpack.c.bf16 %v2357_v11, %v2355_v30  ;;  %v2358_v36 = vpack.c.bf16 %v2356_v32, %v2354_v31  ;;  %2846 = vmatpush2.bf16.msra.mxu1 %v3885_v38 }
 0x793   : > { %2847 = vmatprep.subr.bf16.mxu1 %v3890_v39 }
 0x794   : > { %2596 = vmatprep.mubr.bf16.mxu0 %v2359_v35 }
 0x795   : > { %2597 = vmatmul.mubr.bf16.vlgmr.msra.gmra.mxu0 %v2358_v36 }
 0x796   : > { %2848 = vmatpush2.bf16.msra.mxu1 %v3888_v40 }
 0x855   : > { %v2598_v42 = vpop.f32.mrf.mxu0 }
 0x856   : > { %v2599_v47 = vadd.f32 %v2598_v42, %v2397_v46 }
 0x857   : > { %v2600_v49 = vpop.f32.mrf.mxu0 }
 0x858   : > { %v2601_v48 = vadd.f32 %v2600_v49, %v2401_v44  ;;  %v2607_v53 = vmax.f32 %v2599_v47, 0.0 }
 0x859   : > { %v2602_v50 = vpop.f32.mrf.mxu0 }
 0x85a   : > { %v2603_v51 = vadd.f32 %v2602_v50, %v2397_v46  ;;  %v2608_v59 = vmax.f32 %v2601_v48, 0.0 }
 0x85b   : > { %v2604_v56 = vpop.f32.mrf.mxu0 }
 0x85c   : > { %v2605_v57 = vadd.f32 %v2604_v56, %v2401_v44  ;;  %v2609_v58 = vmax.f32 %v2603_v51, 0.0 }
 0x85e   : > { %v2610_v54 = vmax.f32 %v2605_v57, 0.0  ;;  %v2611_v61 = vpack.c.bf16 %v2609_v58, %v2607_v53 }
 0x860   : > { %v2612_v60 = vpack.c.bf16 %v2610_v54, %v2608_v59 }
 0x862   : > { %2849 = vmatprep.mubr.bf16.mxu1 %v2612_v60 }
 0x863   : > { %2850 = vmatmul.mubr.bf16.vlgmr.msra.gmra.mxu1 %v2611_v61 }
 0x923   : > { %v2851_v1 = vpop.f32.mrf.mxu1 }
 0x924   : > { %v2852_v2 = vadd.f32 %v2851_v1, %v2650_v63 }
 0x925   : > { %v2853_v3 = vpop.f32.mrf.mxu1 }
 0x926   : > { %v2860_v4 = vadd.f32 %v2852_v2, %v4773_v43  ;;  %v2854_v5 = vadd.f32 %v2853_v3, %v2654_v0 }
 0x927   : > { %v2855_v6 = vpop.f32.mrf.mxu1 }
 0x928   : > { %2864 = vst [vmem:[#allocation2 + $0x10] sm:$0xff] %v2860_v4  ;;  %v2861_v7 = vadd.f32 %v2854_v5, %v4775_v45  ;;  %v2856_v8 = vadd.f32 %v2855_v6, %v2650_v63 }
 0x929   : > { %v2857_v9 = vpop.f32.mrf.mxu1 }
 0x92a   : > { %2865 = vst [vmem:[#allocation2] sm:$0xff] %v2861_v7  ;;  %v2862_v10 = vadd.f32 %v2856_v8, %v4779_v52  ;;  %v2858_v13 = vadd.f32 %v2857_v9, %v2654_v0  ;;  %2871 = sbr.rel (%p3450_p7) target bundleno = 2353 (0x931), region = 124 }
 0x92c   : > { %2866 = vst [vmem:[#allocation2 + $0x18] sm:$0xff] %v2862_v10  ;;  %v2863_v34 = vadd.f32 %v2858_v13, %v4781_v55 }
 0x92e   : > { %2867 = vst [vmem:[#allocation2 + $0x8] sm:$0xff] %v2863_v34 }
 0x92f   : > { %2872 = vst [vmem:[%s4549_s10] sm:$0xff] %v2860_v4  ;;  %2873 = vst [vmem:[%s4549_s10 + $0x8] sm:$0xff] %v2861_v7 }
 0x930   : > { %2874 = vst [vmem:[%s4549_s10 + $0x10] sm:$0xff] %v2862_v10  ;;  %2875 = vst [vmem:[%s4549_s10 + $0x18] sm:$0xff] %v2863_v34 }
 0x931 PF: > { %s39_s30 = sadd.s32 1, %s4193_s30   ;;  %s5003_s19 = sld [smem:[#allocation22_spill]] }
 0x932   : > { %p36_p0 = scmp.ge.s32.totalorder %s39_s30, 6   ;;  %s5004_s27 = sld [smem:[#allocation18_spill]] }
 0x933   : > { %s5005_s28 = sld [smem:[#allocation19_spill]]  ;;  %s5008_s24 = smov %s4169_s25 }
 0x934   : > { %s5006_s29 = sld [smem:[#allocation20_spill]]  ;;  %s5009_s25 = smov %s4173_s26 }
 0x935   : > { %s5007_s0 = sld [smem:[#allocation21_spill]]  ;;  %38 = sbr.rel (!%p36_p0) target bundleno = 28 (0x1c), region = 238 }
 0x937   : > { %s5010_s26 = smov %s5003_s19 }
 0x93a   :  { %2897 = vsyncpa [#allocation4], 1 }
 0x93b   :  { %2899 = vsyncpa [#allocation4 + $0x1], 1 }
 0x93c   :  { %2900 = vsyncpa [#allocation6], 1 }
 0x93d   :  { %2902 = vsyncpa [#allocation6 + $0x1], 1 }
 0x93e   :  { %2903 = vsyncpa [#allocation9], 1 }
 0x93f   :  { %2905 = vsyncpa [#allocation9 + $0x1], 1 }
 0x940   :  { %2906 = vsyncpa [#allocation12], 1 }
 0x941   :  { %2908 = vsyncpa [#allocation12 + $0x1], 1 }

</bundles_post_ra>
